<compile_context>
chip_gen: v5e
topology: v5e:2x2
jax: 0.10.0
libtpu: 0.0.40
codegen_flags: <defaults>
</compile_context>

<pallas_src>
import functools

import jax
import jax.numpy as jnp
from jax.experimental import pallas as pl
from jax.experimental.pallas import tpu as pltpu


# ----------------------------- helpers ------------------------------

def _round_up(x, m):
    return (x + m - 1) // m * m


def _pack_gate_cols(w_t, n_rows, H, Hp):
    """w_t: (in, 4*H) -> (n_rows, 4*Hp) with gate g placed at cols [g*Hp, g*Hp+H)."""
    insz = w_t.shape[0]
    out = jnp.zeros((n_rows, 4 * Hp), jnp.float32)
    for g in range(4):
        out = out.at[:insz, g * Hp:g * Hp + H].set(w_t[:, g * H:(g + 1) * H])
    return out


def _pack_gate_vec(v, H, Hp):
    out = jnp.zeros((4 * Hp,), jnp.float32)
    for g in range(4):
        out = out.at[g * Hp:g * Hp + H].set(v[g * H:(g + 1) * H])
    return out


# ----------------------------- fused per-layer LSTM kernel ------------------------------

def _lstm_layer_kernel(x_ref, wih_ref, whh_ref, bias_ref, h0_ref, c0_ref,
                       out_ref, hn_ref, cn_ref,
                       h_st, c_st, gx_st, *, t_real, t_padded):
    """One LSTM layer over a chunk of `tt` timesteps. Grid axis = time chunks (sequential).

    x_ref   : (tt*Bp, In_p)  bf16  chunk of layer input (time-major rows), streamed
    wih_ref : (In_p, 4*Hp)   bf16  W_ih^T (gate-padded), resident (constant index_map)
    whh_ref : (Hp,   4*Hp)   bf16  W_hh^T (gate-padded), resident
    bias_ref: (1,    4*Hp)   f32   b_ih + b_hh (gate-padded), resident
    h0/c0   : (Bp, Hp)       f32   initial state, resident
    out_ref : (tt, Bp, Hp)   bf16  per-step hidden output chunk (lane-dense stores)
    hn/cn   : (Bp, Hp)       f32   final state (written on the last chunk only)
    h_st/c_st: VMEM scratch carrying the running state across chunks.
    gx_st   : (tt*Bp, 4*Hp)  f32   VMEM scratch for the chunk's input projection.
    """
    ci = pl.program_id(0)
    tt, bp, hp = out_ref.shape

    @pl.when(ci == 0)
    def _():
        h_st[...] = h0_ref[...]
        c_st[...] = c0_ref[...]

    # (1) Input projection for the whole chunk: ONE MXU matmul (tt*Bp rows), bias fused,
    #     bf16 operands / f32 accumulation. The result never leaves VMEM.
    gx_st[...] = jnp.dot(x_ref[...], wih_ref[...],
                         preferred_element_type=jnp.float32) + bias_ref[...]

    # (2) Sequential recurrence over the chunk. W_hh^T stays resident in VMEM; the running
    #     (h, c) state lives in VMEM scratch. Gate math in f32 (v5e-safe).
    def step(t, carry):
        row = pl.multiple_of(t * bp, bp)
        gh = jnp.dot(h_st[...].astype(jnp.bfloat16), whh_ref[...],
                     preferred_element_type=jnp.float32)
        g = gx_st[pl.ds(row, bp), :] + gh                      # (Bp, 4*Hp) f32
        i = jax.nn.sigmoid(g[:, 0 * hp:1 * hp])
        f = jax.nn.sigmoid(g[:, 1 * hp:2 * hp])
        gg = jnp.tanh(g[:, 2 * hp:3 * hp])
        o = jax.nn.sigmoid(g[:, 3 * hp:4 * hp])
        c_new = f * c_st[...] + i * gg
        h_new = o * jnp.tanh(c_new)
        if t_padded != t_real:                                 # freeze state on padded steps
            valid = (ci * tt + t) < t_real
            c_new = jnp.where(valid, c_new, c_st[...])
            h_new = jnp.where(valid, h_new, h_st[...])
        c_st[...] = c_new
        h_st[...] = h_new
        out_ref[t] = h_new.astype(out_ref.dtype)
        return carry

    jax.lax.fori_loop(0, tt, step, 0, unroll=min(tt, 8))

    @pl.when(ci == pl.num_programs(0) - 1)
    def _():
        hn_ref[...] = h_st[...]
        cn_ref[...] = c_st[...]


def lstm_layer_fused(x2d, w_ih_t, w_hh_t, bias, h0, c0, *, tt, t_real):
    """x2d: (Tp*Bp, In_p) bf16 time-major rows. Returns (out_seq (Tp,Bp,Hp) bf16, h_n, c_n f32)."""
    rows, in_p = x2d.shape
    bp, hp = h0.shape
    g4 = 4 * hp
    tp = rows // bp
    n_chunks = tp // tt
    assert n_chunks * tt == tp

    # VMEM budget: streamed chunks double-buffered, residents counted at 2 buffers (worst
    # case), plus scratch; capped at 64 MiB so the same config is safe on v7x.
    need = (2 * tt * bp * in_p * 2              # x chunk (bf16, double-buffered)
            + 2 * tt * bp * hp * 2              # out chunk (bf16, double-buffered)
            + 2 * (in_p + hp) * g4 * 2          # resident W_ih^T, W_hh^T (bf16)
            + 2 * g4 * 4                        # bias
            + 4 * bp * hp * 4                   # h0, c0
            + 4 * bp * hp * 4                   # hn, cn output buffers
            + (2 * bp * hp + tt * bp * g4) * 4)  # scratch: h, c, gx
    vmem_limit = int(min(max(2 * need, 32 * 1024 * 1024), 64 * 1024 * 1024))

    kernel = functools.partial(_lstm_layer_kernel, t_real=t_real, t_padded=tp)
    out_seq, h_n, c_n = pl.pallas_call(
        kernel,
        out_shape=(jax.ShapeDtypeStruct((tp, bp, hp), jnp.bfloat16),
                   jax.ShapeDtypeStruct((bp, hp), jnp.float32),
                   jax.ShapeDtypeStruct((bp, hp), jnp.float32)),
        grid_spec=pltpu.PrefetchScalarGridSpec(
            num_scalar_prefetch=0,
            grid=(n_chunks,),
            in_specs=[
                pl.BlockSpec((tt * bp, in_p), lambda c: (c, 0)),   # x chunk, streamed
                pl.BlockSpec((in_p, g4), lambda c: (0, 0)),        # W_ih^T resident
                pl.BlockSpec((hp, g4), lambda c: (0, 0)),          # W_hh^T resident
                pl.BlockSpec((1, g4), lambda c: (0, 0)),           # bias resident
                pl.BlockSpec((bp, hp), lambda c: (0, 0)),          # h0 resident
                pl.BlockSpec((bp, hp), lambda c: (0, 0)),          # c0 resident
            ],
            out_specs=(
                pl.BlockSpec((tt, bp, hp), lambda c: (c, 0, 0)),   # per-chunk h output
                pl.BlockSpec((bp, hp), lambda c: (0, 0)),          # final h
                pl.BlockSpec((bp, hp), lambda c: (0, 0)),          # final c
            ),
            scratch_shapes=[
                pltpu.VMEM((bp, hp), jnp.float32),                 # running h
                pltpu.VMEM((bp, hp), jnp.float32),                 # running c
                pltpu.VMEM((tt * bp, g4), jnp.float32),            # chunk input projection
            ],
        ),
        compiler_params=pltpu.CompilerParams(
            dimension_semantics=("arbitrary",),                    # recurrence is sequential
            vmem_limit_bytes=vmem_limit,
        ),
    )(x2d, w_ih_t, w_hh_t, bias, h0, c0)
    return out_seq, h_n, c_n


# ----------------------------- parameters ------------------------------

def init_params(key, input_size, hidden_size, num_layers):
    """nn.LSTM default init: U(-k, k), k = 1/sqrt(hidden_size); PyTorch gate order [i,f,g,o]."""
    H = hidden_size
    Hp = _round_up(H, 128)
    in_p0 = _round_up(input_size, 128)
    k = 1.0 / (H ** 0.5)
    keys = jax.random.split(key, 4 * num_layers)
    layers = []
    for l in range(num_layers):
        in_size = input_size if l == 0 else H
        in_rows = in_p0 if l == 0 else Hp    # layers >0 consume the lane-padded hidden
        kw_ih, kw_hh, kb_ih, kb_hh = keys[4 * l:4 * l + 4]
        w_ih = jax.random.uniform(kw_ih, (4 * H, in_size), jnp.float32, -k, k)
        w_hh = jax.random.uniform(kw_hh, (4 * H, H), jnp.float32, -k, k)
        b_ih = jax.random.uniform(kb_ih, (4 * H,), jnp.float32, -k, k)
        b_hh = jax.random.uniform(kb_hh, (4 * H,), jnp.float32, -k, k)
        layers.append({
            # pre-transposed, gate-padded, bf16-cast ONCE at init (no per-call copies)
            "w_ih_t": _pack_gate_cols(w_ih.T, in_rows, H, Hp).astype(jnp.bfloat16),
            "w_hh_t": _pack_gate_cols(w_hh.T, Hp, H, Hp).astype(jnp.bfloat16),
            "bias": _pack_gate_vec(b_ih + b_hh, H, Hp).reshape(1, 4 * Hp),
            # raw f32 copies kept only for the pure-JAX tolerance check
            "ref_w_ih": w_ih, "ref_w_hh": w_hh, "ref_b": b_ih + b_hh,
        })
    return {"layers": layers, "hidden_size": H, "Hp": Hp, "in_p0": in_p0,
            "input_size": input_size, "num_layers": num_layers}


# ----------------------------- decoder forward ------------------------------

def seq2seq_decoder_forward(inputs, encoder_finals, params, hidden=None, max_len=None,
                            tt_max=32):
    """inputs: (B, T, input_size); encoder_finals: (num_enc_layers, B, hidden_size).

    Returns ((h_n, c_n), pre_output_vectors) with h_n/c_n: (num_layers, B, H) and
    pre_output_vectors: (B, max_len, H) — the teacher-forced step-by-step unroll of the
    PyTorch Seq2SeqDecoder (the per-step max over a length-1 dim is the identity).
    """
    B, T_in, in_size = inputs.shape
    H = params["hidden_size"]
    Hp = params["Hp"]
    in_p0 = params["in_p0"]
    L = params["num_layers"]
    layers = params["layers"]
    if max_len is None:
        max_len = T_in
    T = max_len
    if hidden is None:
        # PyTorch init_hidden: encoder_finals.repeat((3, 1, 1)) (the x3 is hard-coded in spec)
        hidden = jnp.tile(encoder_finals, (3, 1, 1))
    assert hidden.shape == (L, B, H), hidden.shape

    Bp = max(_round_up(B, 8), 8)
    n_chunks = -(-T // tt_max)
    Tt = -(-T // n_chunks)              # near-even chunking -> minimal time padding
    Tp = Tt * n_chunks

    h0 = jnp.zeros((L, Bp, Hp), jnp.float32).at[:, :B, :H].set(hidden.astype(jnp.float32))
    c0 = jnp.zeros((L, Bp, Hp), jnp.float32)   # TODO(synk): spec supplies only h_0; c_0 = 0

    # Layer-0 input: time-major, batch/lane padded, bf16. One small prep pass done once per
    # call; everything downstream stays in this padded bf16 layout (no per-layer casts/pads).
    x = jnp.transpose(inputs[:, :T].astype(jnp.bfloat16), (1, 0, 2))
    x = jnp.pad(x, ((0, Tp - T), (0, Bp - B), (0, in_p0 - in_size)))
    x2d = x.reshape(Tp * Bp, in_p0)

    out_seq = None
    h_fin, c_fin = [], []
    for l in range(L):
        lp = layers[l]
        out_seq, h_n, c_n = lstm_layer_fused(x2d, lp["w_ih_t"], lp["w_hh_t"], lp["bias"],
                                             h0[l], c0[l], tt=Tt, t_real=T)
        h_fin.append(h_n[:B, :H])
        c_fin.append(c_n[:B, :H])
        x2d = out_seq.reshape(Tp * Bp, Hp)      # free (bitcast) reshape; next layer's input
        # TODO(synk): inter-layer dropout (p=0.1, training only) skipped (eval-mode forward).

    pre_output_vectors = jnp.transpose(out_seq[:T, :B, :H].astype(jnp.float32), (1, 0, 2))
    return (jnp.stack(h_fin, 0), jnp.stack(c_fin, 0)), pre_output_vectors


# ----------------------------- pure-JAX f32 reference (for tolerance check) ------------------

def lstm_reference_forward(inputs, encoder_finals, params, hidden=None, max_len=None):
    B, T, _ = inputs.shape
    if max_len is None:
        max_len = T
    if hidden is None:
        hidden = jnp.tile(encoder_finals, (3, 1, 1))
    x = inputs[:, :max_len].astype(jnp.float32)
    h_fin, c_fin = [], []
    for lp in params["layers"]:
        w_ih, w_hh, b = lp["ref_w_ih"], lp["ref_w_hh"], lp["ref_b"]

        def cell(carry, x_t, w_ih=w_ih, w_hh=w_hh, b=b):
            h, c = carry
            g = x_t @ w_ih.T + h @ w_hh.T + b
            i, f, gg, o = jnp.split(g, 4, axis=-1)
            c = jax.nn.sigmoid(f) * c + jax.nn.sigmoid(i) * jnp.tanh(gg)
            h = jax.nn.sigmoid(o) * jnp.tanh(c)
            return (h, c), h

        h0l = hidden[len(h_fin)].astype(jnp.float32)
        c0l = jnp.zeros_like(h0l)
        (hT, cT), ys = jax.lax.scan(cell, (h0l, c0l), jnp.swapaxes(x, 0, 1))
        x = jnp.swapaxes(ys, 0, 1)
        h_fin.append(hT)
        c_fin.append(cT)
    return (jnp.stack(h_fin, 0), jnp.stack(c_fin, 0)), x


# ----------------------------- main ------------------------------

if __name__ == "__main__":
    key = jax.random.PRNGKey(0)
    kp, kx, ke = jax.random.split(key, 3)

    B, T = 2, 8
    input_size = 16            # embed_size
    hidden_size = 32
    num_enc_layers = 1
    num_layers = 3 * num_enc_layers   # init_hidden repeats encoder_finals x3 along layers

    params = init_params(kp, input_size, hidden_size, num_layers)
    inputs = jax.random.normal(kx, (B, T, input_size), jnp.float32)
    encoder_finals = jax.random.normal(ke, (num_enc_layers, B, hidden_size), jnp.float32)

    fwd = jax.jit(lambda inp, enc: seq2seq_decoder_forward(inp, enc, params))
    (h_n, c_n), pre_out = fwd(inputs, encoder_finals)
    pre_out = jax.block_until_ready(pre_out)

    assert pre_out.shape == (B, T, hidden_size), pre_out.shape
    assert h_n.shape == (num_layers, B, hidden_size), h_n.shape
    assert c_n.shape == (num_layers, B, hidden_size), c_n.shape
    assert bool(jnp.all(jnp.isfinite(pre_out)))
    assert bool(jnp.all(jnp.isfinite(h_n))) and bool(jnp.all(jnp.isfinite(c_n)))

    # Tolerance check vs a pure-JAX f32 reference (bf16 MXU operands -> generous tolerance).
    (h_ref, c_ref), pre_ref = lstm_reference_forward(inputs, encoder_finals, params)
    assert float(jnp.max(jnp.abs(pre_out - pre_ref))) < 0.1
    assert float(jnp.max(jnp.abs(h_n - h_ref))) < 0.1
    assert float(jnp.max(jnp.abs(c_n - c_ref))) < 0.2

    print("KERNEL_OK")
</pallas_src>

<mosaic_0001>
module attributes {stable_mosaic.version = 11 : i64} {
  func.func @_lstm_layer_kernel(%arg0: i32, %arg1: memref<64x128xbf16, #tpu.memory_space<vmem>>, %arg2: memref<128x512xbf16, #tpu.memory_space<vmem>>, %arg3: memref<128x512xbf16, #tpu.memory_space<vmem>>, %arg4: memref<1x512xf32, #tpu.memory_space<vmem>>, %arg5: memref<8x128xf32, #tpu.memory_space<vmem>>, %arg6: memref<8x128xf32, #tpu.memory_space<vmem>>, %arg7: memref<8x8x128xbf16, #tpu.memory_space<vmem>>, %arg8: memref<8x128xf32, #tpu.memory_space<vmem>>, %arg9: memref<8x128xf32, #tpu.memory_space<vmem>>, %arg10: memref<8x128xf32, #tpu.memory_space<vmem>>, %arg11: memref<8x128xf32, #tpu.memory_space<vmem>>, %arg12: memref<64x512xf32, #tpu.memory_space<vmem>>) attributes {dimension_semantics = [#tpu.dimension_semantics<arbitrary>], iteration_bounds = array<i64: 1>, scalar_prefetch = 0 : i64, scratch_operands = 3 : i64, tpu.core_type = #tpu.core_type<tc>, window_params = [{transform_indices = @transform_0, window_bounds = array<i64: 64, 128>}, {pipeline_mode = #tpu.pipeline_mode<synchronous>, transform_indices = @transform_1, window_bounds = array<i64: 128, 512>}, {pipeline_mode = #tpu.pipeline_mode<synchronous>, transform_indices = @transform_2, window_bounds = array<i64: 128, 512>}, {pipeline_mode = #tpu.pipeline_mode<synchronous>, transform_indices = @transform_3, window_bounds = array<i64: 1, 512>}, {pipeline_mode = #tpu.pipeline_mode<synchronous>, transform_indices = @transform_4, window_bounds = array<i64: 8, 128>}, {pipeline_mode = #tpu.pipeline_mode<synchronous>, transform_indices = @transform_5, window_bounds = array<i64: 8, 128>}, {transform_indices = @transform_6, window_bounds = array<i64: 8, 8, 128>}, {pipeline_mode = #tpu.pipeline_mode<synchronous>, transform_indices = @transform_7, window_bounds = array<i64: 8, 128>}, {pipeline_mode = #tpu.pipeline_mode<synchronous>, transform_indices = @transform_8, window_bounds = array<i64: 8, 128>}]} {
    %c0_i32 = arith.constant 0 : i32
    %0 = arith.cmpi eq, %arg0, %c0_i32 : i32
    %1 = arith.extui %0 : i1 to i32
    %c0_i32_0 = arith.constant 0 : i32
    %2 = arith.cmpi ne, %1, %c0_i32_0 : i32
    scf.if %2 {
      %c0_155 = arith.constant 0 : index
      %c0_156 = arith.constant 0 : index
      %349 = vector.load %arg5[%c0_155, %c0_156] : memref<8x128xf32, #tpu.memory_space<vmem>>, vector<8x128xf32>
      %c0_157 = arith.constant 0 : index
      %c0_158 = arith.constant 0 : index
      %350 = vector.load %arg10[%c0_157, %c0_158] : memref<8x128xf32, #tpu.memory_space<vmem>>, vector<8x128xf32>
      tpu.vector_store %arg10[%c0_157, %c0_158], %349 {strides = array<i32>} : memref<8x128xf32, #tpu.memory_space<vmem>>, vector<8x128xf32>,
      %c0_159 = arith.constant 0 : index
      %c0_160 = arith.constant 0 : index
      %351 = vector.load %arg6[%c0_159, %c0_160] : memref<8x128xf32, #tpu.memory_space<vmem>>, vector<8x128xf32>
      %c0_161 = arith.constant 0 : index
      %c0_162 = arith.constant 0 : index
      %352 = vector.load %arg11[%c0_161, %c0_162] : memref<8x128xf32, #tpu.memory_space<vmem>>, vector<8x128xf32>
      tpu.vector_store %arg11[%c0_161, %c0_162], %351 {strides = array<i32>} : memref<8x128xf32, #tpu.memory_space<vmem>>, vector<8x128xf32>,
    } else {
    }
    %c0 = arith.constant 0 : index
    %c0_1 = arith.constant 0 : index
    %3 = vector.load %arg1[%c0, %c0_1] : memref<64x128xbf16, #tpu.memory_space<vmem>>, vector<64x128xbf16>
    %c0_2 = arith.constant 0 : index
    %c0_3 = arith.constant 0 : index
    %4 = vector.load %arg2[%c0_2, %c0_3] : memref<128x512xbf16, #tpu.memory_space<vmem>>, vector<128x512xbf16>
    %cst = arith.constant dense<0.000000e+00> : vector<64x512xf32>
    %5 = tpu.matmul %3, %4, %cst {dimension_numbers = #tpu.dot_dimension_numbers<[1], [0], [0], [1], [0, 0, 1, 1], [], []>} : vector<64x128xbf16>, vector<128x512xbf16>, vector<64x512xf32> -> vector<64x512xf32>
    %c0_4 = arith.constant 0 : index
    %c0_5 = arith.constant 0 : index
    %6 = vector.load %arg4[%c0_4, %c0_5] : memref<1x512xf32, #tpu.memory_space<vmem>>, vector<1x512xf32>
    %7 = vector.broadcast %6 : vector<1x512xf32> to vector<64x512xf32>
    %8 = arith.addf %5, %7 : vector<64x512xf32>
    %c0_6 = arith.constant 0 : index
    %c0_7 = arith.constant 0 : index
    %9 = vector.load %arg12[%c0_6, %c0_7] : memref<64x512xf32, #tpu.memory_space<vmem>>, vector<64x512xf32>
    tpu.vector_store %arg12[%c0_6, %c0_7], %8 {strides = array<i32>} : memref<64x512xf32, #tpu.memory_space<vmem>>, vector<64x512xf32>,
    %c0_i32_8 = arith.constant 0 : i32
    %c8_i32 = arith.constant 8 : i32
    %10 = arith.muli %c0_i32_8, %c8_i32 : i32
    %11 = tpu.assume_multiple %10, 8 : i32
    %c0_9 = arith.constant 0 : index
    %c0_10 = arith.constant 0 : index
    %12 = vector.load %arg10[%c0_9, %c0_10] : memref<8x128xf32, #tpu.memory_space<vmem>>, vector<8x128xf32>
    %13 = arith.truncf %12 : vector<8x128xf32> to vector<8x128xbf16>
    %c0_11 = arith.constant 0 : index
    %c0_12 = arith.constant 0 : index
    %14 = vector.load %arg3[%c0_11, %c0_12] : memref<128x512xbf16, #tpu.memory_space<vmem>>, vector<128x512xbf16>
    %cst_13 = arith.constant dense<0.000000e+00> : vector<8x512xf32>
    %15 = tpu.matmul %13, %14, %cst_13 {dimension_numbers = #tpu.dot_dimension_numbers<[1], [0], [0], [1], [0, 0, 1, 1], [], []>} : vector<8x128xbf16>, vector<128x512xbf16>, vector<8x512xf32> -> vector<8x512xf32>
    %16 = arith.index_cast %11 : i32 to index
    %c0_14 = arith.constant 0 : index
    %17 = vector.load %arg12[%16, %c0_14] : memref<64x512xf32, #tpu.memory_space<vmem>>, vector<8x512xf32>
    %18 = arith.addf %17, %15 : vector<8x512xf32>
    %19 = vector.extract_strided_slice %18 {offsets = [0, 0], sizes = [8, 128], strides = [1, 1]} : vector<8x512xf32> to vector<8x128xf32>
    %20 = arith.negf %19 : vector<8x128xf32>
    %21 = math.exp %20 : vector<8x128xf32>
    %cst_15 = arith.constant 1.000000e+00 : f32
    %22 = vector.broadcast %cst_15 : f32 to vector<8x128xf32>
    %23 = arith.addf %22, %21 : vector<8x128xf32>
    %24 = arith.divf %22, %23 : vector<8x128xf32>
    %25 = vector.extract_strided_slice %18 {offsets = [0, 128], sizes = [8, 128], strides = [1, 1]} : vector<8x512xf32> to vector<8x128xf32>
    %26 = arith.negf %25 : vector<8x128xf32>
    %27 = math.exp %26 : vector<8x128xf32>
    %cst_16 = arith.constant 1.000000e+00 : f32
    %28 = vector.broadcast %cst_16 : f32 to vector<8x128xf32>
    %29 = arith.addf %28, %27 : vector<8x128xf32>
    %30 = arith.divf %28, %29 : vector<8x128xf32>
    %31 = vector.extract_strided_slice %18 {offsets = [0, 256], sizes = [8, 128], strides = [1, 1]} : vector<8x512xf32> to vector<8x128xf32>
    %32 = math.tanh %31 : vector<8x128xf32>
    %33 = vector.extract_strided_slice %18 {offsets = [0, 384], sizes = [8, 128], strides = [1, 1]} : vector<8x512xf32> to vector<8x128xf32>
    %34 = arith.negf %33 : vector<8x128xf32>
    %35 = math.exp %34 : vector<8x128xf32>
    %cst_17 = arith.constant 1.000000e+00 : f32
    %36 = vector.broadcast %cst_17 : f32 to vector<8x128xf32>
    %37 = arith.addf %36, %35 : vector<8x128xf32>
    %38 = arith.divf %36, %37 : vector<8x128xf32>
    %c0_18 = arith.constant 0 : index
    %c0_19 = arith.constant 0 : index
    %39 = vector.load %arg11[%c0_18, %c0_19] : memref<8x128xf32, #tpu.memory_space<vmem>>, vector<8x128xf32>
    %40 = arith.mulf %30, %39 : vector<8x128xf32>
    %41 = arith.mulf %24, %32 : vector<8x128xf32>
    %42 = arith.addf %40, %41 : vector<8x128xf32>
    %43 = math.tanh %42 : vector<8x128xf32>
    %44 = arith.mulf %38, %43 : vector<8x128xf32>
    %c0_20 = arith.constant 0 : index
    %c0_21 = arith.constant 0 : index
    %45 = vector.load %arg11[%c0_20, %c0_21] : memref<8x128xf32, #tpu.memory_space<vmem>>, vector<8x128xf32>
    tpu.vector_store %arg11[%c0_20, %c0_21], %42 {strides = array<i32>} : memref<8x128xf32, #tpu.memory_space<vmem>>, vector<8x128xf32>,
    %c0_22 = arith.constant 0 : index
    %c0_23 = arith.constant 0 : index
    %46 = vector.load %arg10[%c0_22, %c0_23] : memref<8x128xf32, #tpu.memory_space<vmem>>, vector<8x128xf32>
    tpu.vector_store %arg10[%c0_22, %c0_23], %44 {strides = array<i32>} : memref<8x128xf32, #tpu.memory_space<vmem>>, vector<8x128xf32>,
    %47 = arith.truncf %44 : vector<8x128xf32> to vector<8x128xbf16>
    %48 = arith.index_cast %c0_i32_8 : i32 to index
    %c0_24 = arith.constant 0 : index
    %c0_25 = arith.constant 0 : index
    %49 = vector.load %arg7[%48, %c0_24, %c0_25] : memref<8x8x128xbf16, #tpu.memory_space<vmem>>, vector<1x8x128xbf16>
    %50 = vector.shape_cast %49 : vector<1x8x128xbf16> to vector<8x128xbf16>
    %51 = vector.shape_cast %47 : vector<8x128xbf16> to vector<1x8x128xbf16>
    tpu.vector_store %arg7[%48, %c0_24, %c0_25], %51 {strides = array<i32>} : memref<8x8x128xbf16, #tpu.memory_space<vmem>>, vector<1x8x128xbf16>,
    %c1_i32 = arith.constant 1 : i32
    %c8_i32_26 = arith.constant 8 : i32
    %52 = arith.muli %c1_i32, %c8_i32_26 : i32
    %53 = tpu.assume_multiple %52, 8 : i32
    %c0_27 = arith.constant 0 : index
    %c0_28 = arith.constant 0 : index
    %54 = vector.load %arg10[%c0_27, %c0_28] : memref<8x128xf32, #tpu.memory_space<vmem>>, vector<8x128xf32>
    %55 = arith.truncf %54 : vector<8x128xf32> to vector<8x128xbf16>
    %c0_29 = arith.constant 0 : index
    %c0_30 = arith.constant 0 : index
    %56 = vector.load %arg3[%c0_29, %c0_30] : memref<128x512xbf16, #tpu.memory_space<vmem>>, vector<128x512xbf16>
    %cst_31 = arith.constant dense<0.000000e+00> : vector<8x512xf32>
    %57 = tpu.matmul %55, %56, %cst_31 {dimension_numbers = #tpu.dot_dimension_numbers<[1], [0], [0], [1], [0, 0, 1, 1], [], []>} : vector<8x128xbf16>, vector<128x512xbf16>, vector<8x512xf32> -> vector<8x512xf32>
    %58 = arith.index_cast %53 : i32 to index
    %c0_32 = arith.constant 0 : index
    %59 = vector.load %arg12[%58, %c0_32] : memref<64x512xf32, #tpu.memory_space<vmem>>, vector<8x512xf32>
    %60 = arith.addf %59, %57 : vector<8x512xf32>
    %61 = vector.extract_strided_slice %60 {offsets = [0, 0], sizes = [8, 128], strides = [1, 1]} : vector<8x512xf32> to vector<8x128xf32>
    %62 = arith.negf %61 : vector<8x128xf32>
    %63 = math.exp %62 : vector<8x128xf32>
    %cst_33 = arith.constant 1.000000e+00 : f32
    %64 = vector.broadcast %cst_33 : f32 to vector<8x128xf32>
    %65 = arith.addf %64, %63 : vector<8x128xf32>
    %66 = arith.divf %64, %65 : vector<8x128xf32>
    %67 = vector.extract_strided_slice %60 {offsets = [0, 128], sizes = [8, 128], strides = [1, 1]} : vector<8x512xf32> to vector<8x128xf32>
    %68 = arith.negf %67 : vector<8x128xf32>
    %69 = math.exp %68 : vector<8x128xf32>
    %cst_34 = arith.constant 1.000000e+00 : f32
    %70 = vector.broadcast %cst_34 : f32 to vector<8x128xf32>
    %71 = arith.addf %70, %69 : vector<8x128xf32>
    %72 = arith.divf %70, %71 : vector<8x128xf32>
    %73 = vector.extract_strided_slice %60 {offsets = [0, 256], sizes = [8, 128], strides = [1, 1]} : vector<8x512xf32> to vector<8x128xf32>
    %74 = math.tanh %73 : vector<8x128xf32>
    %75 = vector.extract_strided_slice %60 {offsets = [0, 384], sizes = [8, 128], strides = [1, 1]} : vector<8x512xf32> to vector<8x128xf32>
    %76 = arith.negf %75 : vector<8x128xf32>
    %77 = math.exp %76 : vector<8x128xf32>
    %cst_35 = arith.constant 1.000000e+00 : f32
    %78 = vector.broadcast %cst_35 : f32 to vector<8x128xf32>
    %79 = arith.addf %78, %77 : vector<8x128xf32>
    %80 = arith.divf %78, %79 : vector<8x128xf32>
    %c0_36 = arith.constant 0 : index
    %c0_37 = arith.constant 0 : index
    %81 = vector.load %arg11[%c0_36, %c0_37] : memref<8x128xf32, #tpu.memory_space<vmem>>, vector<8x128xf32>
    %82 = arith.mulf %72, %81 : vector<8x128xf32>
    %83 = arith.mulf %66, %74 : vector<8x128xf32>
    %84 = arith.addf %82, %83 : vector<8x128xf32>
    %85 = math.tanh %84 : vector<8x128xf32>
    %86 = arith.mulf %80, %85 : vector<8x128xf32>
    %c0_38 = arith.constant 0 : index
    %c0_39 = arith.constant 0 : index
    %87 = vector.load %arg11[%c0_38, %c0_39] : memref<8x128xf32, #tpu.memory_space<vmem>>, vector<8x128xf32>
    tpu.vector_store %arg11[%c0_38, %c0_39], %84 {strides = array<i32>} : memref<8x128xf32, #tpu.memory_space<vmem>>, vector<8x128xf32>,
    %c0_40 = arith.constant 0 : index
    %c0_41 = arith.constant 0 : index
    %88 = vector.load %arg10[%c0_40, %c0_41] : memref<8x128xf32, #tpu.memory_space<vmem>>, vector<8x128xf32>
    tpu.vector_store %arg10[%c0_40, %c0_41], %86 {strides = array<i32>} : memref<8x128xf32, #tpu.memory_space<vmem>>, vector<8x128xf32>,
    %89 = arith.truncf %86 : vector<8x128xf32> to vector<8x128xbf16>
    %90 = arith.index_cast %c1_i32 : i32 to index
    %c0_42 = arith.constant 0 : index
    %c0_43 = arith.constant 0 : index
    %91 = vector.load %arg7[%90, %c0_42, %c0_43] : memref<8x8x128xbf16, #tpu.memory_space<vmem>>, vector<1x8x128xbf16>
    %92 = vector.shape_cast %91 : vector<1x8x128xbf16> to vector<8x128xbf16>
    %93 = vector.shape_cast %89 : vector<8x128xbf16> to vector<1x8x128xbf16>
    tpu.vector_store %arg7[%90, %c0_42, %c0_43], %93 {strides = array<i32>} : memref<8x8x128xbf16, #tpu.memory_space<vmem>>, vector<1x8x128xbf16>,
    %c2_i32 = arith.constant 2 : i32
    %c8_i32_44 = arith.constant 8 : i32
    %94 = arith.muli %c2_i32, %c8_i32_44 : i32
    %95 = tpu.assume_multiple %94, 8 : i32
    %c0_45 = arith.constant 0 : index
    %c0_46 = arith.constant 0 : index
    %96 = vector.load %arg10[%c0_45, %c0_46] : memref<8x128xf32, #tpu.memory_space<vmem>>, vector<8x128xf32>
    %97 = arith.truncf %96 : vector<8x128xf32> to vector<8x128xbf16>
    %c0_47 = arith.constant 0 : index
    %c0_48 = arith.constant 0 : index
    %98 = vector.load %arg3[%c0_47, %c0_48] : memref<128x512xbf16, #tpu.memory_space<vmem>>, vector<128x512xbf16>
    %cst_49 = arith.constant dense<0.000000e+00> : vector<8x512xf32>
    %99 = tpu.matmul %97, %98, %cst_49 {dimension_numbers = #tpu.dot_dimension_numbers<[1], [0], [0], [1], [0, 0, 1, 1], [], []>} : vector<8x128xbf16>, vector<128x512xbf16>, vector<8x512xf32> -> vector<8x512xf32>
    %100 = arith.index_cast %95 : i32 to index
    %c0_50 = arith.constant 0 : index
    %101 = vector.load %arg12[%100, %c0_50] : memref<64x512xf32, #tpu.memory_space<vmem>>, vector<8x512xf32>
    %102 = arith.addf %101, %99 : vector<8x512xf32>
    %103 = vector.extract_strided_slice %102 {offsets = [0, 0], sizes = [8, 128], strides = [1, 1]} : vector<8x512xf32> to vector<8x128xf32>
    %104 = arith.negf %103 : vector<8x128xf32>
    %105 = math.exp %104 : vector<8x128xf32>
    %cst_51 = arith.constant 1.000000e+00 : f32
    %106 = vector.broadcast %cst_51 : f32 to vector<8x128xf32>
    %107 = arith.addf %106, %105 : vector<8x128xf32>
    %108 = arith.divf %106, %107 : vector<8x128xf32>
    %109 = vector.extract_strided_slice %102 {offsets = [0, 128], sizes = [8, 128], strides = [1, 1]} : vector<8x512xf32> to vector<8x128xf32>
    %110 = arith.negf %109 : vector<8x128xf32>
    %111 = math.exp %110 : vector<8x128xf32>
    %cst_52 = arith.constant 1.000000e+00 : f32
    %112 = vector.broadcast %cst_52 : f32 to vector<8x128xf32>
    %113 = arith.addf %112, %111 : vector<8x128xf32>
    %114 = arith.divf %112, %113 : vector<8x128xf32>
    %115 = vector.extract_strided_slice %102 {offsets = [0, 256], sizes = [8, 128], strides = [1, 1]} : vector<8x512xf32> to vector<8x128xf32>
    %116 = math.tanh %115 : vector<8x128xf32>
    %117 = vector.extract_strided_slice %102 {offsets = [0, 384], sizes = [8, 128], strides = [1, 1]} : vector<8x512xf32> to vector<8x128xf32>
    %118 = arith.negf %117 : vector<8x128xf32>
    %119 = math.exp %118 : vector<8x128xf32>
    %cst_53 = arith.constant 1.000000e+00 : f32
    %120 = vector.broadcast %cst_53 : f32 to vector<8x128xf32>
    %121 = arith.addf %120, %119 : vector<8x128xf32>
    %122 = arith.divf %120, %121 : vector<8x128xf32>
    %c0_54 = arith.constant 0 : index
    %c0_55 = arith.constant 0 : index
    %123 = vector.load %arg11[%c0_54, %c0_55] : memref<8x128xf32, #tpu.memory_space<vmem>>, vector<8x128xf32>
    %124 = arith.mulf %114, %123 : vector<8x128xf32>
    %125 = arith.mulf %108, %116 : vector<8x128xf32>
    %126 = arith.addf %124, %125 : vector<8x128xf32>
    %127 = math.tanh %126 : vector<8x128xf32>
    %128 = arith.mulf %122, %127 : vector<8x128xf32>
    %c0_56 = arith.constant 0 : index
    %c0_57 = arith.constant 0 : index
    %129 = vector.load %arg11[%c0_56, %c0_57] : memref<8x128xf32, #tpu.memory_space<vmem>>, vector<8x128xf32>
    tpu.vector_store %arg11[%c0_56, %c0_57], %126 {strides = array<i32>} : memref<8x128xf32, #tpu.memory_space<vmem>>, vector<8x128xf32>,
    %c0_58 = arith.constant 0 : index
    %c0_59 = arith.constant 0 : index
    %130 = vector.load %arg10[%c0_58, %c0_59] : memref<8x128xf32, #tpu.memory_space<vmem>>, vector<8x128xf32>
    tpu.vector_store %arg10[%c0_58, %c0_59], %128 {strides = array<i32>} : memref<8x128xf32, #tpu.memory_space<vmem>>, vector<8x128xf32>,
    %131 = arith.truncf %128 : vector<8x128xf32> to vector<8x128xbf16>
    %132 = arith.index_cast %c2_i32 : i32 to index
    %c0_60 = arith.constant 0 : index
    %c0_61 = arith.constant 0 : index
    %133 = vector.load %arg7[%132, %c0_60, %c0_61] : memref<8x8x128xbf16, #tpu.memory_space<vmem>>, vector<1x8x128xbf16>
    %134 = vector.shape_cast %133 : vector<1x8x128xbf16> to vector<8x128xbf16>
    %135 = vector.shape_cast %131 : vector<8x128xbf16> to vector<1x8x128xbf16>
    tpu.vector_store %arg7[%132, %c0_60, %c0_61], %135 {strides = array<i32>} : memref<8x8x128xbf16, #tpu.memory_space<vmem>>, vector<1x8x128xbf16>,
    %c3_i32 = arith.constant 3 : i32
    %c8_i32_62 = arith.constant 8 : i32
    %136 = arith.muli %c3_i32, %c8_i32_62 : i32
    %137 = tpu.assume_multiple %136, 8 : i32
    %c0_63 = arith.constant 0 : index
    %c0_64 = arith.constant 0 : index
    %138 = vector.load %arg10[%c0_63, %c0_64] : memref<8x128xf32, #tpu.memory_space<vmem>>, vector<8x128xf32>
    %139 = arith.truncf %138 : vector<8x128xf32> to vector<8x128xbf16>
    %c0_65 = arith.constant 0 : index
    %c0_66 = arith.constant 0 : index
    %140 = vector.load %arg3[%c0_65, %c0_66] : memref<128x512xbf16, #tpu.memory_space<vmem>>, vector<128x512xbf16>
    %cst_67 = arith.constant dense<0.000000e+00> : vector<8x512xf32>
    %141 = tpu.matmul %139, %140, %cst_67 {dimension_numbers = #tpu.dot_dimension_numbers<[1], [0], [0], [1], [0, 0, 1, 1], [], []>} : vector<8x128xbf16>, vector<128x512xbf16>, vector<8x512xf32> -> vector<8x512xf32>
    %142 = arith.index_cast %137 : i32 to index
    %c0_68 = arith.constant 0 : index
    %143 = vector.load %arg12[%142, %c0_68] : memref<64x512xf32, #tpu.memory_space<vmem>>, vector<8x512xf32>
    %144 = arith.addf %143, %141 : vector<8x512xf32>
    %145 = vector.extract_strided_slice %144 {offsets = [0, 0], sizes = [8, 128], strides = [1, 1]} : vector<8x512xf32> to vector<8x128xf32>
    %146 = arith.negf %145 : vector<8x128xf32>
    %147 = math.exp %146 : vector<8x128xf32>
    %cst_69 = arith.constant 1.000000e+00 : f32
    %148 = vector.broadcast %cst_69 : f32 to vector<8x128xf32>
    %149 = arith.addf %148, %147 : vector<8x128xf32>
    %150 = arith.divf %148, %149 : vector<8x128xf32>
    %151 = vector.extract_strided_slice %144 {offsets = [0, 128], sizes = [8, 128], strides = [1, 1]} : vector<8x512xf32> to vector<8x128xf32>
    %152 = arith.negf %151 : vector<8x128xf32>
    %153 = math.exp %152 : vector<8x128xf32>
    %cst_70 = arith.constant 1.000000e+00 : f32
    %154 = vector.broadcast %cst_70 : f32 to vector<8x128xf32>
    %155 = arith.addf %154, %153 : vector<8x128xf32>
    %156 = arith.divf %154, %155 : vector<8x128xf32>
    %157 = vector.extract_strided_slice %144 {offsets = [0, 256], sizes = [8, 128], strides = [1, 1]} : vector<8x512xf32> to vector<8x128xf32>
    %158 = math.tanh %157 : vector<8x128xf32>
    %159 = vector.extract_strided_slice %144 {offsets = [0, 384], sizes = [8, 128], strides = [1, 1]} : vector<8x512xf32> to vector<8x128xf32>
    %160 = arith.negf %159 : vector<8x128xf32>
    %161 = math.exp %160 : vector<8x128xf32>
    %cst_71 = arith.constant 1.000000e+00 : f32
    %162 = vector.broadcast %cst_71 : f32 to vector<8x128xf32>
    %163 = arith.addf %162, %161 : vector<8x128xf32>
    %164 = arith.divf %162, %163 : vector<8x128xf32>
    %c0_72 = arith.constant 0 : index
    %c0_73 = arith.constant 0 : index
    %165 = vector.load %arg11[%c0_72, %c0_73] : memref<8x128xf32, #tpu.memory_space<vmem>>, vector<8x128xf32>
    %166 = arith.mulf %156, %165 : vector<8x128xf32>
    %167 = arith.mulf %150, %158 : vector<8x128xf32>
    %168 = arith.addf %166, %167 : vector<8x128xf32>
    %169 = math.tanh %168 : vector<8x128xf32>
    %170 = arith.mulf %164, %169 : vector<8x128xf32>
    %c0_74 = arith.constant 0 : index
    %c0_75 = arith.constant 0 : index
    %171 = vector.load %arg11[%c0_74, %c0_75] : memref<8x128xf32, #tpu.memory_space<vmem>>, vector<8x128xf32>
    tpu.vector_store %arg11[%c0_74, %c0_75], %168 {strides = array<i32>} : memref<8x128xf32, #tpu.memory_space<vmem>>, vector<8x128xf32>,
    %c0_76 = arith.constant 0 : index
    %c0_77 = arith.constant 0 : index
    %172 = vector.load %arg10[%c0_76, %c0_77] : memref<8x128xf32, #tpu.memory_space<vmem>>, vector<8x128xf32>
    tpu.vector_store %arg10[%c0_76, %c0_77], %170 {strides = array<i32>} : memref<8x128xf32, #tpu.memory_space<vmem>>, vector<8x128xf32>,
    %173 = arith.truncf %170 : vector<8x128xf32> to vector<8x128xbf16>
    %174 = arith.index_cast %c3_i32 : i32 to index
    %c0_78 = arith.constant 0 : index
    %c0_79 = arith.constant 0 : index
    %175 = vector.load %arg7[%174, %c0_78, %c0_79] : memref<8x8x128xbf16, #tpu.memory_space<vmem>>, vector<1x8x128xbf16>
    %176 = vector.shape_cast %175 : vector<1x8x128xbf16> to vector<8x128xbf16>
    %177 = vector.shape_cast %173 : vector<8x128xbf16> to vector<1x8x128xbf16>
    tpu.vector_store %arg7[%174, %c0_78, %c0_79], %177 {strides = array<i32>} : memref<8x8x128xbf16, #tpu.memory_space<vmem>>, vector<1x8x128xbf16>,
    %c4_i32 = arith.constant 4 : i32
    %c8_i32_80 = arith.constant 8 : i32
    %178 = arith.muli %c4_i32, %c8_i32_80 : i32
    %179 = tpu.assume_multiple %178, 8 : i32
    %c0_81 = arith.constant 0 : index
    %c0_82 = arith.constant 0 : index
    %180 = vector.load %arg10[%c0_81, %c0_82] : memref<8x128xf32, #tpu.memory_space<vmem>>, vector<8x128xf32>
    %181 = arith.truncf %180 : vector<8x128xf32> to vector<8x128xbf16>
    %c0_83 = arith.constant 0 : index
    %c0_84 = arith.constant 0 : index
    %182 = vector.load %arg3[%c0_83, %c0_84] : memref<128x512xbf16, #tpu.memory_space<vmem>>, vector<128x512xbf16>
    %cst_85 = arith.constant dense<0.000000e+00> : vector<8x512xf32>
    %183 = tpu.matmul %181, %182, %cst_85 {dimension_numbers = #tpu.dot_dimension_numbers<[1], [0], [0], [1], [0, 0, 1, 1], [], []>} : vector<8x128xbf16>, vector<128x512xbf16>, vector<8x512xf32> -> vector<8x512xf32>
    %184 = arith.index_cast %179 : i32 to index
    %c0_86 = arith.constant 0 : index
    %185 = vector.load %arg12[%184, %c0_86] : memref<64x512xf32, #tpu.memory_space<vmem>>, vector<8x512xf32>
    %186 = arith.addf %185, %183 : vector<8x512xf32>
    %187 = vector.extract_strided_slice %186 {offsets = [0, 0], sizes = [8, 128], strides = [1, 1]} : vector<8x512xf32> to vector<8x128xf32>
    %188 = arith.negf %187 : vector<8x128xf32>
    %189 = math.exp %188 : vector<8x128xf32>
    %cst_87 = arith.constant 1.000000e+00 : f32
    %190 = vector.broadcast %cst_87 : f32 to vector<8x128xf32>
    %191 = arith.addf %190, %189 : vector<8x128xf32>
    %192 = arith.divf %190, %191 : vector<8x128xf32>
    %193 = vector.extract_strided_slice %186 {offsets = [0, 128], sizes = [8, 128], strides = [1, 1]} : vector<8x512xf32> to vector<8x128xf32>
    %194 = arith.negf %193 : vector<8x128xf32>
    %195 = math.exp %194 : vector<8x128xf32>
    %cst_88 = arith.constant 1.000000e+00 : f32
    %196 = vector.broadcast %cst_88 : f32 to vector<8x128xf32>
    %197 = arith.addf %196, %195 : vector<8x128xf32>
    %198 = arith.divf %196, %197 : vector<8x128xf32>
    %199 = vector.extract_strided_slice %186 {offsets = [0, 256], sizes = [8, 128], strides = [1, 1]} : vector<8x512xf32> to vector<8x128xf32>
    %200 = math.tanh %199 : vector<8x128xf32>
    %201 = vector.extract_strided_slice %186 {offsets = [0, 384], sizes = [8, 128], strides = [1, 1]} : vector<8x512xf32> to vector<8x128xf32>
    %202 = arith.negf %201 : vector<8x128xf32>
    %203 = math.exp %202 : vector<8x128xf32>
    %cst_89 = arith.constant 1.000000e+00 : f32
    %204 = vector.broadcast %cst_89 : f32 to vector<8x128xf32>
    %205 = arith.addf %204, %203 : vector<8x128xf32>
    %206 = arith.divf %204, %205 : vector<8x128xf32>
    %c0_90 = arith.constant 0 : index
    %c0_91 = arith.constant 0 : index
    %207 = vector.load %arg11[%c0_90, %c0_91] : memref<8x128xf32, #tpu.memory_space<vmem>>, vector<8x128xf32>
    %208 = arith.mulf %198, %207 : vector<8x128xf32>
    %209 = arith.mulf %192, %200 : vector<8x128xf32>
    %210 = arith.addf %208, %209 : vector<8x128xf32>
    %211 = math.tanh %210 : vector<8x128xf32>
    %212 = arith.mulf %206, %211 : vector<8x128xf32>
    %c0_92 = arith.constant 0 : index
    %c0_93 = arith.constant 0 : index
    %213 = vector.load %arg11[%c0_92, %c0_93] : memref<8x128xf32, #tpu.memory_space<vmem>>, vector<8x128xf32>
    tpu.vector_store %arg11[%c0_92, %c0_93], %210 {strides = array<i32>} : memref<8x128xf32, #tpu.memory_space<vmem>>, vector<8x128xf32>,
    %c0_94 = arith.constant 0 : index
    %c0_95 = arith.constant 0 : index
    %214 = vector.load %arg10[%c0_94, %c0_95] : memref<8x128xf32, #tpu.memory_space<vmem>>, vector<8x128xf32>
    tpu.vector_store %arg10[%c0_94, %c0_95], %212 {strides = array<i32>} : memref<8x128xf32, #tpu.memory_space<vmem>>, vector<8x128xf32>,
    %215 = arith.truncf %212 : vector<8x128xf32> to vector<8x128xbf16>
    %216 = arith.index_cast %c4_i32 : i32 to index
    %c0_96 = arith.constant 0 : index
    %c0_97 = arith.constant 0 : index
    %217 = vector.load %arg7[%216, %c0_96, %c0_97] : memref<8x8x128xbf16, #tpu.memory_space<vmem>>, vector<1x8x128xbf16>
    %218 = vector.shape_cast %217 : vector<1x8x128xbf16> to vector<8x128xbf16>
    %219 = vector.shape_cast %215 : vector<8x128xbf16> to vector<1x8x128xbf16>
    tpu.vector_store %arg7[%216, %c0_96, %c0_97], %219 {strides = array<i32>} : memref<8x8x128xbf16, #tpu.memory_space<vmem>>, vector<1x8x128xbf16>,
    %c5_i32 = arith.constant 5 : i32
    %c8_i32_98 = arith.constant 8 : i32
    %220 = arith.muli %c5_i32, %c8_i32_98 : i32
    %221 = tpu.assume_multiple %220, 8 : i32
    %c0_99 = arith.constant 0 : index
    %c0_100 = arith.constant 0 : index
    %222 = vector.load %arg10[%c0_99, %c0_100] : memref<8x128xf32, #tpu.memory_space<vmem>>, vector<8x128xf32>
    %223 = arith.truncf %222 : vector<8x128xf32> to vector<8x128xbf16>
    %c0_101 = arith.constant 0 : index
    %c0_102 = arith.constant 0 : index
    %224 = vector.load %arg3[%c0_101, %c0_102] : memref<128x512xbf16, #tpu.memory_space<vmem>>, vector<128x512xbf16>
    %cst_103 = arith.constant dense<0.000000e+00> : vector<8x512xf32>
    %225 = tpu.matmul %223, %224, %cst_103 {dimension_numbers = #tpu.dot_dimension_numbers<[1], [0], [0], [1], [0, 0, 1, 1], [], []>} : vector<8x128xbf16>, vector<128x512xbf16>, vector<8x512xf32> -> vector<8x512xf32>
    %226 = arith.index_cast %221 : i32 to index
    %c0_104 = arith.constant 0 : index
    %227 = vector.load %arg12[%226, %c0_104] : memref<64x512xf32, #tpu.memory_space<vmem>>, vector<8x512xf32>
    %228 = arith.addf %227, %225 : vector<8x512xf32>
    %229 = vector.extract_strided_slice %228 {offsets = [0, 0], sizes = [8, 128], strides = [1, 1]} : vector<8x512xf32> to vector<8x128xf32>
    %230 = arith.negf %229 : vector<8x128xf32>
    %231 = math.exp %230 : vector<8x128xf32>
    %cst_105 = arith.constant 1.000000e+00 : f32
    %232 = vector.broadcast %cst_105 : f32 to vector<8x128xf32>
    %233 = arith.addf %232, %231 : vector<8x128xf32>
    %234 = arith.divf %232, %233 : vector<8x128xf32>
    %235 = vector.extract_strided_slice %228 {offsets = [0, 128], sizes = [8, 128], strides = [1, 1]} : vector<8x512xf32> to vector<8x128xf32>
    %236 = arith.negf %235 : vector<8x128xf32>
    %237 = math.exp %236 : vector<8x128xf32>
    %cst_106 = arith.constant 1.000000e+00 : f32
    %238 = vector.broadcast %cst_106 : f32 to vector<8x128xf32>
    %239 = arith.addf %238, %237 : vector<8x128xf32>
    %240 = arith.divf %238, %239 : vector<8x128xf32>
    %241 = vector.extract_strided_slice %228 {offsets = [0, 256], sizes = [8, 128], strides = [1, 1]} : vector<8x512xf32> to vector<8x128xf32>
    %242 = math.tanh %241 : vector<8x128xf32>
    %243 = vector.extract_strided_slice %228 {offsets = [0, 384], sizes = [8, 128], strides = [1, 1]} : vector<8x512xf32> to vector<8x128xf32>
    %244 = arith.negf %243 : vector<8x128xf32>
    %245 = math.exp %244 : vector<8x128xf32>
    %cst_107 = arith.constant 1.000000e+00 : f32
    %246 = vector.broadcast %cst_107 : f32 to vector<8x128xf32>
    %247 = arith.addf %246, %245 : vector<8x128xf32>
    %248 = arith.divf %246, %247 : vector<8x128xf32>
    %c0_108 = arith.constant 0 : index
    %c0_109 = arith.constant 0 : index
    %249 = vector.load %arg11[%c0_108, %c0_109] : memref<8x128xf32, #tpu.memory_space<vmem>>, vector<8x128xf32>
    %250 = arith.mulf %240, %249 : vector<8x128xf32>
    %251 = arith.mulf %234, %242 : vector<8x128xf32>
    %252 = arith.addf %250, %251 : vector<8x128xf32>
    %253 = math.tanh %252 : vector<8x128xf32>
    %254 = arith.mulf %248, %253 : vector<8x128xf32>
    %c0_110 = arith.constant 0 : index
    %c0_111 = arith.constant 0 : index
    %255 = vector.load %arg11[%c0_110, %c0_111] : memref<8x128xf32, #tpu.memory_space<vmem>>, vector<8x128xf32>
    tpu.vector_store %arg11[%c0_110, %c0_111], %252 {strides = array<i32>} : memref<8x128xf32, #tpu.memory_space<vmem>>, vector<8x128xf32>,
    %c0_112 = arith.constant 0 : index
    %c0_113 = arith.constant 0 : index
    %256 = vector.load %arg10[%c0_112, %c0_113] : memref<8x128xf32, #tpu.memory_space<vmem>>, vector<8x128xf32>
    tpu.vector_store %arg10[%c0_112, %c0_113], %254 {strides = array<i32>} : memref<8x128xf32, #tpu.memory_space<vmem>>, vector<8x128xf32>,
    %257 = arith.truncf %254 : vector<8x128xf32> to vector<8x128xbf16>
    %258 = arith.index_cast %c5_i32 : i32 to index
    %c0_114 = arith.constant 0 : index
    %c0_115 = arith.constant 0 : index
    %259 = vector.load %arg7[%258, %c0_114, %c0_115] : memref<8x8x128xbf16, #tpu.memory_space<vmem>>, vector<1x8x128xbf16>
    %260 = vector.shape_cast %259 : vector<1x8x128xbf16> to vector<8x128xbf16>
    %261 = vector.shape_cast %257 : vector<8x128xbf16> to vector<1x8x128xbf16>
    tpu.vector_store %arg7[%258, %c0_114, %c0_115], %261 {strides = array<i32>} : memref<8x8x128xbf16, #tpu.memory_space<vmem>>, vector<1x8x128xbf16>,
    %c6_i32 = arith.constant 6 : i32
    %c8_i32_116 = arith.constant 8 : i32
    %262 = arith.muli %c6_i32, %c8_i32_116 : i32
    %263 = tpu.assume_multiple %262, 8 : i32
    %c0_117 = arith.constant 0 : index
    %c0_118 = arith.constant 0 : index
    %264 = vector.load %arg10[%c0_117, %c0_118] : memref<8x128xf32, #tpu.memory_space<vmem>>, vector<8x128xf32>
    %265 = arith.truncf %264 : vector<8x128xf32> to vector<8x128xbf16>
    %c0_119 = arith.constant 0 : index
    %c0_120 = arith.constant 0 : index
    %266 = vector.load %arg3[%c0_119, %c0_120] : memref<128x512xbf16, #tpu.memory_space<vmem>>, vector<128x512xbf16>
    %cst_121 = arith.constant dense<0.000000e+00> : vector<8x512xf32>
    %267 = tpu.matmul %265, %266, %cst_121 {dimension_numbers = #tpu.dot_dimension_numbers<[1], [0], [0], [1], [0, 0, 1, 1], [], []>} : vector<8x128xbf16>, vector<128x512xbf16>, vector<8x512xf32> -> vector<8x512xf32>
    %268 = arith.index_cast %263 : i32 to index
    %c0_122 = arith.constant 0 : index
    %269 = vector.load %arg12[%268, %c0_122] : memref<64x512xf32, #tpu.memory_space<vmem>>, vector<8x512xf32>
    %270 = arith.addf %269, %267 : vector<8x512xf32>
    %271 = vector.extract_strided_slice %270 {offsets = [0, 0], sizes = [8, 128], strides = [1, 1]} : vector<8x512xf32> to vector<8x128xf32>
    %272 = arith.negf %271 : vector<8x128xf32>
    %273 = math.exp %272 : vector<8x128xf32>
    %cst_123 = arith.constant 1.000000e+00 : f32
    %274 = vector.broadcast %cst_123 : f32 to vector<8x128xf32>
    %275 = arith.addf %274, %273 : vector<8x128xf32>
    %276 = arith.divf %274, %275 : vector<8x128xf32>
    %277 = vector.extract_strided_slice %270 {offsets = [0, 128], sizes = [8, 128], strides = [1, 1]} : vector<8x512xf32> to vector<8x128xf32>
    %278 = arith.negf %277 : vector<8x128xf32>
    %279 = math.exp %278 : vector<8x128xf32>
    %cst_124 = arith.constant 1.000000e+00 : f32
    %280 = vector.broadcast %cst_124 : f32 to vector<8x128xf32>
    %281 = arith.addf %280, %279 : vector<8x128xf32>
    %282 = arith.divf %280, %281 : vector<8x128xf32>
    %283 = vector.extract_strided_slice %270 {offsets = [0, 256], sizes = [8, 128], strides = [1, 1]} : vector<8x512xf32> to vector<8x128xf32>
    %284 = math.tanh %283 : vector<8x128xf32>
    %285 = vector.extract_strided_slice %270 {offsets = [0, 384], sizes = [8, 128], strides = [1, 1]} : vector<8x512xf32> to vector<8x128xf32>
    %286 = arith.negf %285 : vector<8x128xf32>
    %287 = math.exp %286 : vector<8x128xf32>
    %cst_125 = arith.constant 1.000000e+00 : f32
    %288 = vector.broadcast %cst_125 : f32 to vector<8x128xf32>
    %289 = arith.addf %288, %287 : vector<8x128xf32>
    %290 = arith.divf %288, %289 : vector<8x128xf32>
    %c0_126 = arith.constant 0 : index
    %c0_127 = arith.constant 0 : index
    %291 = vector.load %arg11[%c0_126, %c0_127] : memref<8x128xf32, #tpu.memory_space<vmem>>, vector<8x128xf32>
    %292 = arith.mulf %282, %291 : vector<8x128xf32>
    %293 = arith.mulf %276, %284 : vector<8x128xf32>
    %294 = arith.addf %292, %293 : vector<8x128xf32>
    %295 = math.tanh %294 : vector<8x128xf32>
    %296 = arith.mulf %290, %295 : vector<8x128xf32>
    %c0_128 = arith.constant 0 : index
    %c0_129 = arith.constant 0 : index
    %297 = vector.load %arg11[%c0_128, %c0_129] : memref<8x128xf32, #tpu.memory_space<vmem>>, vector<8x128xf32>
    tpu.vector_store %arg11[%c0_128, %c0_129], %294 {strides = array<i32>} : memref<8x128xf32, #tpu.memory_space<vmem>>, vector<8x128xf32>,
    %c0_130 = arith.constant 0 : index
    %c0_131 = arith.constant 0 : index
    %298 = vector.load %arg10[%c0_130, %c0_131] : memref<8x128xf32, #tpu.memory_space<vmem>>, vector<8x128xf32>
    tpu.vector_store %arg10[%c0_130, %c0_131], %296 {strides = array<i32>} : memref<8x128xf32, #tpu.memory_space<vmem>>, vector<8x128xf32>,
    %299 = arith.truncf %296 : vector<8x128xf32> to vector<8x128xbf16>
    %300 = arith.index_cast %c6_i32 : i32 to index
    %c0_132 = arith.constant 0 : index
    %c0_133 = arith.constant 0 : index
    %301 = vector.load %arg7[%300, %c0_132, %c0_133] : memref<8x8x128xbf16, #tpu.memory_space<vmem>>, vector<1x8x128xbf16>
    %302 = vector.shape_cast %301 : vector<1x8x128xbf16> to vector<8x128xbf16>
    %303 = vector.shape_cast %299 : vector<8x128xbf16> to vector<1x8x128xbf16>
    tpu.vector_store %arg7[%300, %c0_132, %c0_133], %303 {strides = array<i32>} : memref<8x8x128xbf16, #tpu.memory_space<vmem>>, vector<1x8x128xbf16>,
    %c7_i32 = arith.constant 7 : i32
    %c8_i32_134 = arith.constant 8 : i32
    %304 = arith.muli %c7_i32, %c8_i32_134 : i32
    %305 = tpu.assume_multiple %304, 8 : i32
    %c0_135 = arith.constant 0 : index
    %c0_136 = arith.constant 0 : index
    %306 = vector.load %arg10[%c0_135, %c0_136] : memref<8x128xf32, #tpu.memory_space<vmem>>, vector<8x128xf32>
    %307 = arith.truncf %306 : vector<8x128xf32> to vector<8x128xbf16>
    %c0_137 = arith.constant 0 : index
    %c0_138 = arith.constant 0 : index
    %308 = vector.load %arg3[%c0_137, %c0_138] : memref<128x512xbf16, #tpu.memory_space<vmem>>, vector<128x512xbf16>
    %cst_139 = arith.constant dense<0.000000e+00> : vector<8x512xf32>
    %309 = tpu.matmul %307, %308, %cst_139 {dimension_numbers = #tpu.dot_dimension_numbers<[1], [0], [0], [1], [0, 0, 1, 1], [], []>} : vector<8x128xbf16>, vector<128x512xbf16>, vector<8x512xf32> -> vector<8x512xf32>
    %310 = arith.index_cast %305 : i32 to index
    %c0_140 = arith.constant 0 : index
    %311 = vector.load %arg12[%310, %c0_140] : memref<64x512xf32, #tpu.memory_space<vmem>>, vector<8x512xf32>
    %312 = arith.addf %311, %309 : vector<8x512xf32>
    %313 = vector.extract_strided_slice %312 {offsets = [0, 0], sizes = [8, 128], strides = [1, 1]} : vector<8x512xf32> to vector<8x128xf32>
    %314 = arith.negf %313 : vector<8x128xf32>
    %315 = math.exp %314 : vector<8x128xf32>
    %cst_141 = arith.constant 1.000000e+00 : f32
    %316 = vector.broadcast %cst_141 : f32 to vector<8x128xf32>
    %317 = arith.addf %316, %315 : vector<8x128xf32>
    %318 = arith.divf %316, %317 : vector<8x128xf32>
    %319 = vector.extract_strided_slice %312 {offsets = [0, 128], sizes = [8, 128], strides = [1, 1]} : vector<8x512xf32> to vector<8x128xf32>
    %320 = arith.negf %319 : vector<8x128xf32>
    %321 = math.exp %320 : vector<8x128xf32>
    %cst_142 = arith.constant 1.000000e+00 : f32
    %322 = vector.broadcast %cst_142 : f32 to vector<8x128xf32>
    %323 = arith.addf %322, %321 : vector<8x128xf32>
    %324 = arith.divf %322, %323 : vector<8x128xf32>
    %325 = vector.extract_strided_slice %312 {offsets = [0, 256], sizes = [8, 128], strides = [1, 1]} : vector<8x512xf32> to vector<8x128xf32>
    %326 = math.tanh %325 : vector<8x128xf32>
    %327 = vector.extract_strided_slice %312 {offsets = [0, 384], sizes = [8, 128], strides = [1, 1]} : vector<8x512xf32> to vector<8x128xf32>
    %328 = arith.negf %327 : vector<8x128xf32>
    %329 = math.exp %328 : vector<8x128xf32>
    %cst_143 = arith.constant 1.000000e+00 : f32
    %330 = vector.broadcast %cst_143 : f32 to vector<8x128xf32>
    %331 = arith.addf %330, %329 : vector<8x128xf32>
    %332 = arith.divf %330, %331 : vector<8x128xf32>
    %c0_144 = arith.constant 0 : index
    %c0_145 = arith.constant 0 : index
    %333 = vector.load %arg11[%c0_144, %c0_145] : memref<8x128xf32, #tpu.memory_space<vmem>>, vector<8x128xf32>
    %334 = arith.mulf %324, %333 : vector<8x128xf32>
    %335 = arith.mulf %318, %326 : vector<8x128xf32>
    %336 = arith.addf %334, %335 : vector<8x128xf32>
    %337 = math.tanh %336 : vector<8x128xf32>
    %338 = arith.mulf %332, %337 : vector<8x128xf32>
    %c0_146 = arith.constant 0 : index
    %c0_147 = arith.constant 0 : index
    %339 = vector.load %arg11[%c0_146, %c0_147] : memref<8x128xf32, #tpu.memory_space<vmem>>, vector<8x128xf32>
    tpu.vector_store %arg11[%c0_146, %c0_147], %336 {strides = array<i32>} : memref<8x128xf32, #tpu.memory_space<vmem>>, vector<8x128xf32>,
    %c0_148 = arith.constant 0 : index
    %c0_149 = arith.constant 0 : index
    %340 = vector.load %arg10[%c0_148, %c0_149] : memref<8x128xf32, #tpu.memory_space<vmem>>, vector<8x128xf32>
    tpu.vector_store %arg10[%c0_148, %c0_149], %338 {strides = array<i32>} : memref<8x128xf32, #tpu.memory_space<vmem>>, vector<8x128xf32>,
    %341 = arith.truncf %338 : vector<8x128xf32> to vector<8x128xbf16>
    %342 = arith.index_cast %c7_i32 : i32 to index
    %c0_150 = arith.constant 0 : index
    %c0_151 = arith.constant 0 : index
    %343 = vector.load %arg7[%342, %c0_150, %c0_151] : memref<8x8x128xbf16, #tpu.memory_space<vmem>>, vector<1x8x128xbf16>
    %344 = vector.shape_cast %343 : vector<1x8x128xbf16> to vector<8x128xbf16>
    %345 = vector.shape_cast %341 : vector<8x128xbf16> to vector<1x8x128xbf16>
    tpu.vector_store %arg7[%342, %c0_150, %c0_151], %345 {strides = array<i32>} : memref<8x8x128xbf16, #tpu.memory_space<vmem>>, vector<1x8x128xbf16>,
    %c8_i32_152 = arith.constant 8 : i32
    %c0_i32_153 = arith.constant 0 : i32
    %346 = arith.cmpi eq, %arg0, %c0_i32_153 : i32
    %347 = arith.extui %346 : i1 to i32
    %c0_i32_154 = arith.constant 0 : i32
    %348 = arith.cmpi ne, %347, %c0_i32_154 : i32
    scf.if %348 {
      %c0_155 = arith.constant 0 : index
      %c0_156 = arith.constant 0 : index
      %349 = vector.load %arg10[%c0_155, %c0_156] : memref<8x128xf32, #tpu.memory_space<vmem>>, vector<8x128xf32>
      %c0_157 = arith.constant 0 : index
      %c0_158 = arith.constant 0 : index
      %350 = vector.load %arg8[%c0_157, %c0_158] : memref<8x128xf32, #tpu.memory_space<vmem>>, vector<8x128xf32>
      tpu.vector_store %arg8[%c0_157, %c0_158], %349 {strides = array<i32>} : memref<8x128xf32, #tpu.memory_space<vmem>>, vector<8x128xf32>,
      %c0_159 = arith.constant 0 : index
      %c0_160 = arith.constant 0 : index
      %351 = vector.load %arg11[%c0_159, %c0_160] : memref<8x128xf32, #tpu.memory_space<vmem>>, vector<8x128xf32>
      %c0_161 = arith.constant 0 : index
      %c0_162 = arith.constant 0 : index
      %352 = vector.load %arg9[%c0_161, %c0_162] : memref<8x128xf32, #tpu.memory_space<vmem>>, vector<8x128xf32>
      tpu.vector_store %arg9[%c0_161, %c0_162], %351 {strides = array<i32>} : memref<8x128xf32, #tpu.memory_space<vmem>>, vector<8x128xf32>,
    } else {
    }
    return
  }
  func.func @transform_0(%arg0: i32) -> (i32, i32) {
    %c0_i32 = arith.constant 0 : i32
    %c0_i32_0 = arith.constant 0 : i32
    return %arg0, %c0_i32 : i32, i32
  }
  func.func @transform_1(%arg0: i32) -> (i32, i32) {
    %c0_i32 = arith.constant 0 : i32
    %c0_i32_0 = arith.constant 0 : i32
    %c0_i32_1 = arith.constant 0 : i32
    return %c0_i32, %c0_i32_0 : i32, i32
  }
  func.func @transform_2(%arg0: i32) -> (i32, i32) {
    %c0_i32 = arith.constant 0 : i32
    %c0_i32_0 = arith.constant 0 : i32
    %c0_i32_1 = arith.constant 0 : i32
    return %c0_i32, %c0_i32_0 : i32, i32
  }
  func.func @transform_3(%arg0: i32) -> (i32, i32) {
    %c0_i32 = arith.constant 0 : i32
    %c0_i32_0 = arith.constant 0 : i32
    %c0_i32_1 = arith.constant 0 : i32
    return %c0_i32, %c0_i32_0 : i32, i32
  }
  func.func @transform_4(%arg0: i32) -> (i32, i32) {
    %c0_i32 = arith.constant 0 : i32
    %c0_i32_0 = arith.constant 0 : i32
    %c0_i32_1 = arith.constant 0 : i32
    return %c0_i32, %c0_i32_0 : i32, i32
  }
  func.func @transform_5(%arg0: i32) -> (i32, i32) {
    %c0_i32 = arith.constant 0 : i32
    %c0_i32_0 = arith.constant 0 : i32
    %c0_i32_1 = arith.constant 0 : i32
    return %c0_i32, %c0_i32_0 : i32, i32
  }
  func.func @transform_6(%arg0: i32) -> (i32, i32, i32) {
    %c0_i32 = arith.constant 0 : i32
    %c0_i32_0 = arith.constant 0 : i32
    %c0_i32_1 = arith.constant 0 : i32
    return %arg0, %c0_i32, %c0_i32_0 : i32, i32, i32
  }
  func.func @transform_7(%arg0: i32) -> (i32, i32) {
    %c0_i32 = arith.constant 0 : i32
    %c0_i32_0 = arith.constant 0 : i32
    %c0_i32_1 = arith.constant 0 : i32
    return %c0_i32, %c0_i32_0 : i32, i32
  }
  func.func @transform_8(%arg0: i32) -> (i32, i32) {
    %c0_i32 = arith.constant 0 : i32
    %c0_i32_0 = arith.constant 0 : i32
    %c0_i32_1 = arith.constant 0 : i32
    return %c0_i32, %c0_i32_0 : i32, i32
  }
}

</mosaic_0001>

<bundles_post_ra>
// kernel: _lambda_.3
= control target key start
LH: loop header
LB: loop body
LE: loop exit
PB: predicated region body
PF: predicated region fallthrough
CT: control target
= control target key end

     0   :  { %14 = vsyncpa [#allocation6], 0  ;;  %s5028_s0 = inlined_call_operand.vmem [shape: bf16[64,128], index: 0, kind: input, shape index: {}]   ;;  %s5029_s1 = inlined_call_operand.hbm [shape: bf16[128,512], index: 1, kind: input, shape index: {}]   ;;  %s5030_s2 = inlined_call_operand.hbm [shape: bf16[128,512], index: 2, kind: input, shape index: {}]   ;;  %s5031_s3 = inlined_call_operand.vmem [shape: f32[1,512], index: 3, kind: input, shape index: {}]   ;;  %s5032_s4 = inlined_call_operand.vmem [shape: f32[8,128], index: 4, kind: input, shape index: {}]   ;;  %s5033_s5 = inlined_call_operand.vmem [shape: f32[8,128], index: 5, kind: input, shape index: {}]   ;;  %s5034_s6 = inlined_call_operand.vmem [shape: bf16[8,8,128], index: 6, kind: output, shape index: {0}]   ;;  %s5035_s7 = inlined_call_operand.vmem [shape: f32[8,128], index: 7, kind: output, shape index: {1}]   ;;  %s5036_s8 = inlined_call_operand.vmem [shape: f32[8,128], index: 8, kind: output, shape index: {2}]  }
   0x1   :  { %s22_s29 = sshll.u32 %s5029_s1, 4  ;;  %s23_s29 = int_to_ptr.hbm [resolvable:$true] %s22_s29 }
   0x2   :  { %15 = vsyncpa [#allocation8], 0  ;;  %s4758_s30 = smov [#allocation5]   ;;  %s35_s12 = sshll.u32 %s5030_s2, 4  ;;  %s36_s12 = int_to_ptr.hbm [resolvable:$true] %s35_s12 }
   0x3   :  { %s24_s9 = sshll.u32 %s4758_s30, 4  ;;  %s4759_s13 = smov 256   ;;  %s25_s9 = int_to_ptr.vmem [resolvable:$true] %s24_s9 }
   0x4   :  { %s4760_s14 = smov 16   ;;  %s4761_s15 = smov [#allocation7]  }
   0x5   :  { %30 = dma.hbm_to_vmem [thread:$0]  %s23_s29, 4096, %s25_s9, [#allocation6], %s4759_s13, %s4759_s13, %s4760_s14  }
   0x6   :  { %s37_s16 = sshll.u32 %s4761_s15, 4  ;;  %s38_s16 = int_to_ptr.vmem [resolvable:$true] %s37_s16 }
   0x7   :  { %43 = dma.hbm_to_vmem [thread:$0]  %s36_s12, 4096, %s38_s16, [#allocation8], %s4759_s13, %s4759_s13, %s4760_s14  }
   0x8   :  { %4754 = dma.done.wait [#allocation6], 4096  }
   0x9   :  { %4755 = vsyncadd [#allocation6], 4294963200 }
   0xa   :  { %4756 = dma.done.wait [#allocation8], 4096  }
   0xb   :  { %4757 = vsyncadd [#allocation8], 4294963200  ;;  %v3213_v0 = vld [vmem:[#allocation5 + $0xe0] sm:$0xf]  ;;  %v4316_v1 = vld [vmem:[#allocation5 + $0xec] sm:$0xf0] }
   0xc   :  { %v4314_v2 = vld [vmem:[#allocation5 + $0xe4] sm:$0xf]  ;;  %v3214_v3 = vor.u32 %v4316_v1, %v3213_v0  ;;  %v3215_v4 = vld [vmem:[#allocation5 + $0xf0] sm:$0xf0]  ;;  %v3221_v5 = vld [vmem:[#allocation5 + $0xe8] sm:$0xf] }
   0xd   :  { %v4317_v6 = vld [vmem:[#allocation5 + $0xf4] sm:$0xf0]  ;;  %v3218_v7 = vor.u32 %v4314_v2, %v3215_v4  ;;  %v4315_v9 = vld [vmem:[#allocation5 + $0xec] sm:$0xf]  ;;  %v3223_v10 = vld [vmem:[#allocation5 + $0xf8] sm:$0xf0] }
   0xe   :  { %v3222_v8 = vor.u32 %v4317_v6, %v3221_v5  ;;  %v3197_v11 = vld [vmem:[#allocation5 + $0xc0] sm:$0xf]  ;;  %300 = vmatpush.bf16.msra.mxu0 %v3214_v3  ;;  %v3226_v12 = vor.u32 %v4315_v9, %v3223_v10  ;;  %v4312_v13 = vld [vmem:[#allocation5 + $0xcc] sm:$0xf0]  ;;  %v4310_v14 = vld [vmem:[#allocation5 + $0xc4] sm:$0xf] }
   0xf   :  { %v3199_v15 = vld [vmem:[#allocation5 + $0xd0] sm:$0xf0]  ;;  %329 = vmatpush.bf16.msra.mxu1 %v3218_v7  ;;  %v3198_v16 = vor.u32 %v4312_v13, %v3197_v11  ;;  %v3205_v18 = vld [vmem:[#allocation5 + $0xc8] sm:$0xf]  ;;  %v4313_v19 = vld [vmem:[#allocation5 + $0xd4] sm:$0xf0] }
  0x10   :  { %358 = vmatpush.bf16.msra.mxu2 %v3222_v8  ;;  %v3202_v17 = vor.u32 %v4310_v14, %v3199_v15  ;;  %v4311_v20 = vld [vmem:[#allocation5 + $0xcc] sm:$0xf]  ;;  %387 = vmatpush.bf16.msra.mxu3 %v3226_v12  ;;  %v3206_v21 = vor.u32 %v4313_v19, %v3205_v18  ;;  %v3207_v22 = vld [vmem:[#allocation5 + $0xd8] sm:$0xf0]  ;;  %v3181_v23 = vld [vmem:[#allocation5 + $0xa0] sm:$0xf] }
  0x11   :  { %v4308_v24 = vld [vmem:[#allocation5 + $0xac] sm:$0xf0]  ;;  %v3210_v25 = vor.u32 %v4311_v20, %v3207_v22  ;;  %v4306_v26 = vld [vmem:[#allocation5 + $0xa4] sm:$0xf]  ;;  %v3183_v27 = vld [vmem:[#allocation5 + $0xb0] sm:$0xf0] }
  0x12   :  { %v3189_v28 = vld [vmem:[#allocation5 + $0xa8] sm:$0xf]  ;;  %301 = vmatpush.bf16.msra.mxu0 %v3198_v16  ;;  %v3182_v29 = vor.u32 %v4308_v24, %v3181_v23  ;;  %v4309_v30 = vld [vmem:[#allocation5 + $0xb4] sm:$0xf0]  ;;  %v4307_v31 = vld [vmem:[#allocation5 + $0xac] sm:$0xf]  ;;  %v3186_v33 = vor.u32 %v4306_v26, %v3183_v27 }
  0x13   :  { %v3191_v32 = vld [vmem:[#allocation5 + $0xb8] sm:$0xf0]  ;;  %330 = vmatpush.bf16.msra.mxu1 %v3202_v17  ;;  %v3190_v34 = vor.u32 %v4309_v30, %v3189_v28  ;;  %v3165_v35 = vld [vmem:[#allocation5 + $0x80] sm:$0xf]  ;;  %v4304_v36 = vld [vmem:[#allocation5 + $0x8c] sm:$0xf0] }
  0x14   :  { %359 = vmatpush.bf16.msra.mxu2 %v3206_v21  ;;  %v4302_v37 = vld [vmem:[#allocation5 + $0x84] sm:$0xf]  ;;  %388 = vmatpush.bf16.msra.mxu3 %v3210_v25  ;;  %v3194_v38 = vor.u32 %v4307_v31, %v3191_v32  ;;  %v3167_v39 = vld [vmem:[#allocation5 + $0x90] sm:$0xf0]  ;;  %v3173_v40 = vld [vmem:[#allocation5 + $0x88] sm:$0xf]  ;;  %v3166_v44 = vor.u32 %v4304_v36, %v3165_v35 }
  0x15   :  { %v4305_v41 = vld [vmem:[#allocation5 + $0x94] sm:$0xf0]  ;;  %v4303_v42 = vld [vmem:[#allocation5 + $0x8c] sm:$0xf]  ;;  %v3175_v43 = vld [vmem:[#allocation5 + $0x98] sm:$0xf0]  ;;  %v3170_v45 = vor.u32 %v4302_v37, %v3167_v39 }
  0x16   :  { %302 = vmatpush.bf16.msra.mxu0 %v3182_v29  ;;  %v3174_v46 = vor.u32 %v4305_v41, %v3173_v40  ;;  %v3149_v47 = vld [vmem:[#allocation5 + $0x60] sm:$0xf]  ;;  %v4300_v48 = vld [vmem:[#allocation5 + $0x6c] sm:$0xf0]  ;;  %v4298_v49 = vld [vmem:[#allocation5 + $0x64] sm:$0xf]  ;;  %v3178_v50 = vor.u32 %v4303_v42, %v3175_v43 }
  0x17   :  { %331 = vmatpush.bf16.msra.mxu1 %v3186_v33  ;;  %v3151_v51 = vld [vmem:[#allocation5 + $0x70] sm:$0xf0]  ;;  %v3157_v52 = vld [vmem:[#allocation5 + $0x68] sm:$0xf]  ;;  %v4301_v53 = vld [vmem:[#allocation5 + $0x74] sm:$0xf0]  ;;  %v3150_v56 = vor.u32 %v4300_v48, %v3149_v47 }
  0x18   :  { %360 = vmatpush.bf16.msra.mxu2 %v3190_v34  ;;  %389 = vmatpush.bf16.msra.mxu3 %v3194_v38  ;;  %v4299_v54 = vld [vmem:[#allocation5 + $0x6c] sm:$0xf]  ;;  %v3159_v55 = vld [vmem:[#allocation5 + $0x78] sm:$0xf0]  ;;  %v3154_v57 = vor.u32 %v4298_v49, %v3151_v51  ;;  %v3158_v58 = vor.u32 %v4301_v53, %v3157_v52  ;;  %v3133_v59 = vld [vmem:[#allocation5 + $0x40] sm:$0xf] }
  0x19   :  { %v4296_v60 = vld [vmem:[#allocation5 + $0x4c] sm:$0xf0]  ;;  %v4294_v61 = vld [vmem:[#allocation5 + $0x44] sm:$0xf]  ;;  %v3162_v62 = vor.u32 %v4299_v54, %v3159_v55  ;;  %v3135_v63 = vld [vmem:[#allocation5 + $0x50] sm:$0xf0] }
  0x1a   :  { %303 = vmatpush.bf16.msra.mxu0 %v3166_v44  ;;  %v3141_v0 = vld [vmem:[#allocation5 + $0x48] sm:$0xf]  ;;  %v4297_v1 = vld [vmem:[#allocation5 + $0x54] sm:$0xf0]  ;;  %v4295_v2 = vld [vmem:[#allocation5 + $0x4c] sm:$0xf]  ;;  %v3134_v4 = vor.u32 %v4296_v60, %v3133_v59  ;;  %v3138_v5 = vor.u32 %v4294_v61, %v3135_v63 }
  0x1b   :  { %332 = vmatpush.bf16.msra.mxu1 %v3170_v45  ;;  %v3143_v3 = vld [vmem:[#allocation5 + $0x58] sm:$0xf0]  ;;  %v3142_v6 = vor.u32 %v4297_v1, %v3141_v0  ;;  %v3117_v7 = vld [vmem:[#allocation5 + $0x20] sm:$0xf]  ;;  %v4292_v8 = vld [vmem:[#allocation5 + $0x2c] sm:$0xf0] }
  0x1c   :  { %361 = vmatpush.bf16.msra.mxu2 %v3174_v46  ;;  %390 = vmatpush.bf16.msra.mxu3 %v3178_v50  ;;  %v4290_v9 = vld [vmem:[#allocation5 + $0x24] sm:$0xf]  ;;  %v3146_v10 = vor.u32 %v4295_v2, %v3143_v3  ;;  %v3119_v11 = vld [vmem:[#allocation5 + $0x30] sm:$0xf0]  ;;  %v3125_v12 = vld [vmem:[#allocation5 + $0x28] sm:$0xf]  ;;  %v3118_v16 = vor.u32 %v4292_v8, %v3117_v7 }
  0x1d   :  { %v4293_v13 = vld [vmem:[#allocation5 + $0x34] sm:$0xf0]  ;;  %v4291_v14 = vld [vmem:[#allocation5 + $0x2c] sm:$0xf]  ;;  %v3127_v15 = vld [vmem:[#allocation5 + $0x38] sm:$0xf0]  ;;  %v3122_v18 = vor.u32 %v4290_v9, %v3119_v11 }
  0x1e   :  { %304 = vmatpush.bf16.msra.mxu0 %v3150_v56  ;;  %v3101_v17 = vld [vmem:[#allocation5] sm:$0xf]  ;;  %v3126_v19 = vor.u32 %v4293_v13, %v3125_v12  ;;  %v4288_v20 = vld [vmem:[#allocation5 + $0xc] sm:$0xf0]  ;;  %v4286_v21 = vld [vmem:[#allocation5 + $0x4] sm:$0xf]  ;;  %v3130_v23 = vor.u32 %v4291_v14, %v3127_v15 }
  0x1f   :  { %333 = vmatpush.bf16.msra.mxu1 %v3154_v57  ;;  %v3103_v22 = vld [vmem:[#allocation5 + $0x10] sm:$0xf0]  ;;  %v3109_v24 = vld [vmem:[#allocation5 + $0x8] sm:$0xf]  ;;  %v4289_v25 = vld [vmem:[#allocation5 + $0x14] sm:$0xf0]  ;;  %v3102_v30 = vor.u32 %v4288_v20, %v3101_v17 }
  0x20   :  { %362 = vmatpush.bf16.msra.mxu2 %v3158_v58  ;;  %391 = vmatpush.bf16.msra.mxu3 %v3162_v62  ;;  %v4287_v26 = vld [vmem:[#allocation5 + $0xc] sm:$0xf]  ;;  %v3111_v27 = vld [vmem:[#allocation5 + $0x18] sm:$0xf0]  ;;  %v3341_v28 = vld [vmem:[#allocation7 + $0xe0] sm:$0xf]  ;;  %v3106_v33 = vor.u32 %v4286_v21, %v3103_v22  ;;  %v3110_v34 = vor.u32 %v4289_v25, %v3109_v24 }
  0x21   :  { %v4348_v29 = vld [vmem:[#allocation7 + $0xec] sm:$0xf0]  ;;  %v4346_v31 = vld [vmem:[#allocation7 + $0xe4] sm:$0xf]  ;;  %v3343_v32 = vld [vmem:[#allocation7 + $0xf0] sm:$0xf0]  ;;  %v3114_v36 = vor.u32 %v4287_v26, %v3111_v27 }
  0x22   :  { %305 = vmatpush.bf16.msra.mxu0 %v3134_v4  ;;  %v4282_v35 = vld [vmem:[%s5028_s0] sm:$0xff]  ;;  %v3342_v37 = vor.u32 %v4348_v29, %v3341_v28  ;;  %v4347_v38 = vld [vmem:[#allocation7 + $0xec] sm:$0xf]  ;;  %v3349_v39 = vld [vmem:[#allocation7 + $0xe8] sm:$0xf]  ;;  %v3346_v41 = vor.u32 %v4346_v31, %v3343_v32 }
  0x23   :  { %334 = vmatpush.bf16.msra.mxu1 %v3138_v5  ;;  %v4349_v40 = vld [vmem:[#allocation7 + $0xf4] sm:$0xf0]  ;;  %v3351_v42 = vld [vmem:[#allocation7 + $0xf8] sm:$0xf0]  ;;  %v3325_v43 = vld [vmem:[#allocation7 + $0xc0] sm:$0xf] }
  0x24   :  { %363 = vmatpush.bf16.msra.mxu2 %v3142_v6  ;;  %392 = vmatpush.bf16.msra.mxu3 %v3146_v10  ;;  %v4344_v44 = vld [vmem:[#allocation7 + $0xcc] sm:$0xf0]  ;;  %v4342_v45 = vld [vmem:[#allocation7 + $0xc4] sm:$0xf]  ;;  %v3327_v46 = vld [vmem:[#allocation7 + $0xd0] sm:$0xf0]  ;;  %v3350_v47 = vor.u32 %v4349_v40, %v3349_v39  ;;  %v3354_v48 = vor.u32 %v4347_v38, %v3351_v42 }
  0x25   :  { %v3326_v49 = vor.u32 %v4344_v44, %v3325_v43  ;;  %v4343_v50 = vld [vmem:[#allocation7 + $0xcc] sm:$0xf]  ;;  %v3333_v51 = vld [vmem:[#allocation7 + $0xc8] sm:$0xf]  ;;  %v4345_v52 = vld [vmem:[#allocation7 + $0xd4] sm:$0xf0]  ;;  %v3330_v53 = vor.u32 %v4342_v45, %v3327_v46 }
  0x26   :  { %306 = vmatpush.bf16.msra.mxu0 %v3118_v16  ;;  %v3335_v54 = vld [vmem:[#allocation7 + $0xd8] sm:$0xf0]  ;;  %v3309_v55 = vld [vmem:[#allocation7 + $0xa0] sm:$0xf]  ;;  %v4340_v56 = vld [vmem:[#allocation7 + $0xac] sm:$0xf0]  ;;  %v3334_v59 = vor.u32 %v4345_v52, %v3333_v51 }
  0x27   :  { %335 = vmatpush.bf16.msra.mxu1 %v3122_v18  ;;  %v4338_v57 = vld [vmem:[#allocation7 + $0xa4] sm:$0xf]  ;;  %v3311_v58 = vld [vmem:[#allocation7 + $0xb0] sm:$0xf0]  ;;  %v3338_v60 = vor.u32 %v4343_v50, %v3335_v54  ;;  %v3310_v61 = vor.u32 %v4340_v56, %v3309_v55  ;;  %v4339_v62 = vld [vmem:[#allocation7 + $0xac] sm:$0xf] }
  0x28   :  { %364 = vmatpush.bf16.msra.mxu2 %v3126_v19  ;;  %393 = vmatpush.bf16.msra.mxu3 %v3130_v23  ;;  %v3317_v63 = vld [vmem:[#allocation7 + $0xa8] sm:$0xf]  ;;  %v4341_v0 = vld [vmem:[#allocation7 + $0xb4] sm:$0xf0]  ;;  %v3314_v1 = vor.u32 %v4338_v57, %v3311_v58  ;;  %v3319_v2 = vld [vmem:[#allocation7 + $0xb8] sm:$0xf0] }
  0x29   :  { %v3293_v3 = vld [vmem:[#allocation7 + $0x80] sm:$0xf]  ;;  %v4336_v4 = vld [vmem:[#allocation7 + $0x8c] sm:$0xf0]  ;;  %v4334_v5 = vld [vmem:[#allocation7 + $0x84] sm:$0xf]  ;;  %v3318_v7 = vor.u32 %v4341_v0, %v3317_v63  ;;  %v3322_v8 = vor.u32 %v4339_v62, %v3319_v2 }
  0x2a   :  { %307 = vmatpush.bf16.msra.mxu0 %v3102_v30  ;;  %v3295_v6 = vld [vmem:[#allocation7 + $0x90] sm:$0xf0]  ;;  %v3294_v9 = vor.u32 %v4336_v4, %v3293_v3  ;;  %v4335_v10 = vld [vmem:[#allocation7 + $0x8c] sm:$0xf]  ;;  %v3301_v11 = vld [vmem:[#allocation7 + $0x88] sm:$0xf] }
  0x2b   :  { %336 = vmatpush.bf16.msra.mxu1 %v3106_v33  ;;  %v4337_v12 = vld [vmem:[#allocation7 + $0x94] sm:$0xf0]  ;;  %v3298_v13 = vor.u32 %v4334_v5, %v3295_v6  ;;  %v3303_v14 = vld [vmem:[#allocation7 + $0x98] sm:$0xf0]  ;;  %v3277_v15 = vld [vmem:[#allocation7 + $0x60] sm:$0xf] }
  0x2c   :  { %365 = vmatpush.bf16.msra.mxu2 %v3110_v34  ;;  %394 = vmatpush.bf16.msra.mxu3 %v3114_v36  ;;  %v4332_v16 = vld [vmem:[#allocation7 + $0x6c] sm:$0xf0]  ;;  %v4330_v17 = vld [vmem:[#allocation7 + $0x64] sm:$0xf]  ;;  %v3279_v18 = vld [vmem:[#allocation7 + $0x70] sm:$0xf0]  ;;  %v3302_v20 = vor.u32 %v4337_v12, %v3301_v11  ;;  %v3306_v21 = vor.u32 %v4335_v10, %v3303_v14 }
  0x2d   :  { %308 = vmatmul.bf16.vlgmr.msra.gmra.mxu0 %v4282_v35  ;;  %v4283_v19 = vld [vmem:[%s5028_s0 + $0x8] sm:$0xff]  ;;  %v3278_v22 = vor.u32 %v4332_v16, %v3277_v15  ;;  %v4333_v25 = vld [vmem:[#allocation7 + $0x74] sm:$0xf0]  ;;  %v3282_v26 = vor.u32 %v4330_v17, %v3279_v18  ;;  %v3287_v27 = vld [vmem:[#allocation7 + $0x78] sm:$0xf0] }
  0x2e   :  { %642 = vmatpush.bf16.msrb.mxu0 %v3342_v37  ;;  %337 = vmatmul.bf16.vlgmr.msra.gmra.mxu1 %v4282_v35  ;;  %v4331_v23 = vld [vmem:[#allocation7 + $0x6c] sm:$0xf]  ;;  %v3285_v24 = vld [vmem:[#allocation7 + $0x68] sm:$0xf]  ;;  %v3261_v28 = vld [vmem:[#allocation7 + $0x40] sm:$0xf] }
  0x2f   :  { %655 = vmatpush.bf16.msrb.mxu1 %v3346_v41  ;;  %366 = vmatmul.bf16.vlgmr.msra.gmra.mxu2 %v4282_v35  ;;  %v4328_v29 = vld [vmem:[#allocation7 + $0x4c] sm:$0xf0]  ;;  %v4326_v30 = vld [vmem:[#allocation7 + $0x44] sm:$0xf]  ;;  %v3263_v31 = vld [vmem:[#allocation7 + $0x50] sm:$0xf0]  ;;  %v3286_v32 = vor.u32 %v4333_v25, %v3285_v24  ;;  %v3290_v33 = vor.u32 %v4331_v23, %v3287_v27 }
  0x30   :  { %395 = vmatmul.bf16.vlgmr.msra.gmra.mxu3 %v4282_v35  ;;  %668 = vmatpush.bf16.msrb.mxu2 %v3350_v47  ;;  %v3262_v34 = vor.u32 %v4328_v29, %v3261_v28  ;;  %v3266_v35 = vor.u32 %v4326_v30, %v3263_v31  ;;  %v4327_v36 = vld [vmem:[#allocation7 + $0x4c] sm:$0xf]  ;;  %v3271_v37 = vld [vmem:[#allocation7 + $0x58] sm:$0xf0]  ;;  %v3245_v38 = vld [vmem:[#allocation7 + $0x20] sm:$0xf] }
  0x31   :  { %681 = vmatpush.bf16.msrb.mxu3 %v3354_v48  ;;  %v4324_v39 = vld [vmem:[#allocation7 + $0x2c] sm:$0xf0]  ;;  %v4322_v40 = vld [vmem:[#allocation7 + $0x24] sm:$0xf]  ;;  %v3274_v41 = vor.u32 %v4327_v36, %v3271_v37  ;;  %v3247_v43 = vld [vmem:[#allocation7 + $0x30] sm:$0xf0] }
  0x32   :  { %643 = vmatpush.bf16.msrb.mxu0 %v3326_v49  ;;  %v3246_v42 = vor.u32 %v4324_v39, %v3245_v38  ;;  %v3269_v44 = vld [vmem:[#allocation7 + $0x48] sm:$0xf]  ;;  %v4329_v45 = vld [vmem:[#allocation7 + $0x54] sm:$0xf0]  ;;  %v3250_v46 = vor.u32 %v4322_v40, %v3247_v43  ;;  %v4323_v48 = vld [vmem:[#allocation7 + $0x2c] sm:$0xf] }
  0x33   :  { %656 = vmatpush.bf16.msrb.mxu1 %v3330_v53  ;;  %v3270_v47 = vor.u32 %v4329_v45, %v3269_v44  ;;  %v3255_v49 = vld [vmem:[#allocation7 + $0x38] sm:$0xf0]  ;;  %v3229_v50 = vld [vmem:[#allocation7] sm:$0xf]  ;;  %v4320_v51 = vld [vmem:[#allocation7 + $0xc] sm:$0xf0] }
  0x34   :  { %669 = vmatpush.bf16.msrb.mxu2 %v3334_v59  ;;  %v4318_v52 = vld [vmem:[#allocation7 + $0x4] sm:$0xf]  ;;  %v3231_v53 = vld [vmem:[#allocation7 + $0x10] sm:$0xf0]  ;;  %v3253_v54 = vld [vmem:[#allocation7 + $0x28] sm:$0xf]  ;;  %v3258_v56 = vor.u32 %v4323_v48, %v3255_v49  ;;  %v3230_v57 = vor.u32 %v4320_v51, %v3229_v50 }
  0x35   :  { %682 = vmatpush.bf16.msrb.mxu3 %v3338_v60  ;;  %v4325_v55 = vld [vmem:[#allocation7 + $0x34] sm:$0xf0]  ;;  %v3237_v59 = vld [vmem:[#allocation7 + $0x8] sm:$0xf]  ;;  %v4319_v62 = vld [vmem:[#allocation7 + $0xc] sm:$0xf] }
  0x36   :  { %644 = vmatpush.bf16.msrb.mxu0 %v3310_v61  ;;  %v3254_v58 = vor.u32 %v4325_v55, %v3253_v54  ;;  %v4321_v60 = vld [vmem:[#allocation7 + $0x14] sm:$0xf0]  ;;  %v3234_v61 = vor.u32 %v4318_v52, %v3231_v53  ;;  %v3239_v63 = vld [vmem:[#allocation7 + $0x18] sm:$0xf0]  ;;  %v4284_v2 = vld [vmem:[%s5028_s0 + $0x10] sm:$0xff] }
  0x37   :  { %657 = vmatpush.bf16.msrb.mxu1 %v3314_v1  ;;  %v3238_v0 = vor.u32 %v4321_v60, %v3237_v59  ;;  %v3242_v1 = vor.u32 %v4319_v62, %v3239_v63  ;;  %v4285_v3 = vld [vmem:[%s5028_s0 + $0x18] sm:$0xff]  ;;  %v62_v4 = vld [vmem:[%s5032_s4] sm:$0xff]  ;;  %v4380_v53 = vld [vmem:[#allocation7 + $0xec] sm:$0xf0] }
  0x38   :  { %670 = vmatpush.bf16.msrb.mxu2 %v3318_v7  ;;  %v449_v5 = vpack.c.bf16 %v62_v4, %v62_v4  ;;  %v3472_v52 = vld [vmem:[#allocation7 + $0xe0] sm:$0xf]  ;;  %v4378_v54 = vld [vmem:[#allocation7 + $0xe4] sm:$0xf]  ;;  %v3474_v59 = vld [vmem:[#allocation7 + $0xf0] sm:$0xf0] }
  0x39   :  { %683 = vmatpush.bf16.msrb.mxu3 %v3322_v8  ;;  %v106_v8 = vld [vmem:[%s5031_s3] sm:$0xf]  ;;  %v3480_v60 = vld [vmem:[#allocation7 + $0xe8] sm:$0xf]  ;;  %v3482_v4 = vld [vmem:[#allocation7 + $0xf8] sm:$0xf0] }
  0x3a   :  { %645 = vmatpush.bf16.msrb.mxu0 %v3294_v9  ;;  %v4835_v9 = vperm.slane %v106_v8, 0  ;;  %v4839_v11 = vperm.slane %v106_v8, 1  ;;  %v4849_v17 = vperm.slane %v106_v8, 2  ;;  %v4851_v18 = vperm.slane %v106_v8, 3 }
  0x3b   :  { %658 = vmatpush.bf16.msrb.mxu1 %v3298_v13 }
  0x3c   :  { %671 = vmatpush.bf16.msrb.mxu2 %v3302_v20 }
  0x3d   :  { %684 = vmatpush.bf16.msrb.mxu3 %v3306_v21  ;;  %313 = vmatmul.bf16.gmra.mxu0 %v4283_v19 }
  0x3e   :  { %646 = vmatpush.bf16.msrb.mxu0 %v3278_v22  ;;  %342 = vmatmul.bf16.gmra.mxu1 %v4283_v19 }
  0x3f   :  { %659 = vmatpush.bf16.msrb.mxu1 %v3282_v26  ;;  %371 = vmatmul.bf16.gmra.mxu2 %v4283_v19 }
  0x40   :  { %400 = vmatmul.bf16.gmra.mxu3 %v4283_v19  ;;  %672 = vmatpush.bf16.msrb.mxu2 %v3286_v32 }
  0x41   :  { %685 = vmatpush.bf16.msrb.mxu3 %v3290_v33 }
  0x42   :  { %647 = vmatpush.bf16.msrb.mxu0 %v3262_v34 }
  0x43   :  { %660 = vmatpush.bf16.msrb.mxu1 %v3266_v35 }
  0x44   :  { %673 = vmatpush.bf16.msrb.mxu2 %v3270_v47 }
  0x45   :  { %686 = vmatpush.bf16.msrb.mxu3 %v3274_v41 }
  0x46   :  { %648 = vmatpush.bf16.msrb.mxu0 %v3246_v42 }
  0x47   :  { %661 = vmatpush.bf16.msrb.mxu1 %v3250_v46 }
  0x48   :  { %674 = vmatpush.bf16.msrb.mxu2 %v3254_v58  ;;  %v3473_v58 = vor.u32 %v4380_v53, %v3472_v52  ;;  %v3442_v53 = vld [vmem:[#allocation7 + $0xb0] sm:$0xf0] }
  0x49   :  { %687 = vmatpush.bf16.msrb.mxu3 %v3258_v56 }
  0x4a   :  { %649 = vmatpush.bf16.msrb.mxu0 %v3230_v57 }
  0x4b   :  { %662 = vmatpush.bf16.msrb.mxu1 %v3234_v61  ;;  %v4381_v61 = vld [vmem:[#allocation7 + $0xf4] sm:$0xf0] }
  0x4c   :  { %675 = vmatpush.bf16.msrb.mxu2 %v3238_v0 }
  0x4d   :  { %688 = vmatpush.bf16.msrb.mxu3 %v3242_v1  ;;  %318 = vmatmul.bf16.gmra.mxu0 %v4284_v2  ;;  %v3477_v1 = vor.u32 %v4378_v54, %v3474_v59  ;;  %v3448_v54 = vld [vmem:[#allocation7 + $0xa8] sm:$0xf] }
  0x4e   :  { %347 = vmatmul.bf16.gmra.mxu1 %v4284_v2  ;;  %967 = vmatpush.bf16.msra.mxu0 %v3473_v58 }
  0x4f   :  { %376 = vmatmul.bf16.gmra.mxu2 %v4284_v2  ;;  %980 = vmatpush.bf16.msra.mxu1 %v3477_v1  ;;  %v3450_v1 = vld [vmem:[#allocation7 + $0xb8] sm:$0xf0] }
  0x50   :  { %405 = vmatmul.bf16.gmra.mxu3 %v4284_v2  ;;  %v3481_v2 = vor.u32 %v4381_v61, %v3480_v60 }
  0x52   :  { %993 = vmatpush.bf16.msra.mxu2 %v3481_v2 }
  0x5d   :  { %323 = vmatmul.bf16.gmra.mxu0 %v4285_v3 }
  0x5e   :  { %352 = vmatmul.bf16.gmra.mxu1 %v4285_v3 }
  0x5f   :  { %381 = vmatmul.bf16.gmra.mxu2 %v4285_v3 }
  0x60   :  { %410 = vmatmul.bf16.gmra.mxu3 %v4285_v3  ;;  %v4379_v3 = vld [vmem:[#allocation7 + $0xec] sm:$0xf] }
  0x61   :  { %v3485_v8 = vor.u32 %v4379_v3, %v3482_v4  ;;  %v3424_v4 = vld [vmem:[#allocation7 + $0x80] sm:$0xf] }
  0x63   :  { %1006 = vmatpush.bf16.msra.mxu3 %v3485_v8  ;;  %v4368_v8 = vld [vmem:[#allocation7 + $0x8c] sm:$0xf0] }
  0x6d   :  { %650 = vmatmul.bf16.vlgmr.msrb.gmra.mxu0 %v449_v5 }
  0x6e   :  { %663 = vmatmul.bf16.vlgmr.msrb.gmra.mxu1 %v449_v5 }
  0x6f   :  { %676 = vmatmul.bf16.vlgmr.msrb.gmra.mxu2 %v449_v5 }
  0x70   :  { %689 = vmatmul.bf16.vlgmr.msrb.gmra.mxu3 %v449_v5 }
  0xaa   :  { %v4828_v6 = vpop.f32.mrf.mxu0 }
  0xab   :  { %v4830_v7 = vpop.f32.mrf.mxu1 }
  0xb2   :  { %v4837_v10 = vpop.f32.mrf.mxu2  ;;  %v311_v13 = vpop.f32.mrf.mxu0 }
  0xb3   :  { %v4841_v12 = vpop.f32.mrf.mxu3  ;;  %v4844_v14 = vadd.f32 %v311_v13, %v4835_v9  ;;  %v340_v15 = vpop.f32.mrf.mxu1  ;;  %v3456_v13 = vld [vmem:[#allocation7 + $0xc0] sm:$0xf] }
  0xb4   :  { %v4847_v16 = vadd.f32 %v340_v15, %v4839_v11  ;;  %v4376_v15 = vld [vmem:[#allocation7 + $0xcc] sm:$0xf0] }
  0xba   :  { %v369_v19 = vpop.f32.mrf.mxu2  ;;  %v314_v22 = vpop.f32.mrf.mxu0 }
  0xbb   :  { %v4854_v20 = vadd.f32 %v369_v19, %v4849_v17  ;;  %v398_v21 = vpop.f32.mrf.mxu3  ;;  %v4860_v24 = vadd.f32 %v314_v22, %v4835_v9  ;;  %v343_v25 = vpop.f32.mrf.mxu1  ;;  %v4374_v19 = vld [vmem:[#allocation7 + $0xc4] sm:$0xf]  ;;  %v3458_v22 = vld [vmem:[#allocation7 + $0xd0] sm:$0xf0] }
  0xbc   :  { %v4857_v23 = vadd.f32 %v398_v21, %v4851_v18  ;;  %v4863_v26 = vadd.f32 %v343_v25, %v4839_v11  ;;  %v3457_v21 = vor.u32 %v4376_v15, %v3456_v13  ;;  %v3464_v25 = vld [vmem:[#allocation7 + $0xc8] sm:$0xf]  ;;  %v4366_v13 = vld [vmem:[#allocation7 + $0x84] sm:$0xf]  ;;  %v3425_v15 = vor.u32 %v4368_v8, %v3424_v4  ;;  %v3392_v8 = vld [vmem:[#allocation7 + $0x40] sm:$0xf] }
  0xbe   :  { %968 = vmatpush.bf16.msra.mxu0 %v3457_v21  ;;  %v3432_v21 = vld [vmem:[#allocation7 + $0x88] sm:$0xf] }
  0xc2   :  { %v372_v27 = vpop.f32.mrf.mxu2  ;;  %v316_v30 = vpop.f32.mrf.mxu0 }
  0xc3   :  { %v4866_v28 = vadd.f32 %v372_v27, %v4849_v17  ;;  %v401_v29 = vpop.f32.mrf.mxu3  ;;  %v4872_v32 = vadd.f32 %v316_v30, %v4835_v9  ;;  %v345_v33 = vpop.f32.mrf.mxu1  ;;  %v4377_v27 = vld [vmem:[#allocation7 + $0xd4] sm:$0xf0] }
  0xc4   :  { %v4869_v31 = vadd.f32 %v401_v29, %v4851_v18  ;;  %v4875_v34 = vadd.f32 %v345_v33, %v4839_v11  ;;  %v3461_v29 = vor.u32 %v4374_v19, %v3458_v22  ;;  %v3465_v30 = vor.u32 %v4377_v27, %v3464_v25  ;;  %v4375_v33 = vld [vmem:[#allocation7 + $0xcc] sm:$0xf]  ;;  %v3426_v19 = vld [vmem:[#allocation7 + $0x90] sm:$0xf0]  ;;  %v4369_v22 = vld [vmem:[#allocation7 + $0x94] sm:$0xf0] }
  0xc5   :  { %v3429_v25 = vor.u32 %v4366_v13, %v3426_v19  ;;  %v3433_v27 = vor.u32 %v4369_v22, %v3432_v21  ;;  %v4360_v13 = vld [vmem:[#allocation7 + $0x4c] sm:$0xf0]  ;;  %v4358_v21 = vld [vmem:[#allocation7 + $0x44] sm:$0xf]  ;;  %v3394_v22 = vld [vmem:[#allocation7 + $0x50] sm:$0xf0] }
  0xc6   :  { %981 = vmatpush.bf16.msra.mxu1 %v3461_v29  ;;  %994 = vmatpush.bf16.msra.mxu2 %v3465_v30  ;;  %v4367_v29 = vld [vmem:[#allocation7 + $0x8c] sm:$0xf]  ;;  %v3434_v30 = vld [vmem:[#allocation7 + $0x98] sm:$0xf0]  ;;  %v3393_v19 = vor.u32 %v4360_v13, %v3392_v8  ;;  %v3362_v13 = vld [vmem:[#allocation7 + $0x10] sm:$0xf0] }
  0xca   :  { %v374_v35 = vpop.f32.mrf.mxu2  ;;  %v319_v38 = vpop.f32.mrf.mxu0 }
  0xcb   :  { %v4878_v36 = vadd.f32 %v374_v35, %v4849_v17  ;;  %v403_v37 = vpop.f32.mrf.mxu3  ;;  %v4884_v40 = vadd.f32 %v319_v38, %v4835_v9  ;;  %v348_v41 = vpop.f32.mrf.mxu1  ;;  %v3466_v35 = vld [vmem:[#allocation7 + $0xd8] sm:$0xf0] }
  0xcc   :  { %v4881_v39 = vadd.f32 %v403_v37, %v4851_v18  ;;  %v4887_v42 = vadd.f32 %v348_v41, %v4839_v11  ;;  %v3469_v37 = vor.u32 %v4375_v33, %v3466_v35  ;;  %v3440_v41 = vld [vmem:[#allocation7 + $0xa0] sm:$0xf]  ;;  %v3437_v33 = vor.u32 %v4367_v29, %v3434_v30  ;;  %v4361_v29 = vld [vmem:[#allocation7 + $0x54] sm:$0xf0]  ;;  %v4359_v30 = vld [vmem:[#allocation7 + $0x4c] sm:$0xf] }
  0xcd   :  { %v310_v35 = vadd.f32 %v4828_v6, %v4835_v9 }
  0xce   :  { %1007 = vmatpush.bf16.msra.mxu3 %v3469_v37 }
  0xd2   :  { %v377_v43 = vpop.f32.mrf.mxu2  ;;  %v321_v46 = vpop.f32.mrf.mxu0 }
  0xd3   :  { %v4890_v44 = vadd.f32 %v377_v43, %v4849_v17  ;;  %v406_v45 = vpop.f32.mrf.mxu3  ;;  %v4896_v48 = vadd.f32 %v321_v46, %v4835_v9  ;;  %v350_v49 = vpop.f32.mrf.mxu1  ;;  %v4372_v43 = vld [vmem:[#allocation7 + $0xac] sm:$0xf0] }
  0xd4   :  { %v4893_v47 = vadd.f32 %v406_v45, %v4851_v18  ;;  %v4899_v50 = vadd.f32 %v350_v49, %v4839_v11  ;;  %v4370_v45 = vld [vmem:[#allocation7 + $0xa4] sm:$0xf]  ;;  %v3441_v52 = vor.u32 %v4372_v43, %v3440_v41  ;;  %v4364_v41 = vld [vmem:[#allocation7 + $0x6c] sm:$0xf0] }
  0xd5   :  { %v3445_v60 = vor.u32 %v4370_v45, %v3442_v53  ;;  %v4362_v43 = vld [vmem:[#allocation7 + $0x64] sm:$0xf]  ;;  %v339_v45 = vadd.f32 %v4830_v7, %v4839_v11 }
  0xd6   :  { %969 = vmatpush.bf16.msra.mxu0 %v3441_v52 }
  0xd7   :  { %982 = vmatpush.bf16.msra.mxu1 %v3445_v60 }
  0xda   :  { %v379_v51 = vpop.f32.mrf.mxu2  ;;  %v324_v57 = vpop.f32.mrf.mxu0  ;;  %970 = vmatpush.bf16.msra.mxu0 %v3425_v15 }
  0xdb   :  { %v4902_v55 = vadd.f32 %v379_v51, %v4849_v17  ;;  %v408_v56 = vpop.f32.mrf.mxu3  ;;  %v4908_v63 = vadd.f32 %v324_v57, %v4835_v9  ;;  %v353_v0 = vpop.f32.mrf.mxu1  ;;  %983 = vmatpush.bf16.msra.mxu1 %v3429_v25  ;;  %v3397_v25 = vor.u32 %v4358_v21, %v3394_v22 }
  0xdc   :  { %v4905_v62 = vadd.f32 %v408_v56, %v4851_v18  ;;  %v4911_v5 = vadd.f32 %v353_v0, %v4839_v11  ;;  %v4373_v56 = vld [vmem:[#allocation7 + $0xb4] sm:$0xf0]  ;;  %v4371_v0 = vld [vmem:[#allocation7 + $0xac] sm:$0xf] }
  0xdd   :  { %v3449_v61 = vor.u32 %v4373_v56, %v3448_v54  ;;  %v3453_v3 = vor.u32 %v4371_v0, %v3450_v1  ;;  %v3410_v54 = vld [vmem:[#allocation7 + $0x70] sm:$0xf0]  ;;  %v3416_v56 = vld [vmem:[#allocation7 + $0x68] sm:$0xf]  ;;  %v4363_v1 = vld [vmem:[#allocation7 + $0x6c] sm:$0xf] }
  0xdf   :  { %995 = vmatpush.bf16.msra.mxu2 %v3449_v61  ;;  %1008 = vmatpush.bf16.msra.mxu3 %v3453_v3  ;;  %v3413_v61 = vor.u32 %v4362_v43, %v3410_v54  ;;  %v3418_v3 = vld [vmem:[#allocation7 + $0x78] sm:$0xf0]  ;;  %v3384_v54 = vld [vmem:[#allocation7 + $0x28] sm:$0xf] }
  0xe1   :  { %984 = vmatpush.bf16.msra.mxu1 %v3413_v61  ;;  %v4355_v61 = vld [vmem:[#allocation7 + $0x2c] sm:$0xf] }
  0xe2   :  { %v382_v38 = vpop.f32.mrf.mxu2  ;;  %v326_v51 = vpop.f32.mrf.mxu0 }
  0xe3   :  { %v4914_v46 = vadd.f32 %v382_v38, %v4849_v17  ;;  %v411_v49 = vpop.f32.mrf.mxu3  ;;  %v4920_v58 = vadd.f32 %v326_v51, %v4835_v9  ;;  %v355_v59 = vpop.f32.mrf.mxu1  ;;  %996 = vmatpush.bf16.msra.mxu2 %v3433_v27  ;;  %v3408_v38 = vld [vmem:[#allocation7 + $0x60] sm:$0xf]  ;;  %1009 = vmatpush.bf16.msra.mxu3 %v3437_v33  ;;  %v3400_v27 = vld [vmem:[#allocation7 + $0x48] sm:$0xf] }
  0xe4   :  { %v4917_v57 = vadd.f32 %v411_v49, %v4851_v18  ;;  %v4923_v2 = vadd.f32 %v355_v59, %v4839_v11  ;;  %v3409_v53 = vor.u32 %v4364_v41, %v3408_v38  ;;  %v4365_v59 = vld [vmem:[#allocation7 + $0x74] sm:$0xf0]  ;;  %v3421_v11 = vor.u32 %v4363_v1, %v3418_v3  ;;  %v4356_v38 = vld [vmem:[#allocation7 + $0x2c] sm:$0xf0] }
  0xe5   :  { %v3417_v0 = vor.u32 %v4365_v59, %v3416_v56  ;;  %v3401_v33 = vor.u32 %v4361_v29, %v3400_v27  ;;  %v397_v41 = vadd.f32 %v4841_v12, %v4851_v18  ;;  %985 = vmatpush.bf16.msra.mxu1 %v3397_v25  ;;  %v3360_v12 = vld [vmem:[#allocation7] sm:$0xf]  ;;  %v4351_v27 = vld [vmem:[#allocation7 + $0xc] sm:$0xf]  ;;  %v3370_v29 = vld [vmem:[#allocation7 + $0x18] sm:$0xf0] }
  0xe6   :  { %971 = vmatpush.bf16.msra.mxu0 %v3409_v53  ;;  %v3378_v53 = vld [vmem:[#allocation7 + $0x30] sm:$0xf0] }
  0xe7   :  { %997 = vmatpush.bf16.msra.mxu2 %v3417_v0  ;;  %1010 = vmatpush.bf16.msra.mxu3 %v3421_v11  ;;  %v3386_v0 = vld [vmem:[#allocation7 + $0x38] sm:$0xf0] }
  0xe8   :  { %v3389_v11 = vor.u32 %v4355_v61, %v3386_v0 }
  0xea   :  { %v384_v37 = vpop.f32.mrf.mxu2  ;;  %v651_v52 = vpop.f32.mrf.mxu0  ;;  %972 = vmatpush.bf16.msra.mxu0 %v3393_v19  ;;  %v4353_v19 = vld [vmem:[#allocation7 + $0x14] sm:$0xf0] }
  0xeb   :  { %v4930_v49 = vadd.f32 %v384_v37, %v4849_v17  ;;  %v413_v51 = vpop.f32.mrf.mxu3  ;;  %v701_v9 = vadd.f32 %v651_v52, %v310_v35  ;;  %v664_v60 = vpop.f32.mrf.mxu1  ;;  %v3402_v35 = vld [vmem:[#allocation7 + $0x58] sm:$0xf0]  ;;  %v3376_v37 = vld [vmem:[#allocation7 + $0x20] sm:$0xf]  ;;  %v4354_v52 = vld [vmem:[#allocation7 + $0x24] sm:$0xf]  ;;  %998 = vmatpush.bf16.msra.mxu2 %v3401_v33 }
  0xec   :  { %v4933_v6 = vadd.f32 %v413_v51, %v4851_v18  ;;  %v702_v7 = vadd.f32 %v664_v60, %v339_v45  ;;  %v3405_v45 = vor.u32 %v4359_v30, %v3402_v35  ;;  %v3377_v51 = vor.u32 %v4356_v38, %v3376_v37  ;;  %v4357_v60 = vld [vmem:[#allocation7 + $0x34] sm:$0xf0]  ;;  %v4352_v18 = vld [vmem:[#allocation7 + $0xc] sm:$0xf0] }
  0xed   :  { %v3355_v4 = vmul.f32 -1.442695, %v701_v9  ;;  %v3381_v9 = vor.u32 %v4354_v52, %v3378_v53  ;;  %v3361_v8 = vor.u32 %v4352_v18, %v3360_v12  ;;  %v3373_v38 = vor.u32 %v4351_v27, %v3370_v29 }
  0xee   :  { %v3356_v15 = vmul.f32 -1.442695, %v702_v7  ;;  %1011 = vmatpush.bf16.msra.mxu3 %v3405_v45  ;;  %v3385_v7 = vor.u32 %v4357_v60, %v3384_v54  ;;  %973 = vmatpush.bf16.msra.mxu0 %v3377_v51  ;;  %v368_v51 = vadd.f32 %v4837_v10, %v4849_v17 }
  0xef   :  { %4578 = vpow2.f32 %v3355_v4  ;;  %v4350_v4 = vld [vmem:[#allocation7 + $0x4] sm:$0xf]  ;;  %986 = vmatpush.bf16.msra.mxu1 %v3381_v9 }
  0xf0   :  { %4580 = vpow2.f32 %v3356_v15  ;;  %v3368_v15 = vld [vmem:[#allocation7 + $0x8] sm:$0xf]  ;;  %v3365_v25 = vor.u32 %v4350_v4, %v3362_v13  ;;  %999 = vmatpush.bf16.msra.mxu2 %v3385_v7  ;;  %v64_v13 = vld [vmem:[%s5033_s5] sm:$0xff] }
  0xf1   :  { %v3369_v35 = vor.u32 %v4353_v19, %v3368_v15 }
  0xf2   :  { %v677_v43 = vpop.f32.mrf.mxu2  ;;  %v653_v59 = vpop.f32.mrf.mxu0  ;;  %1012 = vmatpush.bf16.msra.mxu3 %v3389_v11  ;;  %974 = vmatpush.bf16.msra.mxu0 %v3361_v8 }
  0xf3   :  { %v690_v56 = vpop.f32.mrf.mxu3  ;;  %v666_v3 = vpop.f32.mrf.mxu1  ;;  %987 = vmatpush.bf16.msra.mxu1 %v3365_v25  ;;  %v703_v54 = vadd.f32 %v677_v43, %v368_v51 }
  0xf4   :  { %v704_v1 = vadd.f32 %v690_v56, %v397_v41  ;;  %1000 = vmatpush.bf16.msra.mxu2 %v3369_v35 }
  0xf5   :  { %v4579_v21 = vpop.eup %4578 }
  0xf6   :  { %v3357_v22 = vmul.f32 -1.442695, %v704_v1  ;;  %v4581_v30 = vpop.eup %4580  ;;  %v708_v33 = vadd.f32 1.0, %v4579_v21  ;;  %1013 = vmatpush.bf16.msra.mxu3 %v3373_v38 }
  0xf7   :  { %v727_v37 = vadd.f32 1.0, %v4581_v30 }
  0xf8   :  { %4582 = vpow2.f32 %v3357_v22  ;;  %v720_v1 = vand.u32 2147483648, %v708_v33  ;;  %v718_v11 = vand.u32 2147483647, %v708_v33  ;;  %vm714_vm2 = vweird.f32 %v708_v33 }
  0xf9   :  { %4584 = vrcp.f32 %v708_v33  ;;  %v739_v3 = vand.u32 2147483648, %v727_v37  ;;  %v737_v18 = vand.u32 2147483647, %v727_v37  ;;  %vm733_vm3 = vweird.f32 %v727_v37 }
  0xfa   :  { %4586 = vrcp.f32 %v727_v37  ;;  %v679_v41 = vpop.f32.mrf.mxu2  ;;  %v721_v43 = vor.u32 1.1754944e-38, %v720_v1  ;;  %vm719_vm6 = vcmp.eq.f32.partialorder %v718_v11, 8.507059e+37  ;;  %v3606_v1 = vld [vmem:[#allocation7 + $0xf0] sm:$0xf0] }
  0xfb   :  { %v692_v45 = vpop.f32.mrf.mxu3  ;;  %v740_v8 = vor.u32 1.1754944e-38, %v739_v3  ;;  %vm738_vm7 = vcmp.eq.f32.partialorder %v737_v18, 8.507059e+37  ;;  %v3612_v3 = vld [vmem:[#allocation7 + $0xe8] sm:$0xf]  ;;  %v4411_v18 = vld [vmem:[#allocation7 + $0xec] sm:$0xf] }
  0xfe   :  { %v4583_v52 = vpop.eup %4582 }
  0xff   :  { %v4585_v53 = vpop.eup %4584  ;;  %v747_v56 = vadd.f32 1.0, %v4583_v52 }
 0x100   :  { %v4587_v59 = vpop.eup %4586  ;;  %v710_v9 = vmul.f32 %v4585_v53, %v708_v33  ;;  %vm715_vm0 = vweird.f32 %v4585_v53 }
 0x101   :  { %v729_v60 = vmul.f32 %v4587_v59, %v727_v37  ;;  %4588 = vrcp.f32 %v747_v56  ;;  %vm734_vm1 = vweird.f32 %v4587_v59  ;;  %vm716_vm4 = vmor %vm714_vm2, %vm715_vm0  ;;  %v759_v41 = vand.u32 2147483648, %v747_v56 }
 0x102   :  { %v711_v61 = vsub.f32 1.0, %v710_v9  ;;  %4590 = vtanh.f32 %v703_v54  ;;  %vm735_vm5 = vmor %vm733_vm3, %vm734_vm1  ;;  %vm753_vm9 = vweird.f32 %v747_v56  ;;  %v757_v45 = vand.u32 2147483647, %v747_v56 }
 0x103   :  { %v730_v0 = vsub.f32 1.0, %v729_v60  ;;  %v760_v52 = vor.u32 1.1754944e-38, %v759_v41  ;;  %v3604_v60 = vld [vmem:[#allocation7 + $0xe0] sm:$0xf] }
 0x104   :  { %v712_v7 = vmul.f32 %v4585_v53, %v711_v61  ;;  %vm758_vm11 = vcmp.eq.f32.partialorder %v757_v45, 8.507059e+37  ;;  %v4412_v61 = vld [vmem:[#allocation7 + $0xec] sm:$0xf0]  ;;  %v3574_v45 = vld [vmem:[#allocation7 + $0xb0] sm:$0xf0] }
 0x105   :  { %v731_v12 = vmul.f32 %v4587_v59, %v730_v0  ;;  %v4410_v0 = vld [vmem:[#allocation7 + $0xe4] sm:$0xf] }
 0x106   :  { %v713_v10 = vadd.f32 %v4585_v53, %v712_v7  ;;  %v4413_v7 = vld [vmem:[#allocation7 + $0xf4] sm:$0xf0]  ;;  %v3609_v11 = vor.u32 %v4410_v0, %v3606_v1  ;;  %v4400_v0 = vld [vmem:[#allocation7 + $0x8c] sm:$0xf0] }
 0x107   :  { %v4589_v17 = vpop.eup %4588  ;;  %v732_v4 = vadd.f32 %v4587_v59, %v731_v12  ;;  %v3613_v12 = vor.u32 %v4413_v7, %v3612_v3  ;;  %v3558_v3 = vld [vmem:[#allocation7 + $0x90] sm:$0xf0]  ;;  %v3564_v7 = vld [vmem:[#allocation7 + $0x88] sm:$0xf] }
 0x108   :  { %v717_v15 = vsel %vm716_vm4, %v4585_v53, %v713_v10  ;;  %v749_v19 = vmul.f32 %v4589_v17, %v747_v56  ;;  %v4591_v21 = vpop.eup %4590  ;;  %vm754_vm8 = vweird.f32 %v4589_v17  ;;  %v3605_v56 = vor.u32 %v4412_v61, %v3604_v60  ;;  %v3614_v10 = vld [vmem:[#allocation7 + $0xf8] sm:$0xf0]  ;;  %1306 = vmatpush.bf16.msrb.mxu1 %v3609_v11  ;;  %v3556_v61 = vld [vmem:[#allocation7 + $0x80] sm:$0xf]  ;;  %v4401_v11 = vld [vmem:[#allocation7 + $0x94] sm:$0xf0] }
 0x109   :  { %v722_v22 = vsel %vm719_vm6, %v721_v43, %v717_v15  ;;  %v736_v25 = vsel %vm735_vm5, %v4587_v59, %v732_v4  ;;  %vm755_vm10 = vmor %vm753_vm9, %vm754_vm8  ;;  %1319 = vmatpush.bf16.msrb.mxu2 %v3613_v12  ;;  %v3588_v43 = vld [vmem:[#allocation7 + $0xc0] sm:$0xf]  ;;  %v4408_v4 = vld [vmem:[#allocation7 + $0xcc] sm:$0xf0]  ;;  %v3557_v1 = vor.u32 %v4400_v0, %v3556_v61 }
 0x10a   :  { %v741_v27 = vsel %vm738_vm7, %v740_v8, %v736_v25  ;;  %v765_v29 = vmul.f32 %v4591_v21, %v722_v22  ;;  %v750_v30 = vsub.f32 1.0, %v749_v19  ;;  %1293 = vmatpush.bf16.msrb.mxu0 %v3605_v56  ;;  %v4406_v8 = vld [vmem:[#allocation7 + $0xc4] sm:$0xf]  ;;  %v3590_v15 = vld [vmem:[#allocation7 + $0xd0] sm:$0xf0] }
 0x10b   :  { %v764_v33 = vmul.f32 %v741_v27, %v64_v13  ;;  %v3589_v13 = vor.u32 %v4408_v4, %v3588_v43  ;;  %v3596_v19 = vld [vmem:[#allocation7 + $0xc8] sm:$0xf]  ;;  %v4409_v21 = vld [vmem:[#allocation7 + $0xd4] sm:$0xf0]  ;;  %v3593_v22 = vor.u32 %v4406_v8, %v3590_v15  ;;  %v4407_v27 = vld [vmem:[#allocation7 + $0xcc] sm:$0xf] }
 0x10c   :  { %v751_v35 = vmul.f32 %v4589_v17, %v750_v30  ;;  %v3597_v25 = vor.u32 %v4409_v21, %v3596_v19  ;;  %v4398_v56 = vld [vmem:[#allocation7 + $0x84] sm:$0xf]  ;;  %v3540_v4 = vld [vmem:[#allocation7 + $0x60] sm:$0xf]  ;;  %v4396_v8 = vld [vmem:[#allocation7 + $0x6c] sm:$0xf0] }
 0x10d   :  { %v4942_v37 = vadd.f32 %v765_v29, %v764_v33  ;;  %v3598_v29 = vld [vmem:[#allocation7 + $0xd8] sm:$0xf0]  ;;  %1307 = vmatpush.bf16.msrb.mxu1 %v3593_v22  ;;  %v3572_v33 = vld [vmem:[#allocation7 + $0xa0] sm:$0xf]  ;;  %v3561_v12 = vor.u32 %v4398_v56, %v3558_v3  ;;  %v3541_v15 = vor.u32 %v4396_v8, %v3540_v4  ;;  %v3542_v19 = vld [vmem:[#allocation7 + $0x70] sm:$0xf0] }
 0x10e   :  { %v752_v38 = vadd.f32 %v4589_v17, %v751_v35  ;;  %1294 = vmatpush.bf16.msrb.mxu0 %v3589_v13  ;;  %v3601_v30 = vor.u32 %v4407_v27, %v3598_v29  ;;  %1320 = vmatpush.bf16.msrb.mxu2 %v3597_v25  ;;  %v4404_v35 = vld [vmem:[#allocation7 + $0xac] sm:$0xf0]  ;;  %v4394_v13 = vld [vmem:[#allocation7 + $0x64] sm:$0xf]  ;;  %v3548_v21 = vld [vmem:[#allocation7 + $0x68] sm:$0xf] }
 0x10f   :  { %4592 = vtanh.f32 %v4942_v37  ;;  %v3573_v41 = vor.u32 %v4404_v35, %v3572_v33  ;;  %v4397_v22 = vld [vmem:[#allocation7 + $0x74] sm:$0xf0]  ;;  %v3545_v29 = vor.u32 %v4394_v13, %v3542_v19  ;;  %v4395_v33 = vld [vmem:[#allocation7 + $0x6c] sm:$0xf]  ;;  %v3550_v35 = vld [vmem:[#allocation7 + $0x78] sm:$0xf0] }
 0x110   :  { %v756_v51 = vsel %vm755_vm10, %v4589_v17, %v752_v38  ;;  %v3617_v17 = vor.u32 %v4411_v18, %v3614_v10  ;;  %v4402_v38 = vld [vmem:[#allocation7 + $0xa4] sm:$0xf]  ;;  %v3565_v18 = vor.u32 %v4401_v11, %v3564_v7  ;;  %v4399_v10 = vld [vmem:[#allocation7 + $0x8c] sm:$0xf]  ;;  %v3532_v0 = vld [vmem:[#allocation7 + $0x48] sm:$0xf] }
 0x111   :  { %v761_v54 = vsel %vm758_vm11, %v760_v52, %v756_v51  ;;  %v3580_v51 = vld [vmem:[#allocation7 + $0xa8] sm:$0xf]  ;;  %v4405_v52 = vld [vmem:[#allocation7 + $0xb4] sm:$0xf0]  ;;  %v3508_v3 = vld [vmem:[#allocation7 + $0x20] sm:$0xf] }
 0x112   :  { %1332 = vmatpush.bf16.msrb.mxu3 %v3617_v17  ;;  %1295 = vmatpush.bf16.msrb.mxu0 %v3573_v41  ;;  %v3566_v17 = vld [vmem:[#allocation7 + $0x98] sm:$0xf0]  ;;  %v4393_v56 = vld [vmem:[#allocation7 + $0x54] sm:$0xf0]  ;;  %v4388_v7 = vld [vmem:[#allocation7 + $0x2c] sm:$0xf0] }
 0x113   :  { %v3569_v43 = vor.u32 %v4399_v10, %v3566_v17  ;;  %v3510_v10 = vld [vmem:[#allocation7 + $0x30] sm:$0xf0]  ;;  %v3516_v17 = vld [vmem:[#allocation7 + $0x28] sm:$0xf]  ;;  %v4389_v13 = vld [vmem:[#allocation7 + $0x34] sm:$0xf0] }
 0x114   :  { %v3518_v19 = vld [vmem:[#allocation7 + $0x38] sm:$0xf0] }
 0x115   :  { %v4593_v53 = vpop.eup %4592 }
 0x116   :  { %v768_v59 = vmul.f32 %v4593_v53, %v761_v54  ;;  %1333 = vmatpush.bf16.msrb.mxu3 %v3601_v30  ;;  %v3577_v53 = vor.u32 %v4402_v38, %v3574_v45  ;;  %v3581_v54 = vor.u32 %v4405_v52, %v3580_v51  ;;  %1296 = vmatpush.bf16.msrb.mxu0 %v3557_v1  ;;  %v3524_v51 = vld [vmem:[#allocation7 + $0x40] sm:$0xf]  ;;  %v4392_v52 = vld [vmem:[#allocation7 + $0x4c] sm:$0xf0]  ;;  %v4391_v1 = vld [vmem:[#allocation7 + $0x4c] sm:$0xf] }
 0x117   :  { %v3549_v30 = vor.u32 %v4397_v22, %v3548_v21  ;;  %v3553_v45 = vor.u32 %v4395_v33, %v3550_v35  ;;  %v4384_v33 = vld [vmem:[#allocation7 + $0xc] sm:$0xf0]  ;;  %v4382_v35 = vld [vmem:[#allocation7 + $0x4] sm:$0xf] }
 0x118   :  { %v771_v9 = vpack.c.bf16 %v768_v59, %v768_v59  ;;  %v4403_v59 = vld [vmem:[#allocation7 + $0xac] sm:$0xf]  ;;  %1308 = vmatpush.bf16.msrb.mxu1 %v3577_v53  ;;  %1321 = vmatpush.bf16.msrb.mxu2 %v3581_v54  ;;  %v4390_v53 = vld [vmem:[#allocation7 + $0x44] sm:$0xf] }
 0x11a   :  { %772 = vst [vmem:[%s5034_s6] sm:$0xf] %v771_v9  ;;  %975 = vmatmul.bf16.vlgmr.msra.gmra.mxu0 %v771_v9  ;;  %988 = vmatmul.bf16.vlgmr.msra.gmra.mxu1 %v771_v9 }
 0x11b   :  { %1001 = vmatmul.bf16.vlgmr.msra.gmra.mxu2 %v771_v9  ;;  %1014 = vmatmul.bf16.vlgmr.msra.gmra.mxu3 %v771_v9  ;;  %v3582_v9 = vld [vmem:[#allocation7 + $0xb8] sm:$0xf0] }
 0x11c   :  { %v3585_v60 = vor.u32 %v4403_v59, %v3582_v9  ;;  %1309 = vmatpush.bf16.msrb.mxu1 %v3561_v12  ;;  %1322 = vmatpush.bf16.msrb.mxu2 %v3565_v18  ;;  %v3525_v9 = vor.u32 %v4392_v52, %v3524_v51  ;;  %v3509_v12 = vor.u32 %v4388_v7, %v3508_v3  ;;  %v4386_v18 = vld [vmem:[#allocation7 + $0x24] sm:$0xf]  ;;  %v4385_v51 = vld [vmem:[#allocation7 + $0x14] sm:$0xf0] }
 0x11d   :  { %1297 = vmatpush.bf16.msrb.mxu0 %v3541_v15  ;;  %v3513_v8 = vor.u32 %v4386_v18, %v3510_v10  ;;  %v4387_v15 = vld [vmem:[#allocation7 + $0x2c] sm:$0xf] }
 0x11e   :  { %1334 = vmatpush.bf16.msrb.mxu3 %v3585_v60  ;;  %v3526_v60 = vld [vmem:[#allocation7 + $0x50] sm:$0xf0] }
 0x11f   :  { %v3529_v61 = vor.u32 %v4390_v53, %v3526_v60 }
 0x120   :  { %1310 = vmatpush.bf16.msrb.mxu1 %v3545_v29  ;;  %1323 = vmatpush.bf16.msrb.mxu2 %v3549_v30  ;;  %v3521_v29 = vor.u32 %v4387_v15, %v3518_v19  ;;  %v3492_v30 = vld [vmem:[#allocation7] sm:$0xf] }
 0x121   :  { %1298 = vmatpush.bf16.msrb.mxu0 %v3525_v9 }
 0x122   :  { %1335 = vmatpush.bf16.msrb.mxu3 %v3569_v43 }
 0x124   :  { %1311 = vmatpush.bf16.msrb.mxu1 %v3529_v61 }
 0x125   :  { %1299 = vmatpush.bf16.msrb.mxu0 %v3509_v12 }
 0x126   :  { %1336 = vmatpush.bf16.msrb.mxu3 %v3553_v45  ;;  %v3500_v45 = vld [vmem:[#allocation7 + $0x8] sm:$0xf] }
 0x128   :  { %1312 = vmatpush.bf16.msrb.mxu1 %v3513_v8 }
 0x197   :  { %v976_v25 = vpop.f32.mrf.mxu0  ;;  %v989_v27 = vpop.f32.mrf.mxu1 }
 0x198   :  { %v1026_v38 = vadd.f32 %v976_v25, %v4844_v14  ;;  %v1027_v41 = vadd.f32 %v989_v27, %v4847_v16  ;;  %v3533_v14 = vor.u32 %v4393_v56, %v3532_v0  ;;  %v3534_v16 = vld [vmem:[#allocation7 + $0x58] sm:$0xf0]  ;;  %v3517_v27 = vor.u32 %v4389_v13, %v3516_v17 }
 0x199   :  { %v3537_v11 = vor.u32 %v4391_v1, %v3534_v16 }
 0x19a   :  { %v3486_v54 = vmul.f32 -1.442695, %v1026_v38  ;;  %v3487_v59 = vmul.f32 -1.442695, %v1027_v41  ;;  %1324 = vmatpush.bf16.msrb.mxu2 %v3533_v14  ;;  %v3493_v38 = vor.u32 %v4384_v33, %v3492_v30  ;;  %v3494_v41 = vld [vmem:[#allocation7 + $0x10] sm:$0xf0] }
 0x19b   :  { %1337 = vmatpush.bf16.msrb.mxu3 %v3537_v11  ;;  %v3497_v53 = vor.u32 %v4382_v35, %v3494_v41 }
 0x19c   :  { %4594 = vpow2.f32 %v3486_v54  ;;  %v4383_v54 = vld [vmem:[#allocation7 + $0xc] sm:$0xf]  ;;  %1300 = vmatpush.bf16.msrb.mxu0 %v3493_v38 }
 0x19d   :  { %4596 = vpow2.f32 %v3487_v59  ;;  %v3502_v59 = vld [vmem:[#allocation7 + $0x18] sm:$0xf0]  ;;  %1313 = vmatpush.bf16.msrb.mxu1 %v3497_v53 }
 0x19e   :  { %v1002_v43 = vpop.f32.mrf.mxu2  ;;  %v1015_v4 = vpop.f32.mrf.mxu3  ;;  %1325 = vmatpush.bf16.msrb.mxu2 %v3517_v27  ;;  %v3505_v0 = vor.u32 %v4383_v54, %v3502_v59 }
 0x19f   :  { %v1029_v21 = vadd.f32 %v1015_v4, %v4857_v23  ;;  %v978_v22 = vpop.f32.mrf.mxu0  ;;  %v991_v25 = vpop.f32.mrf.mxu1  ;;  %v3501_v23 = vor.u32 %v4385_v51, %v3500_v45  ;;  %1338 = vmatpush.bf16.msrb.mxu3 %v3521_v29  ;;  %v1028_v11 = vadd.f32 %v1002_v43, %v4854_v20 }
 0x1a1   :  { %v3488_v52 = vmul.f32 -1.442695, %v1029_v21 }
 0x1a2   :  { %v4595_v9 = vpop.eup %4594  ;;  %1326 = vmatpush.bf16.msrb.mxu2 %v3501_v23 }
 0x1a3   :  { %v4597_v60 = vpop.eup %4596  ;;  %v1033_v61 = vadd.f32 1.0, %v4595_v9  ;;  %4598 = vpow2.f32 %v3488_v52  ;;  %1339 = vmatpush.bf16.msrb.mxu3 %v3505_v0 }
 0x1a4   :  { %v1052_v56 = vadd.f32 1.0, %v4597_v60 }
 0x1a5   :  { %4600 = vrcp.f32 %v1033_v61  ;;  %v1045_v8 = vand.u32 2147483648, %v1033_v61  ;;  %v1043_v19 = vand.u32 2147483647, %v1033_v61  ;;  %vm1039_vm14 = vweird.f32 %v1033_v61 }
 0x1a6   :  { %4602 = vrcp.f32 %v1052_v56  ;;  %v1004_v1 = vpop.f32.mrf.mxu2  ;;  %v1017_v14 = vpop.f32.mrf.mxu3  ;;  %v1064_v13 = vand.u32 2147483648, %v1052_v56  ;;  %v1062_v22 = vand.u32 2147483647, %v1052_v56  ;;  %vm1058_vm15 = vweird.f32 %v1052_v56 }
 0x1a7   :  { %v1046_v20 = vor.u32 1.1754944e-38, %v1045_v8  ;;  %vm1044_vm2 = vcmp.eq.f32.partialorder %v1043_v19, 8.507059e+37  ;;  %v4443_v8 = vld [vmem:[#allocation7 + $0xec] sm:$0xf]  ;;  %v3720_v19 = vld [vmem:[#allocation7 + $0xc0] sm:$0xf] }
 0x1a8   :  { %v1065_v30 = vor.u32 1.1754944e-38, %v1064_v13  ;;  %vm1063_vm3 = vcmp.eq.f32.partialorder %v1062_v22, 8.507059e+37  ;;  %v3746_v13 = vld [vmem:[#allocation7 + $0xf8] sm:$0xf0]  ;;  %v4438_v22 = vld [vmem:[#allocation7 + $0xc4] sm:$0xf] }
 0x1a9   :  { %v4599_v16 = vpop.eup %4598 }
 0x1aa   :  { %v1072_v3 = vadd.f32 1.0, %v4599_v16 }
 0x1ab   :  { %v4601_v7 = vpop.eup %4600 }
 0x1ac   :  { %v4603_v12 = vpop.eup %4602  ;;  %v1035_v18 = vmul.f32 %v4601_v7, %v1033_v61  ;;  %4604 = vrcp.f32 %v1072_v3  ;;  %vm1040_vm12 = vweird.f32 %v4601_v7  ;;  %v1084_v23 = vand.u32 2147483648, %v1072_v3 }
 0x1ad   :  { %v1054_v10 = vmul.f32 %v4603_v12, %v1052_v56  ;;  %4606 = vtanh.f32 %v1028_v11  ;;  %vm1059_vm13 = vweird.f32 %v4603_v12  ;;  %vm1041_vm0 = vmor %vm1039_vm14, %vm1040_vm12  ;;  %vm1078_vm5 = vweird.f32 %v1072_v3  ;;  %v4442_v11 = vld [vmem:[#allocation7 + $0xe4] sm:$0xf] }
 0x1ae   :  { %v1036_v17 = vsub.f32 1.0, %v1035_v18  ;;  %vm1060_vm1 = vmor %vm1058_vm15, %vm1059_vm13  ;;  %v1082_v60 = vand.u32 2147483647, %v1072_v3  ;;  %v1085_v0 = vor.u32 1.1754944e-38, %v1084_v23  ;;  %v3744_v18 = vld [vmem:[#allocation7 + $0xe8] sm:$0xf] }
 0x1af   :  { %v1055_v4 = vsub.f32 1.0, %v1054_v10  ;;  %v4445_v10 = vld [vmem:[#allocation7 + $0xf4] sm:$0xf0] }
 0x1b0   :  { %v1037_v15 = vmul.f32 %v4601_v7, %v1036_v17  ;;  %vm1083_vm7 = vcmp.eq.f32.partialorder %v1082_v60, 8.507059e+37 }
 0x1b1   :  { %v1056_v21 = vmul.f32 %v4603_v12, %v1055_v4  ;;  %v3745_v4 = vor.u32 %v4445_v10, %v3744_v18  ;;  %v4431_v10 = vld [vmem:[#allocation7 + $0x8c] sm:$0xf] }
 0x1b2   :  { %v4605_v25 = vpop.eup %4604  ;;  %v1038_v27 = vadd.f32 %v4601_v7, %v1037_v15  ;;  %v3749_v15 = vor.u32 %v4443_v8, %v3746_v13  ;;  %v3672_v8 = vld [vmem:[#allocation7 + $0x60] sm:$0xf]  ;;  %v4428_v13 = vld [vmem:[#allocation7 + $0x6c] sm:$0xf0] }
 0x1b3   :  { %v1057_v43 = vadd.f32 %v4603_v12, %v1056_v21  ;;  %v1074_v29 = vmul.f32 %v4605_v25, %v1072_v3  ;;  %v4607_v35 = vpop.eup %4606  ;;  %vm1079_vm4 = vweird.f32 %v4605_v25  ;;  %1645 = vmatpush.bf16.msra.mxu2 %v3745_v4  ;;  %v4440_v21 = vld [vmem:[#allocation7 + $0xcc] sm:$0xf0] }
 0x1b4   :  { %v1042_v33 = vsel %vm1041_vm0, %v4601_v7, %v1038_v27  ;;  %vm1080_vm6 = vmor %vm1078_vm5, %vm1079_vm4  ;;  %v4444_v7 = vld [vmem:[#allocation7 + $0xec] sm:$0xf0]  ;;  %1658 = vmatpush.bf16.msra.mxu3 %v3749_v15  ;;  %v3722_v27 = vld [vmem:[#allocation7 + $0xd0] sm:$0xf0] }
 0x1b5   :  { %v1047_v38 = vsel %vm1044_vm2, %v1046_v20, %v1042_v33  ;;  %v1061_v41 = vsel %vm1060_vm1, %v4603_v12, %v1057_v43  ;;  %v1075_v45 = vsub.f32 1.0, %v1074_v29  ;;  %v3738_v12 = vld [vmem:[#allocation7 + $0xf0] sm:$0xf0]  ;;  %v3728_v20 = vld [vmem:[#allocation7 + $0xc8] sm:$0xf]  ;;  %v3725_v29 = vor.u32 %v4438_v22, %v3722_v27 }
 0x1b6   :  { %v1066_v51 = vsel %vm1063_vm3, %v1065_v30, %v1061_v41  ;;  %v1090_v52 = vmul.f32 %v4607_v35, %v1047_v38  ;;  %v3741_v17 = vor.u32 %v4442_v11, %v3738_v12  ;;  %v4441_v43 = vld [vmem:[#allocation7 + $0xd4] sm:$0xf0]  ;;  %v4439_v33 = vld [vmem:[#allocation7 + $0xcc] sm:$0xf]  ;;  %v3730_v35 = vld [vmem:[#allocation7 + $0xd8] sm:$0xf0] }
 0x1b7   :  { %v1089_v53 = vmul.f32 %v1066_v51, %v4942_v37  ;;  %v1076_v54 = vmul.f32 %v4605_v25, %v1075_v45  ;;  %v3736_v37 = vld [vmem:[#allocation7 + $0xe0] sm:$0xf]  ;;  %v3729_v30 = vor.u32 %v4441_v43, %v3728_v20  ;;  %v3733_v38 = vor.u32 %v4439_v33, %v3730_v35  ;;  %v4436_v45 = vld [vmem:[#allocation7 + $0xac] sm:$0xf0]  ;;  %v4434_v51 = vld [vmem:[#allocation7 + $0xa4] sm:$0xf] }
 0x1b8   :  { %v3737_v3 = vor.u32 %v4444_v7, %v3736_v37  ;;  %1632 = vmatpush.bf16.msra.mxu1 %v3741_v17  ;;  %v3704_v41 = vld [vmem:[#allocation7 + $0xa0] sm:$0xf]  ;;  %v3690_v7 = vld [vmem:[#allocation7 + $0x90] sm:$0xf0]  ;;  %v3696_v11 = vld [vmem:[#allocation7 + $0x88] sm:$0xf] }
 0x1b9   :  { %v4953_v59 = vadd.f32 %v1090_v52, %v1089_v53  ;;  %v1077_v9 = vadd.f32 %v4605_v25, %v1076_v54  ;;  %1646 = vmatpush.bf16.msra.mxu2 %v3729_v30  ;;  %1659 = vmatpush.bf16.msra.mxu3 %v3733_v38  ;;  %v3705_v52 = vor.u32 %v4436_v45, %v3704_v41  ;;  %v3706_v53 = vld [vmem:[#allocation7 + $0xb0] sm:$0xf0]  ;;  %v3712_v54 = vld [vmem:[#allocation7 + $0xa8] sm:$0xf]  ;;  %v3698_v17 = vld [vmem:[#allocation7 + $0x98] sm:$0xf0] }
 0x1ba   :  { %1619 = vmatpush.bf16.msra.mxu0 %v3737_v3  ;;  %v3709_v23 = vor.u32 %v4434_v51, %v3706_v53  ;;  %v4433_v3 = vld [vmem:[#allocation7 + $0x94] sm:$0xf0]  ;;  %v3701_v4 = vor.u32 %v4431_v10, %v3698_v17  ;;  %v4426_v15 = vld [vmem:[#allocation7 + $0x64] sm:$0xf]  ;;  %v3680_v22 = vld [vmem:[#allocation7 + $0x68] sm:$0xf] }
 0x1bb   :  { %4608 = vtanh.f32 %v4953_v59  ;;  %v1081_v61 = vsel %vm1080_vm6, %v4605_v25, %v1077_v9  ;;  %v3721_v25 = vor.u32 %v4440_v21, %v3720_v19  ;;  %v4437_v9 = vld [vmem:[#allocation7 + $0xb4] sm:$0xf0]  ;;  %v3697_v18 = vor.u32 %v4433_v3, %v3696_v11  ;;  %v3674_v21 = vld [vmem:[#allocation7 + $0x70] sm:$0xf0]  ;;  %v4427_v30 = vld [vmem:[#allocation7 + $0x6c] sm:$0xf] }
 0x1bc   :  { %v1086_v1 = vsel %vm1083_vm7, %v1085_v0, %v1081_v61  ;;  %1633 = vmatpush.bf16.msra.mxu1 %v3725_v29  ;;  %v3713_v60 = vor.u32 %v4437_v9, %v3712_v54  ;;  %v4435_v61 = vld [vmem:[#allocation7 + $0xac] sm:$0xf]  ;;  %v3714_v0 = vld [vmem:[#allocation7 + $0xb8] sm:$0xf0]  ;;  %v3673_v19 = vor.u32 %v4428_v13, %v3672_v8  ;;  %v3677_v43 = vor.u32 %v4426_v15, %v3674_v21  ;;  %v3656_v45 = vld [vmem:[#allocation7 + $0x40] sm:$0xf] }
 0x1bd   :  { %v3682_v33 = vld [vmem:[#allocation7 + $0x78] sm:$0xf0]  ;;  %v4424_v51 = vld [vmem:[#allocation7 + $0x4c] sm:$0xf0]  ;;  %v3642_v11 = vld [vmem:[#allocation7 + $0x30] sm:$0xf0] }
 0x1be   :  { %1620 = vmatpush.bf16.msra.mxu0 %v3721_v25  ;;  %1647 = vmatpush.bf16.msra.mxu2 %v3713_v60  ;;  %v4429_v25 = vld [vmem:[#allocation7 + $0x74] sm:$0xf0]  ;;  %v3685_v41 = vor.u32 %v4427_v30, %v3682_v33  ;;  %v3657_v9 = vor.u32 %v4424_v51, %v3656_v45  ;;  %v3648_v3 = vld [vmem:[#allocation7 + $0x28] sm:$0xf]  ;;  %v3650_v8 = vld [vmem:[#allocation7 + $0x38] sm:$0xf0] }
 0x1bf   :  { %v3681_v29 = vor.u32 %v4429_v25, %v3680_v22  ;;  %v4421_v17 = vld [vmem:[#allocation7 + $0x34] sm:$0xf0]  ;;  %v3624_v25 = vld [vmem:[#allocation7] sm:$0xf]  ;;  %v3632_v30 = vld [vmem:[#allocation7 + $0x8] sm:$0xf] }
 0x1c0   :  { %1634 = vmatpush.bf16.msra.mxu1 %v3709_v23  ;;  %v3658_v23 = vld [vmem:[#allocation7 + $0x50] sm:$0xf0]  ;;  %v3649_v21 = vor.u32 %v4421_v17, %v3648_v3  ;;  %v4417_v33 = vld [vmem:[#allocation7 + $0x14] sm:$0xf0]  ;;  %v3634_v45 = vld [vmem:[#allocation7 + $0x18] sm:$0xf0] }
 0x1c1   :  { %v4609_v56 = vpop.eup %4608 }
 0x1c2   :  { %v1093_v14 = vmul.f32 %v4609_v56, %v1086_v1  ;;  %1621 = vmatpush.bf16.msra.mxu0 %v3705_v52  ;;  %v3717_v56 = vor.u32 %v4435_v61, %v3714_v0  ;;  %v3688_v1 = vld [vmem:[#allocation7 + $0x80] sm:$0xf]  ;;  %1648 = vmatpush.bf16.msra.mxu2 %v3697_v18  ;;  %v4422_v52 = vld [vmem:[#allocation7 + $0x44] sm:$0xf]  ;;  %v3664_v61 = vld [vmem:[#allocation7 + $0x48] sm:$0xf] }
 0x1c3   :  { %v3661_v60 = vor.u32 %v4422_v52, %v3658_v23  ;;  %v4425_v0 = vld [vmem:[#allocation7 + $0x54] sm:$0xf0] }
 0x1c4   :  { %v1096_v16 = vpack.c.bf16 %v1093_v14, %v1093_v14  ;;  %v4432_v14 = vld [vmem:[#allocation7 + $0x8c] sm:$0xf0]  ;;  %1660 = vmatpush.bf16.msra.mxu3 %v3717_v56  ;;  %v4423_v56 = vld [vmem:[#allocation7 + $0x4c] sm:$0xf] }
 0x1c5   :  { %v3689_v37 = vor.u32 %v4432_v14, %v3688_v1  ;;  %v3640_v1 = vld [vmem:[#allocation7 + $0x20] sm:$0xf]  ;;  %v4420_v14 = vld [vmem:[#allocation7 + $0x2c] sm:$0xf0] }
 0x1c6   :  { %3489 = vst [vmem:[%s5034_s6 + $0x4] sm:$0xf] %v1096_v16  ;;  %1301 = vmatmul.bf16.vlgmr.msrb.gmra.mxu0 %v1096_v16  ;;  %1314 = vmatmul.bf16.vlgmr.msrb.gmra.mxu1 %v1096_v16 }
 0x1c7   :  { %1327 = vmatmul.bf16.vlgmr.msrb.gmra.mxu2 %v1096_v16  ;;  %1340 = vmatmul.bf16.vlgmr.msrb.gmra.mxu3 %v1096_v16  ;;  %v4430_v16 = vld [vmem:[#allocation7 + $0x84] sm:$0xf] }
 0x1c8   :  { %v3693_v12 = vor.u32 %v4430_v16, %v3690_v7  ;;  %1622 = vmatpush.bf16.msra.mxu0 %v3689_v37  ;;  %1661 = vmatpush.bf16.msra.mxu3 %v3701_v4  ;;  %v3641_v37 = vor.u32 %v4420_v14, %v3640_v1  ;;  %v4418_v7 = vld [vmem:[#allocation7 + $0x24] sm:$0xf]  ;;  %v4419_v4 = vld [vmem:[#allocation7 + $0x2c] sm:$0xf] }
 0x1c9   :  { %1649 = vmatpush.bf16.msra.mxu2 %v3681_v29  ;;  %v3645_v10 = vor.u32 %v4418_v7, %v3642_v11  ;;  %v3653_v22 = vor.u32 %v4419_v4, %v3650_v8  ;;  %v3626_v29 = vld [vmem:[#allocation7 + $0x10] sm:$0xf0] }
 0x1ca   :  { %1635 = vmatpush.bf16.msra.mxu1 %v3693_v12 }
 0x1cc   :  { %1623 = vmatpush.bf16.msra.mxu0 %v3673_v19  ;;  %1662 = vmatpush.bf16.msra.mxu3 %v3685_v41  ;;  %v4415_v41 = vld [vmem:[#allocation7 + $0xc] sm:$0xf] }
 0x1ce   :  { %1636 = vmatpush.bf16.msra.mxu1 %v3677_v43 }
 0x1d0   :  { %1624 = vmatpush.bf16.msra.mxu0 %v3657_v9 }
 0x1d2   :  { %1637 = vmatpush.bf16.msra.mxu1 %v3661_v60 }
 0x1d4   :  { %1625 = vmatpush.bf16.msra.mxu0 %v3641_v37 }
 0x1d6   :  { %1638 = vmatpush.bf16.msra.mxu1 %v3645_v10 }
 0x243   :  { %v1302_v27 = vpop.f32.mrf.mxu0  ;;  %v1315_v20 = vpop.f32.mrf.mxu1 }
 0x244   :  { %v1352_v35 = vadd.f32 %v1302_v27, %v4860_v24  ;;  %v1353_v38 = vadd.f32 %v1315_v20, %v4863_v26  ;;  %v3665_v24 = vor.u32 %v4425_v0, %v3664_v61  ;;  %v3666_v26 = vld [vmem:[#allocation7 + $0x58] sm:$0xf0]  ;;  %v4416_v27 = vld [vmem:[#allocation7 + $0xc] sm:$0xf0]  ;;  %v4414_v20 = vld [vmem:[#allocation7 + $0x4] sm:$0xf] }
 0x245   :  { %v3669_v16 = vor.u32 %v4423_v56, %v3666_v26  ;;  %v3625_v43 = vor.u32 %v4416_v27, %v3624_v25 }
 0x246   :  { %v3618_v53 = vmul.f32 -1.442695, %v1352_v35  ;;  %v3619_v54 = vmul.f32 -1.442695, %v1353_v38  ;;  %1650 = vmatpush.bf16.msra.mxu2 %v3665_v24  ;;  %v3629_v38 = vor.u32 %v4414_v20, %v3626_v29 }
 0x247   :  { %1663 = vmatpush.bf16.msra.mxu3 %v3669_v16  ;;  %1626 = vmatpush.bf16.msra.mxu0 %v3625_v43 }
 0x248   :  { %4610 = vpow2.f32 %v3618_v53  ;;  %1639 = vmatpush.bf16.msra.mxu1 %v3629_v38 }
 0x249   :  { %4612 = vpow2.f32 %v3619_v54  ;;  %v3637_v54 = vor.u32 %v4415_v41, %v3634_v45 }
 0x24a   :  { %v1328_v12 = vpop.f32.mrf.mxu2  ;;  %v1341_v18 = vpop.f32.mrf.mxu3  ;;  %1651 = vmatpush.bf16.msra.mxu2 %v3649_v21 }
 0x24b   :  { %v1355_v13 = vadd.f32 %v1341_v18, %v4869_v31  ;;  %v1304_v15 = vpop.f32.mrf.mxu0  ;;  %v1317_v19 = vpop.f32.mrf.mxu1  ;;  %v3633_v31 = vor.u32 %v4417_v33, %v3632_v30  ;;  %1664 = vmatpush.bf16.msra.mxu3 %v3653_v22  ;;  %v1354_v24 = vadd.f32 %v1328_v12, %v4866_v28 }
 0x24d   :  { %v3620_v35 = vmul.f32 -1.442695, %v1355_v13 }
 0x24e   :  { %v4611_v51 = vpop.eup %4610  ;;  %1652 = vmatpush.bf16.msra.mxu2 %v3633_v31 }
 0x24f   :  { %v4613_v52 = vpop.eup %4612  ;;  %v1359_v53 = vadd.f32 1.0, %v4611_v51  ;;  %4614 = vpow2.f32 %v3620_v35  ;;  %1665 = vmatpush.bf16.msra.mxu3 %v3637_v54 }
 0x250   :  { %v1378_v9 = vadd.f32 1.0, %v4613_v52 }
 0x251   :  { %4616 = vrcp.f32 %v1359_v53  ;;  %v1371_v7 = vand.u32 2147483648, %v1359_v53  ;;  %v1369_v18 = vand.u32 2147483647, %v1359_v53  ;;  %vm1365_vm10 = vweird.f32 %v1359_v53 }
 0x252   :  { %4618 = vrcp.f32 %v1378_v9  ;;  %v1330_v23 = vpop.f32.mrf.mxu2  ;;  %v1343_v60 = vpop.f32.mrf.mxu3  ;;  %v1390_v11 = vand.u32 2147483648, %v1378_v9  ;;  %v1388_v17 = vand.u32 2147483647, %v1378_v9  ;;  %vm1384_vm11 = vweird.f32 %v1378_v9 }
 0x253   :  { %v1372_v28 = vor.u32 1.1754944e-38, %v1371_v7  ;;  %vm1370_vm14 = vcmp.eq.f32.partialorder %v1369_v18, 8.507059e+37  ;;  %v4474_v23 = vld [vmem:[#allocation7 + $0xe4] sm:$0xf]  ;;  %v4472_v7 = vld [vmem:[#allocation7 + $0xcc] sm:$0xf0] }
 0x254   :  { %v1391_v15 = vor.u32 1.1754944e-38, %v1390_v11  ;;  %vm1389_vm15 = vcmp.eq.f32.partialorder %v1388_v17, 8.507059e+37  ;;  %v4470_v11 = vld [vmem:[#allocation7 + $0xc4] sm:$0xf]  ;;  %v3854_v18 = vld [vmem:[#allocation7 + $0xd0] sm:$0xf0] }
 0x255   :  { %v4615_v61 = vpop.eup %4614  ;;  %v4473_v17 = vld [vmem:[#allocation7 + $0xd4] sm:$0xf0] }
 0x256   :  { %v1398_v0 = vadd.f32 1.0, %v4615_v61  ;;  %v3870_v61 = vld [vmem:[#allocation7 + $0xf0] sm:$0xf0] }
 0x257   :  { %v4617_v56 = vpop.eup %4616 }
 0x258   :  { %v4619_v26 = vpop.eup %4618  ;;  %v1361_v1 = vmul.f32 %v4617_v56, %v1359_v53  ;;  %4620 = vrcp.f32 %v1398_v0  ;;  %vm1366_vm8 = vweird.f32 %v4617_v56  ;;  %v1410_v38 = vand.u32 2147483648, %v1398_v0 }
 0x259   :  { %v1380_v14 = vmul.f32 %v4619_v26, %v1378_v9  ;;  %4622 = vtanh.f32 %v1354_v24  ;;  %vm1385_vm9 = vweird.f32 %v4619_v26  ;;  %vm1367_vm12 = vmor %vm1365_vm10, %vm1366_vm8  ;;  %vm1404_vm1 = vweird.f32 %v1398_v0  ;;  %v4476_v9 = vld [vmem:[#allocation7 + $0xec] sm:$0xf0] }
 0x25a   :  { %v1362_v16 = vsub.f32 1.0, %v1361_v1  ;;  %vm1386_vm13 = vmor %vm1384_vm11, %vm1385_vm9  ;;  %v1408_v41 = vand.u32 2147483647, %v1398_v0  ;;  %v1411_v51 = vor.u32 1.1754944e-38, %v1410_v38  ;;  %v3873_v24 = vor.u32 %v4474_v23, %v3870_v61  ;;  %v4475_v1 = vld [vmem:[#allocation7 + $0xec] sm:$0xf] }
 0x25b   :  { %v1381_v37 = vsub.f32 1.0, %v1380_v14  ;;  %v3878_v14 = vld [vmem:[#allocation7 + $0xf8] sm:$0xf0]  ;;  %v4463_v23 = vld [vmem:[#allocation7 + $0x8c] sm:$0xf] }
 0x25c   :  { %v1363_v3 = vmul.f32 %v4617_v56, %v1362_v16  ;;  %vm1409_vm3 = vcmp.eq.f32.partialorder %v1408_v41, 8.507059e+37  ;;  %v3881_v16 = vor.u32 %v4475_v1, %v3878_v14  ;;  %1958 = vmatpush.bf16.msrb.mxu1 %v3873_v24  ;;  %v3820_v41 = vld [vmem:[#allocation7 + $0x80] sm:$0xf]  ;;  %v4458_v24 = vld [vmem:[#allocation7 + $0x64] sm:$0xf] }
 0x25d   :  { %v1382_v10 = vmul.f32 %v4619_v26, %v1381_v37  ;;  %v3852_v37 = vld [vmem:[#allocation7 + $0xc0] sm:$0xf]  ;;  %v3806_v1 = vld [vmem:[#allocation7 + $0x70] sm:$0xf0]  ;;  %v3812_v14 = vld [vmem:[#allocation7 + $0x68] sm:$0xf] }
 0x25e   :  { %v4621_v4 = vpop.eup %4620  ;;  %v1364_v8 = vadd.f32 %v4617_v56, %v1363_v3  ;;  %1984 = vmatpush.bf16.msrb.mxu3 %v3881_v16  ;;  %v3853_v3 = vor.u32 %v4472_v7, %v3852_v37  ;;  %v4461_v16 = vld [vmem:[#allocation7 + $0x74] sm:$0xf0] }
 0x25f   :  { %v1383_v12 = vadd.f32 %v4619_v26, %v1382_v10  ;;  %v1400_v13 = vmul.f32 %v4621_v4, %v1398_v0  ;;  %v4623_v21 = vpop.eup %4622  ;;  %vm1405_vm0 = vweird.f32 %v4621_v4  ;;  %v3876_v0 = vld [vmem:[#allocation7 + $0xe8] sm:$0xf] }
 0x260   :  { %v1368_v19 = vsel %vm1367_vm12, %v4617_v56, %v1364_v8  ;;  %vm1406_vm2 = vmor %vm1404_vm1, %vm1405_vm0  ;;  %v4477_v56 = vld [vmem:[#allocation7 + $0xf4] sm:$0xf0]  ;;  %v3860_v10 = vld [vmem:[#allocation7 + $0xc8] sm:$0xf] }
 0x261   :  { %v1373_v22 = vsel %vm1370_vm14, %v1372_v28, %v1368_v19  ;;  %v1387_v25 = vsel %vm1386_vm13, %v4619_v26, %v1383_v12  ;;  %v1401_v27 = vsub.f32 1.0, %v1400_v13  ;;  %v3877_v26 = vor.u32 %v4477_v56, %v3876_v0  ;;  %v4471_v28 = vld [vmem:[#allocation7 + $0xcc] sm:$0xf]  ;;  %v3862_v12 = vld [vmem:[#allocation7 + $0xd8] sm:$0xf0] }
 0x262   :  { %v1392_v20 = vsel %vm1389_vm15, %v1391_v15, %v1387_v25  ;;  %v1416_v43 = vmul.f32 %v4623_v21, %v1373_v22  ;;  %v3861_v8 = vor.u32 %v4473_v17, %v3860_v10  ;;  %v3865_v13 = vor.u32 %v4471_v28, %v3862_v12  ;;  %v3836_v15 = vld [vmem:[#allocation7 + $0xa0] sm:$0xf]  ;;  %v4468_v19 = vld [vmem:[#allocation7 + $0xac] sm:$0xf0]  ;;  %v4466_v21 = vld [vmem:[#allocation7 + $0xa4] sm:$0xf] }
 0x263   :  { %v1415_v29 = vmul.f32 %v1392_v20, %v4953_v59  ;;  %v1402_v30 = vmul.f32 %v4621_v4, %v1401_v27  ;;  %v3868_v59 = vld [vmem:[#allocation7 + $0xe0] sm:$0xf]  ;;  %1971 = vmatpush.bf16.msrb.mxu2 %v3877_v26  ;;  %v3837_v22 = vor.u32 %v4468_v19, %v3836_v15  ;;  %v3838_v25 = vld [vmem:[#allocation7 + $0xb0] sm:$0xf0]  ;;  %v3844_v27 = vld [vmem:[#allocation7 + $0xa8] sm:$0xf] }
 0x264   :  { %v3869_v60 = vor.u32 %v4476_v9, %v3868_v59  ;;  %1985 = vmatpush.bf16.msrb.mxu3 %v3865_v13  ;;  %v4469_v20 = vld [vmem:[#allocation7 + $0xb4] sm:$0xf0]  ;;  %v3804_v0 = vld [vmem:[#allocation7 + $0x60] sm:$0xf]  ;;  %v4460_v56 = vld [vmem:[#allocation7 + $0x6c] sm:$0xf0] }
 0x265   :  { %v4964_v33 = vadd.f32 %v1416_v43, %v1415_v29  ;;  %v1403_v35 = vadd.f32 %v4621_v4, %v1402_v30  ;;  %v3841_v43 = vor.u32 %v4466_v21, %v3838_v25  ;;  %v3845_v29 = vor.u32 %v4469_v20, %v3844_v27  ;;  %v4467_v30 = vld [vmem:[#allocation7 + $0xac] sm:$0xf]  ;;  %v3814_v10 = vld [vmem:[#allocation7 + $0x78] sm:$0xf0]  ;;  %v3788_v28 = vld [vmem:[#allocation7 + $0x40] sm:$0xf] }
 0x266   :  { %1945 = vmatpush.bf16.msrb.mxu0 %v3869_v60  ;;  %v3830_v60 = vld [vmem:[#allocation7 + $0x98] sm:$0xf0]  ;;  %v3805_v26 = vor.u32 %v4460_v56, %v3804_v0  ;;  %v4456_v12 = vld [vmem:[#allocation7 + $0x4c] sm:$0xf0]  ;;  %v4454_v13 = vld [vmem:[#allocation7 + $0x44] sm:$0xf] }
 0x267   :  { %4624 = vtanh.f32 %v4964_v33  ;;  %v1407_v45 = vsel %vm1406_vm2, %v4621_v4, %v1403_v35  ;;  %v3857_v4 = vor.u32 %v4470_v11, %v3854_v18  ;;  %1972 = vmatpush.bf16.msrb.mxu2 %v3861_v8  ;;  %v3846_v35 = vld [vmem:[#allocation7 + $0xb8] sm:$0xf0]  ;;  %v3833_v61 = vor.u32 %v4463_v23, %v3830_v60  ;;  %v4459_v18 = vld [vmem:[#allocation7 + $0x6c] sm:$0xf]  ;;  %v3796_v27 = vld [vmem:[#allocation7 + $0x48] sm:$0xf] }
 0x268   :  { %v1412_v52 = vsel %vm1409_vm3, %v1411_v51, %v1407_v45  ;;  %v3849_v38 = vor.u32 %v4467_v30, %v3846_v35  ;;  %v4464_v45 = vld [vmem:[#allocation7 + $0x8c] sm:$0xf0]  ;;  %v4462_v51 = vld [vmem:[#allocation7 + $0x84] sm:$0xf]  ;;  %v3809_v11 = vor.u32 %v4458_v24, %v3806_v1  ;;  %v3817_v8 = vor.u32 %v4459_v18, %v3814_v10  ;;  %v4457_v20 = vld [vmem:[#allocation7 + $0x54] sm:$0xf0] }
 0x269   :  { %1959 = vmatpush.bf16.msrb.mxu1 %v3857_v4  ;;  %v3789_v21 = vor.u32 %v4456_v12, %v3788_v28  ;;  %v4452_v30 = vld [vmem:[#allocation7 + $0x2c] sm:$0xf0]  ;;  %v3756_v24 = vld [vmem:[#allocation7] sm:$0xf]  ;;  %v4446_v1 = vld [vmem:[#allocation7 + $0x4] sm:$0xf] }
 0x26a   :  { %1946 = vmatpush.bf16.msrb.mxu0 %v3853_v3  ;;  %1986 = vmatpush.bf16.msrb.mxu3 %v3849_v38  ;;  %v3813_v3 = vor.u32 %v4461_v16, %v3812_v14  ;;  %v3758_v16 = vld [vmem:[#allocation7 + $0x10] sm:$0xf0]  ;;  %v4447_v18 = vld [vmem:[#allocation7 + $0xc] sm:$0xf]  ;;  %v3766_v10 = vld [vmem:[#allocation7 + $0x18] sm:$0xf0] }
 0x26b   :  { %1973 = vmatpush.bf16.msrb.mxu2 %v3845_v29  ;;  %v3772_v29 = vld [vmem:[#allocation7 + $0x20] sm:$0xf]  ;;  %v3769_v28 = vor.u32 %v4447_v18, %v3766_v10 }
 0x26c   :  { %v3773_v38 = vor.u32 %v4452_v30, %v3772_v29 }
 0x26d   :  { %v4625_v31 = vpop.eup %4624  ;;  %1960 = vmatpush.bf16.msrb.mxu1 %v3841_v43  ;;  %v4455_v43 = vld [vmem:[#allocation7 + $0x4c] sm:$0xf] }
 0x26e   :  { %v1419_v53 = vmul.f32 %v4625_v31, %v1412_v52  ;;  %1947 = vmatpush.bf16.msrb.mxu0 %v3837_v22  ;;  %v3821_v31 = vor.u32 %v4464_v45, %v3820_v41  ;;  %v3822_v52 = vld [vmem:[#allocation7 + $0x90] sm:$0xf0]  ;;  %1987 = vmatpush.bf16.msrb.mxu3 %v3833_v61  ;;  %v4450_v41 = vld [vmem:[#allocation7 + $0x24] sm:$0xf] }
 0x26f   :  { %v3825_v59 = vor.u32 %v4462_v51, %v3822_v52  ;;  %v3790_v22 = vld [vmem:[#allocation7 + $0x50] sm:$0xf0]  ;;  %v3780_v51 = vld [vmem:[#allocation7 + $0x28] sm:$0xf] }
 0x270   :  { %v1422_v54 = vpack.c.bf16 %v1419_v53, %v1419_v53  ;;  %v3828_v53 = vld [vmem:[#allocation7 + $0x88] sm:$0xf]  ;;  %v3793_v25 = vor.u32 %v4454_v13, %v3790_v22  ;;  %v3774_v45 = vld [vmem:[#allocation7 + $0x30] sm:$0xf0] }
 0x271   :  { %1961 = vmatpush.bf16.msrb.mxu1 %v3825_v59  ;;  %v4451_v59 = vld [vmem:[#allocation7 + $0x2c] sm:$0xf] }
 0x272   :  { %3621 = vst [vmem:[%s5034_s6 + $0x8] sm:$0xf] %v1422_v54  ;;  %1627 = vmatmul.bf16.vlgmr.msra.gmra.mxu0 %v1422_v54  ;;  %1640 = vmatmul.bf16.vlgmr.msra.gmra.mxu1 %v1422_v54 }
 0x273   :  { %1653 = vmatmul.bf16.vlgmr.msra.gmra.mxu2 %v1422_v54  ;;  %1666 = vmatmul.bf16.vlgmr.msra.gmra.mxu3 %v1422_v54  ;;  %v4465_v54 = vld [vmem:[#allocation7 + $0x94] sm:$0xf0] }
 0x274   :  { %v3829_v9 = vor.u32 %v4465_v54, %v3828_v53  ;;  %1948 = vmatpush.bf16.msrb.mxu0 %v3821_v31  ;;  %1988 = vmatpush.bf16.msrb.mxu3 %v3817_v8  ;;  %v3777_v53 = vor.u32 %v4450_v41, %v3774_v45  ;;  %v4453_v54 = vld [vmem:[#allocation7 + $0x34] sm:$0xf0] }
 0x275   :  { %1962 = vmatpush.bf16.msrb.mxu1 %v3809_v11  ;;  %v3781_v0 = vor.u32 %v4453_v54, %v3780_v51 }
 0x276   :  { %1974 = vmatpush.bf16.msrb.mxu2 %v3829_v9  ;;  %v3782_v9 = vld [vmem:[#allocation7 + $0x38] sm:$0xf0] }
 0x277   :  { %v3785_v56 = vor.u32 %v4451_v59, %v3782_v9 }
 0x278   :  { %1949 = vmatpush.bf16.msrb.mxu0 %v3805_v26  ;;  %v4448_v26 = vld [vmem:[#allocation7 + $0xc] sm:$0xf0] }
 0x279   :  { %1963 = vmatpush.bf16.msrb.mxu1 %v3793_v25  ;;  %v3757_v14 = vor.u32 %v4448_v26, %v3756_v24 }
 0x27a   :  { %1975 = vmatpush.bf16.msrb.mxu2 %v3813_v3  ;;  %v3761_v3 = vor.u32 %v4446_v1, %v3758_v16 }
 0x27c   :  { %1950 = vmatpush.bf16.msrb.mxu0 %v3789_v21 }
 0x27d   :  { %1964 = vmatpush.bf16.msrb.mxu1 %v3777_v53 }
 0x280   :  { %1951 = vmatpush.bf16.msrb.mxu0 %v3773_v38 }
 0x281   :  { %1965 = vmatpush.bf16.msrb.mxu1 %v3761_v3 }
 0x284   :  { %1952 = vmatpush.bf16.msrb.mxu0 %v3757_v14 }
 0x2ef   :  { %v1628_v37 = vpop.f32.mrf.mxu0  ;;  %v1641_v7 = vpop.f32.mrf.mxu1 }
 0x2f0   :  { %v1678_v17 = vadd.f32 %v1628_v37, %v4872_v32  ;;  %v1679_v4 = vadd.f32 %v1641_v7, %v4875_v34  ;;  %v3797_v32 = vor.u32 %v4457_v20, %v3796_v27  ;;  %v3798_v34 = vld [vmem:[#allocation7 + $0x58] sm:$0xf0]  ;;  %v3764_v37 = vld [vmem:[#allocation7 + $0x8] sm:$0xf]  ;;  %v4449_v7 = vld [vmem:[#allocation7 + $0x14] sm:$0xf0] }
 0x2f1   :  { %v3801_v35 = vor.u32 %v4455_v43, %v3798_v34 }
 0x2f2   :  { %v3750_v15 = vmul.f32 -1.442695, %v1678_v17  ;;  %v3751_v19 = vmul.f32 -1.442695, %v1679_v4  ;;  %1976 = vmatpush.bf16.msrb.mxu2 %v3797_v32 }
 0x2f3   :  { %1989 = vmatpush.bf16.msrb.mxu3 %v3801_v35 }
 0x2f4   :  { %4626 = vpow2.f32 %v3750_v15 }
 0x2f5   :  { %4628 = vpow2.f32 %v3751_v19 }
 0x2f6   :  { %v1654_v31 = vpop.f32.mrf.mxu2  ;;  %v1667_v52 = vpop.f32.mrf.mxu3  ;;  %1977 = vmatpush.bf16.msrb.mxu2 %v3781_v0 }
 0x2f7   :  { %v1681_v23 = vadd.f32 %v1667_v52, %v4881_v39  ;;  %v1630_v60 = vpop.f32.mrf.mxu0  ;;  %v1643_v61 = vpop.f32.mrf.mxu1  ;;  %v3765_v39 = vor.u32 %v4449_v7, %v3764_v37  ;;  %1990 = vmatpush.bf16.msrb.mxu3 %v3785_v56  ;;  %v1680_v25 = vadd.f32 %v1654_v31, %v4878_v36 }
 0x2f9   :  { %v3752_v11 = vmul.f32 -1.442695, %v1681_v23 }
 0x2fa   :  { %v4627_v17 = vpop.eup %4626  ;;  %1978 = vmatpush.bf16.msrb.mxu2 %v3765_v39  ;;  %v4508_v39 = vld [vmem:[#allocation7 + $0xec] sm:$0xf0] }
 0x2fb   :  { %v4629_v4 = vpop.eup %4628  ;;  %v1685_v8 = vadd.f32 1.0, %v4627_v17  ;;  %4630 = vpow2.f32 %v3752_v11  ;;  %1991 = vmatpush.bf16.msrb.mxu3 %v3769_v28  ;;  %v4002_v28 = vld [vmem:[#allocation7 + $0xf0] sm:$0xf0] }
 0x2fc   :  { %v1704_v12 = vadd.f32 1.0, %v4629_v4  ;;  %v4506_v4 = vld [vmem:[#allocation7 + $0xe4] sm:$0xf] }
 0x2fd   :  { %4632 = vrcp.f32 %v1685_v8  ;;  %v1697_v29 = vand.u32 2147483648, %v1685_v8  ;;  %v1695_v38 = vand.u32 2147483647, %v1685_v8  ;;  %vm1691_vm6 = vweird.f32 %v1685_v8 }
 0x2fe   :  { %4634 = vrcp.f32 %v1704_v12  ;;  %v1656_v13 = vpop.f32.mrf.mxu2  ;;  %v1669_v15 = vpop.f32.mrf.mxu3  ;;  %v1716_v30 = vand.u32 2147483648, %v1704_v12  ;;  %v1714_v45 = vand.u32 2147483647, %v1704_v12  ;;  %vm1710_vm7 = vweird.f32 %v1704_v12 }
 0x2ff   :  { %v1698_v36 = vor.u32 1.1754944e-38, %v1697_v29  ;;  %vm1696_vm10 = vcmp.eq.f32.partialorder %v1695_v38, 8.507059e+37  ;;  %v4509_v13 = vld [vmem:[#allocation7 + $0xf4] sm:$0xf0]  ;;  %v4005_v15 = vor.u32 %v4506_v4, %v4002_v28  ;;  %v3992_v29 = vld [vmem:[#allocation7 + $0xc8] sm:$0xf] }
 0x300   :  { %v1717_v54 = vor.u32 1.1754944e-38, %v1716_v30  ;;  %vm1715_vm11 = vcmp.eq.f32.partialorder %v1714_v45, 8.507059e+37  ;;  %v4505_v30 = vld [vmem:[#allocation7 + $0xd4] sm:$0xf0]  ;;  %v3994_v45 = vld [vmem:[#allocation7 + $0xd8] sm:$0xf0] }
 0x301   :  { %v4631_v19 = vpop.eup %4630  ;;  %2284 = vmatpush.bf16.msra.mxu1 %v4005_v15  ;;  %v3993_v38 = vor.u32 %v4505_v30, %v3992_v29  ;;  %v4492_v4 = vld [vmem:[#allocation7 + $0x6c] sm:$0xf0]  ;;  %v4493_v15 = vld [vmem:[#allocation7 + $0x74] sm:$0xf0]  ;;  %v3920_v29 = vld [vmem:[#allocation7 + $0x40] sm:$0xf] }
 0x302   :  { %v1724_v21 = vadd.f32 1.0, %v4631_v19  ;;  %v4488_v30 = vld [vmem:[#allocation7 + $0x4c] sm:$0xf0] }
 0x303   :  { %v4633_v22 = vpop.eup %4632 }
 0x304   :  { %v4635_v27 = vpop.eup %4634  ;;  %v1687_v20 = vmul.f32 %v4633_v22, %v1685_v8  ;;  %4636 = vrcp.f32 %v1724_v21  ;;  %vm1692_vm4 = vweird.f32 %v4633_v22  ;;  %v1736_v16 = vand.u32 2147483648, %v1724_v21 }
 0x305   :  { %v1706_v43 = vmul.f32 %v4635_v27, %v1704_v12  ;;  %4638 = vtanh.f32 %v1680_v25  ;;  %vm1711_vm5 = vweird.f32 %v4635_v27  ;;  %vm1693_vm8 = vmor %vm1691_vm6, %vm1692_vm4  ;;  %vm1730_vm13 = vweird.f32 %v1724_v21  ;;  %v4008_v12 = vld [vmem:[#allocation7 + $0xe8] sm:$0xf] }
 0x306   :  { %v1688_v32 = vsub.f32 1.0, %v1687_v20  ;;  %vm1712_vm9 = vmor %vm1710_vm7, %vm1711_vm5  ;;  %v1734_v37 = vand.u32 2147483647, %v1724_v21  ;;  %v1737_v11 = vor.u32 1.1754944e-38, %v1736_v16  ;;  %v4009_v19 = vor.u32 %v4509_v13, %v4008_v12  ;;  %v4504_v20 = vld [vmem:[#allocation7 + $0xcc] sm:$0xf0] }
 0x307   :  { %v1707_v34 = vsub.f32 1.0, %v1706_v43  ;;  %v4502_v43 = vld [vmem:[#allocation7 + $0xc4] sm:$0xf]  ;;  %v3938_v12 = vld [vmem:[#allocation7 + $0x70] sm:$0xf0] }
 0x308   :  { %v1689_v35 = vmul.f32 %v4633_v22, %v1688_v32  ;;  %vm1735_vm15 = vcmp.eq.f32.partialorder %v1734_v37, 8.507059e+37  ;;  %2297 = vmatpush.bf16.msra.mxu2 %v4009_v19  ;;  %v3954_v37 = vld [vmem:[#allocation7 + $0x90] sm:$0xf0]  ;;  %v3944_v13 = vld [vmem:[#allocation7 + $0x68] sm:$0xf] }
 0x309   :  { %v1708_v41 = vmul.f32 %v4635_v27, %v1707_v34  ;;  %v3986_v34 = vld [vmem:[#allocation7 + $0xd0] sm:$0xf0] }
 0x30a   :  { %v4637_v51 = vpop.eup %4636  ;;  %v1690_v52 = vadd.f32 %v4633_v22, %v1689_v35  ;;  %v3989_v35 = vor.u32 %v4502_v43, %v3986_v34 }
 0x30b   :  { %v1709_v31 = vadd.f32 %v4635_v27, %v1708_v41  ;;  %v1726_v53 = vmul.f32 %v4637_v51, %v1724_v21  ;;  %v4639_v9 = vpop.eup %4638  ;;  %vm1731_vm12 = vweird.f32 %v4637_v51  ;;  %v4507_v21 = vld [vmem:[#allocation7 + $0xec] sm:$0xf] }
 0x30c   :  { %v1694_v59 = vsel %vm1693_vm8, %v4633_v22, %v1690_v52  ;;  %vm1732_vm14 = vmor %vm1730_vm13, %vm1731_vm12  ;;  %v4010_v22 = vld [vmem:[#allocation7 + $0xf8] sm:$0xf0]  ;;  %v4503_v41 = vld [vmem:[#allocation7 + $0xcc] sm:$0xf]  ;;  %2285 = vmatpush.bf16.msra.mxu1 %v3989_v35  ;;  %2298 = vmatpush.bf16.msra.mxu2 %v3993_v38 }
 0x30d   :  { %v1699_v23 = vsel %vm1696_vm10, %v1698_v36, %v1694_v59  ;;  %v1713_v60 = vsel %vm1712_vm9, %v4635_v27, %v1709_v31  ;;  %v1727_v61 = vsub.f32 1.0, %v1726_v53  ;;  %v4013_v25 = vor.u32 %v4507_v21, %v4010_v22  ;;  %v3984_v27 = vld [vmem:[#allocation7 + $0xc0] sm:$0xf]  ;;  %v4500_v36 = vld [vmem:[#allocation7 + $0xac] sm:$0xf0] }
 0x30e   :  { %v1718_v0 = vsel %vm1715_vm11, %v1717_v54, %v1713_v60  ;;  %v1742_v56 = vmul.f32 %v4639_v9, %v1699_v23  ;;  %v3985_v32 = vor.u32 %v4504_v20, %v3984_v27  ;;  %v3968_v52 = vld [vmem:[#allocation7 + $0xa0] sm:$0xf]  ;;  %v4498_v31 = vld [vmem:[#allocation7 + $0xa4] sm:$0xf]  ;;  %v3970_v54 = vld [vmem:[#allocation7 + $0xb0] sm:$0xf0] }
 0x30f   :  { %v1741_v24 = vmul.f32 %v1718_v0, %v4964_v33  ;;  %v1728_v26 = vmul.f32 %v4637_v51, %v1727_v61  ;;  %v4000_v33 = vld [vmem:[#allocation7 + $0xe0] sm:$0xf]  ;;  %2310 = vmatpush.bf16.msra.mxu3 %v4013_v25  ;;  %v3969_v53 = vor.u32 %v4500_v36, %v3968_v52  ;;  %v3976_v59 = vld [vmem:[#allocation7 + $0xa8] sm:$0xf]  ;;  %v4501_v9 = vld [vmem:[#allocation7 + $0xb4] sm:$0xf0]  ;;  %v3973_v23 = vor.u32 %v4498_v31, %v3970_v54 }
 0x310   :  { %v4001_v8 = vor.u32 %v4508_v39, %v4000_v33  ;;  %v3977_v60 = vor.u32 %v4501_v9, %v3976_v59  ;;  %v4499_v61 = vld [vmem:[#allocation7 + $0xac] sm:$0xf]  ;;  %v3978_v0 = vld [vmem:[#allocation7 + $0xb8] sm:$0xf0]  ;;  %v3936_v39 = vld [vmem:[#allocation7 + $0x60] sm:$0xf]  ;;  %v3945_v25 = vor.u32 %v4493_v15, %v3944_v13 }
 0x311   :  { %v4975_v1 = vadd.f32 %v1742_v56, %v1741_v24  ;;  %v1729_v14 = vadd.f32 %v4637_v51, %v1728_v26  ;;  %v3981_v56 = vor.u32 %v4499_v61, %v3978_v0  ;;  %2286 = vmatpush.bf16.msra.mxu1 %v3973_v23  ;;  %v3952_v24 = vld [vmem:[#allocation7 + $0x80] sm:$0xf]  ;;  %v4496_v26 = vld [vmem:[#allocation7 + $0x8c] sm:$0xf0]  ;;  %v3937_v28 = vor.u32 %v4492_v4, %v3936_v39  ;;  %v4491_v27 = vld [vmem:[#allocation7 + $0x6c] sm:$0xf] }
 0x312   :  { %2271 = vmatpush.bf16.msra.mxu0 %v4001_v8  ;;  %2299 = vmatpush.bf16.msra.mxu2 %v3977_v60  ;;  %v3953_v16 = vor.u32 %v4496_v26, %v3952_v24  ;;  %v4490_v8 = vld [vmem:[#allocation7 + $0x64] sm:$0xf]  ;;  %v3946_v20 = vld [vmem:[#allocation7 + $0x78] sm:$0xf0]  ;;  %v3928_v36 = vld [vmem:[#allocation7 + $0x48] sm:$0xf] }
 0x313   :  { %4640 = vtanh.f32 %v4975_v1  ;;  %v1733_v7 = vsel %vm1732_vm14, %v4637_v51, %v1729_v14  ;;  %v3997_v51 = vor.u32 %v4503_v41, %v3994_v45  ;;  %v4494_v14 = vld [vmem:[#allocation7 + $0x84] sm:$0xf]  ;;  %v3941_v22 = vor.u32 %v4490_v8, %v3938_v12  ;;  %v4489_v31 = vld [vmem:[#allocation7 + $0x54] sm:$0xf0]  ;;  %v3904_v54 = vld [vmem:[#allocation7 + $0x20] sm:$0xf] }
 0x314   :  { %v1738_v18 = vsel %vm1735_vm15, %v1737_v11, %v1733_v7  ;;  %v3960_v7 = vld [vmem:[#allocation7 + $0x88] sm:$0xf]  ;;  %v4497_v11 = vld [vmem:[#allocation7 + $0x94] sm:$0xf0]  ;;  %v3949_v34 = vor.u32 %v4491_v27, %v3946_v20  ;;  %v4486_v35 = vld [vmem:[#allocation7 + $0x44] sm:$0xf]  ;;  %v3921_v45 = vor.u32 %v4488_v30, %v3920_v29 }
 0x315   :  { %2311 = vmatpush.bf16.msra.mxu3 %v3997_v51  ;;  %v3922_v51 = vld [vmem:[#allocation7 + $0x50] sm:$0xf0]  ;;  %v4484_v59 = vld [vmem:[#allocation7 + $0x2c] sm:$0xf0]  ;;  %v4482_v60 = vld [vmem:[#allocation7 + $0x24] sm:$0xf] }
 0x316   :  { %2272 = vmatpush.bf16.msra.mxu0 %v3985_v32  ;;  %v3925_v52 = vor.u32 %v4486_v35, %v3922_v51  ;;  %v3905_v23 = vor.u32 %v4484_v59, %v3904_v54  ;;  %v3906_v61 = vld [vmem:[#allocation7 + $0x30] sm:$0xf0]  ;;  %v3912_v0 = vld [vmem:[#allocation7 + $0x28] sm:$0xf]  ;;  %v4478_v39 = vld [vmem:[#allocation7 + $0x4] sm:$0xf] }
 0x317   :  { %v3909_v26 = vor.u32 %v4482_v60, %v3906_v61  ;;  %v3890_v8 = vld [vmem:[#allocation7 + $0x10] sm:$0xf0]  ;;  %v4481_v12 = vld [vmem:[#allocation7 + $0x14] sm:$0xf0] }
 0x318   :  { %v3893_v15 = vor.u32 %v4478_v39, %v3890_v8 }
 0x319   :  { %v4641_v3 = vpop.eup %4640  ;;  %2312 = vmatpush.bf16.msra.mxu3 %v3981_v56 }
 0x31a   :  { %v1745_v10 = vmul.f32 %v4641_v3, %v1738_v18  ;;  %2273 = vmatpush.bf16.msra.mxu0 %v3969_v53  ;;  %v3957_v3 = vor.u32 %v4494_v14, %v3954_v37  ;;  %v3961_v18 = vor.u32 %v4497_v11, %v3960_v7  ;;  %v4487_v53 = vld [vmem:[#allocation7 + $0x4c] sm:$0xf]  ;;  %v4485_v14 = vld [vmem:[#allocation7 + $0x34] sm:$0xf0]  ;;  %v3914_v37 = vld [vmem:[#allocation7 + $0x38] sm:$0xf0] }
 0x31c   :  { %v1748_v17 = vpack.c.bf16 %v1745_v10, %v1745_v10  ;;  %v4495_v10 = vld [vmem:[#allocation7 + $0x8c] sm:$0xf]  ;;  %2287 = vmatpush.bf16.msra.mxu1 %v3957_v3  ;;  %2300 = vmatpush.bf16.msra.mxu2 %v3961_v18  ;;  %v3913_v18 = vor.u32 %v4485_v14, %v3912_v0 }
 0x31e   :  { %3753 = vst [vmem:[%s5034_s6 + $0xc] sm:$0xf] %v1748_v17  ;;  %1953 = vmatmul.bf16.vlgmr.msrb.gmra.mxu0 %v1748_v17  ;;  %1966 = vmatmul.bf16.vlgmr.msrb.gmra.mxu1 %v1748_v17 }
 0x31f   :  { %1979 = vmatmul.bf16.vlgmr.msrb.gmra.mxu2 %v1748_v17  ;;  %1992 = vmatmul.bf16.vlgmr.msrb.gmra.mxu3 %v1748_v17  ;;  %v3962_v17 = vld [vmem:[#allocation7 + $0x98] sm:$0xf0] }
 0x320   :  { %2274 = vmatpush.bf16.msra.mxu0 %v3953_v16  ;;  %v3965_v33 = vor.u32 %v4495_v10, %v3962_v17  ;;  %2288 = vmatpush.bf16.msra.mxu1 %v3941_v22  ;;  %v4483_v16 = vld [vmem:[#allocation7 + $0x2c] sm:$0xf]  ;;  %v3888_v17 = vld [vmem:[#allocation7] sm:$0xf] }
 0x321   :  { %2301 = vmatpush.bf16.msra.mxu2 %v3945_v25  ;;  %v3917_v10 = vor.u32 %v4483_v16, %v3914_v37 }
 0x322   :  { %2313 = vmatpush.bf16.msra.mxu3 %v3965_v33  ;;  %v4480_v33 = vld [vmem:[#allocation7 + $0xc] sm:$0xf0] }
 0x323   :  { %v3889_v4 = vor.u32 %v4480_v33, %v3888_v17 }
 0x324   :  { %2275 = vmatpush.bf16.msra.mxu0 %v3937_v28  ;;  %2289 = vmatpush.bf16.msra.mxu1 %v3925_v52  ;;  %v3896_v28 = vld [vmem:[#allocation7 + $0x8] sm:$0xf] }
 0x326   :  { %2314 = vmatpush.bf16.msra.mxu3 %v3949_v34 }
 0x328   :  { %2276 = vmatpush.bf16.msra.mxu0 %v3921_v45  ;;  %2290 = vmatpush.bf16.msra.mxu1 %v3909_v26 }
 0x32c   :  { %2277 = vmatpush.bf16.msra.mxu0 %v3905_v23  ;;  %2291 = vmatpush.bf16.msra.mxu1 %v3893_v15  ;;  %v4540_v15 = vld [vmem:[#allocation7 + $0xec] sm:$0xf0] }
 0x330   :  { %2278 = vmatpush.bf16.msra.mxu0 %v3889_v4 }
 0x39b   :  { %v1954_v19 = vpop.f32.mrf.mxu0  ;;  %v1967_v21 = vpop.f32.mrf.mxu1 }
 0x39c   :  { %v2004_v43 = vadd.f32 %v1954_v19, %v4884_v40  ;;  %v2005_v32 = vadd.f32 %v1967_v21, %v4887_v42  ;;  %v3929_v40 = vor.u32 %v4489_v31, %v3928_v36  ;;  %v3930_v42 = vld [vmem:[#allocation7 + $0x58] sm:$0xf0]  ;;  %v4479_v19 = vld [vmem:[#allocation7 + $0xc] sm:$0xf] }
 0x39d   :  { %v3933_v9 = vor.u32 %v4487_v53, %v3930_v42  ;;  %v3898_v21 = vld [vmem:[#allocation7 + $0x18] sm:$0xf0] }
 0x39e   :  { %v3882_v38 = vmul.f32 -1.442695, %v2004_v43  ;;  %v3883_v41 = vmul.f32 -1.442695, %v2005_v32  ;;  %2302 = vmatpush.bf16.msra.mxu2 %v3929_v40  ;;  %v3901_v20 = vor.u32 %v4479_v19, %v3898_v21  ;;  %v4538_v19 = vld [vmem:[#allocation7 + $0xe4] sm:$0xf] }
 0x39f   :  { %2315 = vmatpush.bf16.msra.mxu3 %v3933_v9 }
 0x3a0   :  { %4642 = vpow2.f32 %v3882_v38 }
 0x3a1   :  { %4644 = vpow2.f32 %v3883_v41 }
 0x3a2   :  { %v1980_v56 = vpop.f32.mrf.mxu2  ;;  %v1993_v24 = vpop.f32.mrf.mxu3  ;;  %2303 = vmatpush.bf16.msra.mxu2 %v3913_v18 }
 0x3a3   :  { %v2007_v7 = vadd.f32 %v1993_v24, %v4893_v47  ;;  %v1956_v11 = vpop.f32.mrf.mxu0  ;;  %v1969_v3 = vpop.f32.mrf.mxu1  ;;  %v3897_v47 = vor.u32 %v4481_v12, %v3896_v28  ;;  %2316 = vmatpush.bf16.msra.mxu3 %v3917_v10  ;;  %v2006_v38 = vadd.f32 %v1980_v56, %v4890_v44 }
 0x3a5   :  { %v3884_v13 = vmul.f32 -1.442695, %v2007_v7 }
 0x3a6   :  { %v4643_v22 = vpop.eup %4642  ;;  %2304 = vmatpush.bf16.msra.mxu2 %v3897_v47  ;;  %v4140_v47 = vld [vmem:[#allocation7 + $0xe8] sm:$0xf] }
 0x3a7   :  { %v4645_v25 = vpop.eup %4644  ;;  %v2011_v27 = vadd.f32 1.0, %v4643_v22  ;;  %4646 = vpow2.f32 %v3884_v13  ;;  %2317 = vmatpush.bf16.msra.mxu3 %v3901_v20  ;;  %v4134_v22 = vld [vmem:[#allocation7 + $0xf0] sm:$0xf0] }
 0x3a8   :  { %v2030_v43 = vadd.f32 1.0, %v4645_v25  ;;  %v4541_v25 = vld [vmem:[#allocation7 + $0xf4] sm:$0xf0] }
 0x3a9   :  { %4648 = vrcp.f32 %v2011_v27  ;;  %v2023_v31 = vand.u32 2147483648, %v2011_v27  ;;  %v2021_v42 = vand.u32 2147483647, %v2011_v27  ;;  %vm2017_vm2 = vweird.f32 %v2011_v27 }
 0x3aa   :  { %4650 = vrcp.f32 %v2030_v43  ;;  %v1982_v32 = vpop.f32.mrf.mxu2  ;;  %v1995_v34 = vpop.f32.mrf.mxu3  ;;  %v2042_v53 = vand.u32 2147483648, %v2030_v43  ;;  %v2040_v59 = vand.u32 2147483647, %v2030_v43  ;;  %vm2036_vm3 = vweird.f32 %v2030_v43 }
 0x3ab   :  { %v2024_v44 = vor.u32 1.1754944e-38, %v2023_v31  ;;  %vm2022_vm6 = vcmp.eq.f32.partialorder %v2021_v42, 8.507059e+37  ;;  %v4141_v20 = vor.u32 %v4541_v25, %v4140_v47  ;;  %v4142_v32 = vld [vmem:[#allocation7 + $0xf8] sm:$0xf0]  ;;  %v4535_v31 = vld [vmem:[#allocation7 + $0xcc] sm:$0xf] }
 0x3ac   :  { %v2043_v0 = vor.u32 1.1754944e-38, %v2042_v53  ;;  %vm2041_vm7 = vcmp.eq.f32.partialorder %v2040_v59, 8.507059e+37  ;;  %v4126_v53 = vld [vmem:[#allocation7 + $0xd8] sm:$0xf0]  ;;  %v4100_v42 = vld [vmem:[#allocation7 + $0xa0] sm:$0xf] }
 0x3ad   :  { %v4647_v29 = vpop.eup %4646  ;;  %2623 = vmatpush.bf16.msrb.mxu2 %v4141_v20  ;;  %v4530_v59 = vld [vmem:[#allocation7 + $0xa4] sm:$0xf]  ;;  %v4523_v20 = vld [vmem:[#allocation7 + $0x6c] sm:$0xf] }
 0x3ae   :  { %v2050_v30 = vadd.f32 1.0, %v4647_v29  ;;  %v4116_v29 = vld [vmem:[#allocation7 + $0xc0] sm:$0xf] }
 0x3af   :  { %v4649_v35 = vpop.eup %4648 }
 0x3b0   :  { %v4651_v41 = vpop.eup %4650  ;;  %v2013_v45 = vmul.f32 %v4649_v35, %v2011_v27  ;;  %4652 = vrcp.f32 %v2050_v30  ;;  %vm2018_vm0 = vweird.f32 %v4649_v35  ;;  %v2062_v17 = vand.u32 2147483648, %v2050_v30 }
 0x3b1   :  { %v2032_v51 = vmul.f32 %v4651_v41, %v2030_v43  ;;  %4654 = vtanh.f32 %v2006_v38  ;;  %vm2037_vm1 = vweird.f32 %v4651_v41  ;;  %vm2019_vm4 = vmor %vm2017_vm2, %vm2018_vm0  ;;  %vm2056_vm9 = vweird.f32 %v2050_v30  ;;  %v4539_v43 = vld [vmem:[#allocation7 + $0xec] sm:$0xf] }
 0x3b2   :  { %v2014_v52 = vsub.f32 1.0, %v2013_v45  ;;  %vm2038_vm5 = vmor %vm2036_vm3, %vm2037_vm1  ;;  %v2060_v33 = vand.u32 2147483647, %v2050_v30  ;;  %v2063_v4 = vor.u32 1.1754944e-38, %v2062_v17  ;;  %v4137_v27 = vor.u32 %v4538_v19, %v4134_v22  ;;  %v4124_v45 = vld [vmem:[#allocation7 + $0xc8] sm:$0xf] }
 0x3b3   :  { %v2033_v36 = vsub.f32 1.0, %v2032_v51  ;;  %v4145_v34 = vor.u32 %v4539_v43, %v4142_v32  ;;  %v4537_v51 = vld [vmem:[#allocation7 + $0xd4] sm:$0xf0]  ;;  %v4076_v19 = vld [vmem:[#allocation7 + $0x68] sm:$0xf] }
 0x3b4   :  { %v2015_v40 = vmul.f32 %v4649_v35, %v2014_v52  ;;  %vm2061_vm11 = vcmp.eq.f32.partialorder %v2060_v33, 8.507059e+37  ;;  %2610 = vmatpush.bf16.msrb.mxu1 %v4137_v27  ;;  %v4078_v43 = vld [vmem:[#allocation7 + $0x78] sm:$0xf0] }
 0x3b5   :  { %v2034_v54 = vmul.f32 %v4651_v41, %v2033_v36  ;;  %2636 = vmatpush.bf16.msrb.mxu3 %v4145_v34  ;;  %v4125_v36 = vor.u32 %v4537_v51, %v4124_v45 }
 0x3b6   :  { %v4653_v9 = vpop.eup %4652  ;;  %v2016_v23 = vadd.f32 %v4649_v35, %v2015_v40  ;;  %v4129_v40 = vor.u32 %v4535_v31, %v4126_v53  ;;  %v4060_v31 = vld [vmem:[#allocation7 + $0x48] sm:$0xf]  ;;  %v4521_v53 = vld [vmem:[#allocation7 + $0x54] sm:$0xf0] }
 0x3b7   :  { %v2035_v60 = vadd.f32 %v4651_v41, %v2034_v54  ;;  %v2052_v61 = vmul.f32 %v4653_v9, %v2050_v30  ;;  %v4655_v24 = vpop.eup %4654  ;;  %vm2057_vm8 = vweird.f32 %v4653_v9  ;;  %v4536_v30 = vld [vmem:[#allocation7 + $0xcc] sm:$0xf0]  ;;  %2624 = vmatpush.bf16.msrb.mxu2 %v4125_v36 }
 0x3b8   :  { %v2020_v56 = vsel %vm2019_vm4, %v4649_v35, %v2016_v23  ;;  %vm2058_vm10 = vmor %vm2056_vm9, %vm2057_vm8  ;;  %v4534_v35 = vld [vmem:[#allocation7 + $0xc4] sm:$0xf]  ;;  %v4117_v38 = vor.u32 %v4536_v30, %v4116_v29  ;;  %v4532_v54 = vld [vmem:[#allocation7 + $0xac] sm:$0xf0]  ;;  %v4081_v29 = vor.u32 %v4523_v20, %v4078_v43 }
 0x3b9   :  { %v2025_v26 = vsel %vm2022_vm6, %v2024_v44, %v2020_v56  ;;  %v2039_v14 = vsel %vm2038_vm5, %v4651_v41, %v2035_v60  ;;  %v2053_v16 = vsub.f32 1.0, %v2052_v61  ;;  %v4118_v41 = vld [vmem:[#allocation7 + $0xd0] sm:$0xf0]  ;;  %2637 = vmatpush.bf16.msrb.mxu3 %v4129_v40  ;;  %v4108_v44 = vld [vmem:[#allocation7 + $0xa8] sm:$0xf] }
 0x3ba   :  { %v2044_v37 = vsel %vm2041_vm7, %v2043_v0, %v2039_v14  ;;  %v2068_v7 = vmul.f32 %v4655_v24, %v2025_v26  ;;  %v4121_v52 = vor.u32 %v4534_v35, %v4118_v41  ;;  %v4102_v23 = vld [vmem:[#allocation7 + $0xb0] sm:$0xf0]  ;;  %v4533_v60 = vld [vmem:[#allocation7 + $0xb4] sm:$0xf0]  ;;  %v4531_v56 = vld [vmem:[#allocation7 + $0xac] sm:$0xf] }
 0x3bb   :  { %v2067_v11 = vmul.f32 %v2044_v37, %v4975_v1  ;;  %v2054_v3 = vmul.f32 %v4653_v9, %v2053_v16  ;;  %v4132_v1 = vld [vmem:[#allocation7 + $0xe0] sm:$0xf]  ;;  %v4105_v61 = vor.u32 %v4530_v59, %v4102_v23  ;;  %v4109_v0 = vor.u32 %v4533_v60, %v4108_v44  ;;  %v4110_v24 = vld [vmem:[#allocation7 + $0xb8] sm:$0xf0]  ;;  %v4528_v16 = vld [vmem:[#allocation7 + $0x8c] sm:$0xf0] }
 0x3bc   :  { %v4133_v21 = vor.u32 %v4540_v15, %v4132_v1  ;;  %2611 = vmatpush.bf16.msrb.mxu1 %v4121_v52  ;;  %v4113_v26 = vor.u32 %v4531_v56, %v4110_v24  ;;  %v4084_v14 = vld [vmem:[#allocation7 + $0x80] sm:$0xf]  ;;  %v4526_v37 = vld [vmem:[#allocation7 + $0x84] sm:$0xf]  ;;  %v4070_v15 = vld [vmem:[#allocation7 + $0x70] sm:$0xf0] }
 0x3bd   :  { %v4986_v18 = vadd.f32 %v2068_v7, %v2067_v11  ;;  %v2055_v10 = vadd.f32 %v4653_v9, %v2054_v3  ;;  %2625 = vmatpush.bf16.msrb.mxu2 %v4109_v0  ;;  %v4085_v7 = vor.u32 %v4528_v16, %v4084_v14  ;;  %v4086_v11 = vld [vmem:[#allocation7 + $0x90] sm:$0xf0]  ;;  %v4092_v3 = vld [vmem:[#allocation7 + $0x88] sm:$0xf]  ;;  %v4052_v30 = vld [vmem:[#allocation7 + $0x40] sm:$0xf] }
 0x3be   :  { %2597 = vmatpush.bf16.msrb.mxu0 %v4133_v21  ;;  %2638 = vmatpush.bf16.msrb.mxu3 %v4113_v26  ;;  %v4089_v17 = vor.u32 %v4526_v37, %v4086_v11  ;;  %v4525_v21 = vld [vmem:[#allocation7 + $0x74] sm:$0xf0]  ;;  %v4520_v35 = vld [vmem:[#allocation7 + $0x4c] sm:$0xf0]  ;;  %v4054_v52 = vld [vmem:[#allocation7 + $0x50] sm:$0xf0] }
 0x3bf   :  { %4656 = vtanh.f32 %v4986_v18  ;;  %v2059_v39 = vsel %vm2058_vm10, %v4653_v9, %v2055_v10  ;;  %v4101_v9 = vor.u32 %v4532_v54, %v4100_v42  ;;  %v4529_v10 = vld [vmem:[#allocation7 + $0x94] sm:$0xf0]  ;;  %v4077_v27 = vor.u32 %v4525_v21, %v4076_v19  ;;  %v4519_v40 = vld [vmem:[#allocation7 + $0x4c] sm:$0xf]  ;;  %v4036_v42 = vld [vmem:[#allocation7 + $0x20] sm:$0xf] }
 0x3c0   :  { %v2064_v28 = vsel %vm2061_vm11, %v2063_v4, %v2059_v39  ;;  %2612 = vmatpush.bf16.msrb.mxu1 %v4105_v61  ;;  %v4093_v33 = vor.u32 %v4529_v10, %v4092_v3  ;;  %v4527_v39 = vld [vmem:[#allocation7 + $0x8c] sm:$0xf]  ;;  %v4094_v4 = vld [vmem:[#allocation7 + $0x98] sm:$0xf0]  ;;  %v4053_v51 = vor.u32 %v4520_v35, %v4052_v30  ;;  %v4516_v54 = vld [vmem:[#allocation7 + $0x2c] sm:$0xf0] }
 0x3c1   :  { %v4514_v23 = vld [vmem:[#allocation7 + $0x24] sm:$0xf]  ;;  %v4038_v44 = vld [vmem:[#allocation7 + $0x30] sm:$0xf0]  ;;  %v4044_v60 = vld [vmem:[#allocation7 + $0x28] sm:$0xf] }
 0x3c2   :  { %2598 = vmatpush.bf16.msrb.mxu0 %v4117_v38  ;;  %2626 = vmatpush.bf16.msrb.mxu2 %v4093_v33  ;;  %v4518_v38 = vld [vmem:[#allocation7 + $0x44] sm:$0xf]  ;;  %v4041_v56 = vor.u32 %v4514_v23, %v4038_v44  ;;  %v4517_v24 = vld [vmem:[#allocation7 + $0x34] sm:$0xf0]  ;;  %v4515_v26 = vld [vmem:[#allocation7 + $0x2c] sm:$0xf] }
 0x3c3   :  { %v4057_v36 = vor.u32 %v4518_v38, %v4054_v52  ;;  %v4046_v14 = vld [vmem:[#allocation7 + $0x38] sm:$0xf0]  ;;  %v4045_v11 = vor.u32 %v4517_v24, %v4044_v60  ;;  %v4020_v10 = vld [vmem:[#allocation7] sm:$0xf]  ;;  %v4510_v33 = vld [vmem:[#allocation7 + $0x4] sm:$0xf] }
 0x3c4   :  { %2613 = vmatpush.bf16.msrb.mxu1 %v4089_v17  ;;  %v4049_v3 = vor.u32 %v4515_v26, %v4046_v14  ;;  %v4512_v17 = vld [vmem:[#allocation7 + $0xc] sm:$0xf0] }
 0x3c5   :  { %v4657_v8 = vpop.eup %4656 }
 0x3c6   :  { %v2071_v12 = vmul.f32 %v4657_v8, %v2064_v28  ;;  %2599 = vmatpush.bf16.msrb.mxu0 %v4101_v9  ;;  %v4097_v8 = vor.u32 %v4527_v39, %v4094_v4  ;;  %v4068_v28 = vld [vmem:[#allocation7 + $0x60] sm:$0xf]  ;;  %2627 = vmatpush.bf16.msrb.mxu2 %v4077_v27  ;;  %v4037_v9 = vor.u32 %v4516_v54, %v4036_v42  ;;  %v4022_v4 = vld [vmem:[#allocation7 + $0x10] sm:$0xf0] }
 0x3c7   :  { %v4021_v39 = vor.u32 %v4512_v17, %v4020_v10 }
 0x3c8   :  { %v2074_v13 = vpack.c.bf16 %v2071_v12, %v2071_v12  ;;  %v4524_v12 = vld [vmem:[#allocation7 + $0x6c] sm:$0xf0]  ;;  %2639 = vmatpush.bf16.msrb.mxu3 %v4097_v8  ;;  %v4028_v8 = vld [vmem:[#allocation7 + $0x8] sm:$0xf] }
 0x3c9   :  { %v4069_v1 = vor.u32 %v4524_v12, %v4068_v28  ;;  %v4513_v28 = vld [vmem:[#allocation7 + $0x14] sm:$0xf0] }
 0x3ca   :  { %3885 = vst [vmem:[%s5034_s6 + $0x10] sm:$0xf] %v2074_v13  ;;  %2279 = vmatmul.bf16.vlgmr.msra.gmra.mxu0 %v2074_v13  ;;  %2292 = vmatmul.bf16.vlgmr.msra.gmra.mxu1 %v2074_v13 }
 0x3cb   :  { %2305 = vmatmul.bf16.vlgmr.msra.gmra.mxu2 %v2074_v13  ;;  %2318 = vmatmul.bf16.vlgmr.msra.gmra.mxu3 %v2074_v13  ;;  %v4522_v13 = vld [vmem:[#allocation7 + $0x64] sm:$0xf] }
 0x3cc   :  { %2600 = vmatpush.bf16.msrb.mxu0 %v4085_v7  ;;  %v4073_v25 = vor.u32 %v4522_v13, %v4070_v15  ;;  %2640 = vmatpush.bf16.msrb.mxu3 %v4081_v29  ;;  %v4025_v13 = vor.u32 %v4510_v33, %v4022_v4  ;;  %v4030_v15 = vld [vmem:[#allocation7 + $0x18] sm:$0xf0]  ;;  %v4572_v4 = vld [vmem:[#allocation7 + $0xec] sm:$0xf0] }
 0x3ce   :  { %2614 = vmatpush.bf16.msrb.mxu1 %v4073_v25 }
 0x3d0   :  { %2601 = vmatpush.bf16.msrb.mxu0 %v4069_v1  ;;  %v4511_v1 = vld [vmem:[#allocation7 + $0xc] sm:$0xf] }
 0x3d2   :  { %2615 = vmatpush.bf16.msrb.mxu1 %v4057_v36 }
 0x3d4   :  { %2602 = vmatpush.bf16.msrb.mxu0 %v4053_v51 }
 0x3d6   :  { %2616 = vmatpush.bf16.msrb.mxu1 %v4041_v56 }
 0x3d8   :  { %2603 = vmatpush.bf16.msrb.mxu0 %v4037_v9 }
 0x3da   :  { %2617 = vmatpush.bf16.msrb.mxu1 %v4025_v13  ;;  %v4272_v13 = vld [vmem:[#allocation7 + $0xe8] sm:$0xf] }
 0x3dc   :  { %2604 = vmatpush.bf16.msrb.mxu0 %v4021_v39 }
 0x447   :  { %v2280_v22 = vpop.f32.mrf.mxu0  ;;  %v2293_v47 = vpop.f32.mrf.mxu1 }
 0x448   :  { %v2330_v32 = vadd.f32 %v2280_v22, %v4896_v48  ;;  %v2331_v34 = vadd.f32 %v2293_v47, %v4899_v50  ;;  %v4061_v48 = vor.u32 %v4521_v53, %v4060_v31  ;;  %v4062_v50 = vld [vmem:[#allocation7 + $0x58] sm:$0xf0]  ;;  %v4033_v47 = vor.u32 %v4511_v1, %v4030_v15  ;;  %v4573_v1 = vld [vmem:[#allocation7 + $0xf4] sm:$0xf0] }
 0x449   :  { %v4065_v59 = vor.u32 %v4519_v40, %v4062_v50 }
 0x44a   :  { %v4014_v41 = vmul.f32 -1.442695, %v2330_v32  ;;  %v4015_v45 = vmul.f32 -1.442695, %v2331_v34  ;;  %2628 = vmatpush.bf16.msrb.mxu2 %v4061_v48 }
 0x44b   :  { %2641 = vmatpush.bf16.msrb.mxu3 %v4065_v59 }
 0x44c   :  { %4658 = vpow2.f32 %v4014_v41 }
 0x44d   :  { %4660 = vpow2.f32 %v4015_v45 }
 0x44e   :  { %v2306_v61 = vpop.f32.mrf.mxu2  ;;  %v2319_v0 = vpop.f32.mrf.mxu3  ;;  %2629 = vmatpush.bf16.msrb.mxu2 %v4045_v11 }
 0x44f   :  { %v2333_v16 = vadd.f32 %v2319_v0, %v4905_v62  ;;  %v2282_v37 = vpop.f32.mrf.mxu0  ;;  %v2295_v7 = vpop.f32.mrf.mxu1  ;;  %v4029_v62 = vor.u32 %v4513_v28, %v4028_v8  ;;  %2642 = vmatpush.bf16.msrb.mxu3 %v4049_v3  ;;  %v2332_v29 = vadd.f32 %v2306_v61, %v4902_v55  ;;  %v4570_v8 = vld [vmem:[#allocation7 + $0xe4] sm:$0xf] }
 0x451   :  { %v4016_v12 = vmul.f32 -1.442695, %v2333_v16 }
 0x452   :  { %v4659_v19 = vpop.eup %4658  ;;  %2630 = vmatpush.bf16.msrb.mxu2 %v4029_v62  ;;  %v4571_v62 = vld [vmem:[#allocation7 + $0xec] sm:$0xf] }
 0x453   :  { %v4661_v21 = vpop.eup %4660  ;;  %v2337_v22 = vadd.f32 1.0, %v4659_v19  ;;  %4662 = vpow2.f32 %v4016_v12  ;;  %2643 = vmatpush.bf16.msrb.mxu3 %v4033_v47  ;;  %v4266_v12 = vld [vmem:[#allocation7 + $0xf0] sm:$0xf0]  ;;  %v4273_v19 = vor.u32 %v4573_v1, %v4272_v13  ;;  %v4248_v47 = vld [vmem:[#allocation7 + $0xc0] sm:$0xf] }
 0x454   :  { %v2356_v25 = vadd.f32 1.0, %v4661_v21  ;;  %v4269_v15 = vor.u32 %v4570_v8, %v4266_v12  ;;  %v4274_v21 = vld [vmem:[#allocation7 + $0xf8] sm:$0xf0]  ;;  %v4555_v12 = vld [vmem:[#allocation7 + $0x6c] sm:$0xf] }
 0x455   :  { %4664 = vrcp.f32 %v2337_v22  ;;  %v2349_v51 = vand.u32 2147483648, %v2337_v22  ;;  %v2347_v31 = vand.u32 2147483647, %v2337_v22  ;;  %vm2343_vm14 = vweird.f32 %v2337_v22  ;;  %v4210_v13 = vld [vmem:[#allocation7 + $0x78] sm:$0xf0] }
 0x456   :  { %4666 = vrcp.f32 %v2356_v25  ;;  %v2308_v27 = vpop.f32.mrf.mxu2  ;;  %v2321_v20 = vpop.f32.mrf.mxu3  ;;  %v2368_v52 = vand.u32 2147483648, %v2356_v25  ;;  %v2366_v40 = vand.u32 2147483647, %v2356_v25  ;;  %vm2362_vm15 = vweird.f32 %v2356_v25  ;;  %2936 = vmatpush.bf16.msra.mxu1 %v4269_v15  ;;  %2949 = vmatpush.bf16.msra.mxu2 %v4273_v19 }
 0x457   :  { %v2350_v55 = vor.u32 1.1754944e-38, %v2349_v51  ;;  %vm2348_vm2 = vcmp.eq.f32.partialorder %v2347_v31, 8.507059e+37  ;;  %v4566_v27 = vld [vmem:[#allocation7 + $0xc4] sm:$0xf]  ;;  %v4564_v51 = vld [vmem:[#allocation7 + $0xac] sm:$0xf0]  ;;  %v4213_v19 = vor.u32 %v4555_v12, %v4210_v13 }
 0x458   :  { %v2369_v59 = vor.u32 1.1754944e-38, %v2368_v52  ;;  %vm2367_vm3 = vcmp.eq.f32.partialorder %v2366_v40, 8.507059e+37  ;;  %v4562_v52 = vld [vmem:[#allocation7 + $0xa4] sm:$0xf]  ;;  %v4234_v31 = vld [vmem:[#allocation7 + $0xb0] sm:$0xf0] }
 0x459   :  { %v4663_v43 = vpop.eup %4662  ;;  %v4565_v40 = vld [vmem:[#allocation7 + $0xb4] sm:$0xf0] }
 0x45a   :  { %v2376_v32 = vadd.f32 1.0, %v4663_v43  ;;  %v4250_v43 = vld [vmem:[#allocation7 + $0xd0] sm:$0xf0] }
 0x45b   :  { %v4665_v34 = vpop.eup %4664 }
 0x45c   :  { %v4667_v30 = vpop.eup %4666  ;;  %v2339_v35 = vmul.f32 %v4665_v34, %v2337_v22  ;;  %4668 = vrcp.f32 %v2376_v32  ;;  %vm2344_vm12 = vweird.f32 %v4665_v34  ;;  %v2388_v37 = vand.u32 2147483648, %v2376_v32 }
 0x45d   :  { %v2358_v38 = vmul.f32 %v4667_v30, %v2356_v25  ;;  %4670 = vtanh.f32 %v2332_v29  ;;  %vm2363_vm13 = vweird.f32 %v4667_v30  ;;  %vm2345_vm0 = vmor %vm2343_vm14, %vm2344_vm12  ;;  %vm2382_vm5 = vweird.f32 %v2376_v32  ;;  %v4568_v25 = vld [vmem:[#allocation7 + $0xcc] sm:$0xf0] }
 0x45e   :  { %v2340_v41 = vsub.f32 1.0, %v2339_v35  ;;  %vm2364_vm1 = vmor %vm2362_vm15, %vm2363_vm13  ;;  %v2386_v7 = vand.u32 2147483647, %v2376_v32  ;;  %v2389_v3 = vor.u32 1.1754944e-38, %v2388_v37  ;;  %v4277_v22 = vor.u32 %v4571_v62, %v4274_v21  ;;  %v4567_v35 = vld [vmem:[#allocation7 + $0xcc] sm:$0xf] }
 0x45f   :  { %v2359_v45 = vsub.f32 1.0, %v2358_v38  ;;  %v4249_v20 = vor.u32 %v4568_v25, %v4248_v47  ;;  %v4253_v29 = vor.u32 %v4566_v27, %v4250_v43  ;;  %v4258_v38 = vld [vmem:[#allocation7 + $0xd8] sm:$0xf0]  ;;  %v4184_v62 = vld [vmem:[#allocation7 + $0x40] sm:$0xf] }
 0x460   :  { %v2341_v36 = vmul.f32 %v4665_v34, %v2340_v41  ;;  %vm2387_vm7 = vcmp.eq.f32.partialorder %v2386_v7, 8.507059e+37  ;;  %2962 = vmatpush.bf16.msra.mxu3 %v4277_v22  ;;  %v4261_v41 = vor.u32 %v4567_v35, %v4258_v38  ;;  %v4200_v7 = vld [vmem:[#allocation7 + $0x60] sm:$0xf]  ;;  %v4552_v21 = vld [vmem:[#allocation7 + $0x4c] sm:$0xf0] }
 0x461   :  { %v2360_v53 = vmul.f32 %v4667_v30, %v2359_v45  ;;  %2937 = vmatpush.bf16.msra.mxu1 %v4253_v29  ;;  %v4232_v45 = vld [vmem:[#allocation7 + $0xa0] sm:$0xf]  ;;  %v4550_v22 = vld [vmem:[#allocation7 + $0x44] sm:$0xf]  ;;  %v4185_v27 = vor.u32 %v4552_v21, %v4184_v62  ;;  %v4551_v29 = vld [vmem:[#allocation7 + $0x4c] sm:$0xf] }
 0x462   :  { %v4669_v48 = vpop.eup %4668  ;;  %v2342_v50 = vadd.f32 %v4665_v34, %v2341_v36  ;;  %v4233_v36 = vor.u32 %v4564_v51, %v4232_v45  ;;  %v4548_v35 = vld [vmem:[#allocation7 + $0x2c] sm:$0xf0]  ;;  %v4546_v45 = vld [vmem:[#allocation7 + $0x24] sm:$0xf]  ;;  %v4170_v51 = vld [vmem:[#allocation7 + $0x30] sm:$0xf0] }
 0x463   :  { %v2361_v42 = vadd.f32 %v4667_v30, %v2360_v53  ;;  %v2378_v54 = vmul.f32 %v4669_v48, %v2376_v32  ;;  %v4671_v23 = vpop.eup %4670  ;;  %vm2383_vm4 = vweird.f32 %v4669_v48  ;;  %v4256_v32 = vld [vmem:[#allocation7 + $0xc8] sm:$0xf] }
 0x464   :  { %v2346_v9 = vsel %vm2345_vm0, %v4665_v34, %v2342_v50  ;;  %vm2384_vm6 = vmor %vm2382_vm5, %vm2383_vm4  ;;  %v4569_v34 = vld [vmem:[#allocation7 + $0xd4] sm:$0xf0]  ;;  %2963 = vmatpush.bf16.msra.mxu3 %v4261_v41  ;;  %v4240_v53 = vld [vmem:[#allocation7 + $0xa8] sm:$0xf] }
 0x465   :  { %v2351_v44 = vsel %vm2348_vm2, %v2350_v55, %v2346_v9  ;;  %v2365_v60 = vsel %vm2364_vm1, %v4667_v30, %v2361_v42  ;;  %v2379_v61 = vsub.f32 1.0, %v2378_v54  ;;  %v4257_v30 = vor.u32 %v4569_v34, %v4256_v32  ;;  %v4563_v55 = vld [vmem:[#allocation7 + $0xac] sm:$0xf]  ;;  %v4242_v42 = vld [vmem:[#allocation7 + $0xb8] sm:$0xf0] }
 0x466   :  { %v2370_v0 = vsel %vm2367_vm3, %v2369_v59, %v2365_v60  ;;  %v2394_v56 = vmul.f32 %v4671_v23, %v2351_v44  ;;  %v4241_v50 = vor.u32 %v4565_v40, %v4240_v53  ;;  %v4245_v54 = vor.u32 %v4563_v55, %v4242_v42  ;;  %v4216_v59 = vld [vmem:[#allocation7 + $0x80] sm:$0xf]  ;;  %v4560_v9 = vld [vmem:[#allocation7 + $0x8c] sm:$0xf0]  ;;  %v4558_v23 = vld [vmem:[#allocation7 + $0x84] sm:$0xf] }
 0x467   :  { %v2393_v24 = vmul.f32 %v2370_v0, %v4986_v18  ;;  %v2380_v26 = vmul.f32 %v4669_v48, %v2379_v61  ;;  %v4264_v18 = vld [vmem:[#allocation7 + $0xe0] sm:$0xf]  ;;  %2950 = vmatpush.bf16.msra.mxu2 %v4257_v30  ;;  %v4217_v44 = vor.u32 %v4560_v9, %v4216_v59  ;;  %v4218_v60 = vld [vmem:[#allocation7 + $0x90] sm:$0xf0]  ;;  %v4224_v61 = vld [vmem:[#allocation7 + $0x88] sm:$0xf]  ;;  %v4173_v53 = vor.u32 %v4546_v45, %v4170_v51 }
 0x468   :  { %v4265_v28 = vor.u32 %v4572_v4, %v4264_v18  ;;  %2964 = vmatpush.bf16.msra.mxu3 %v4245_v54  ;;  %v4561_v0 = vld [vmem:[#allocation7 + $0x94] sm:$0xf0]  ;;  %v4192_v32 = vld [vmem:[#allocation7 + $0x48] sm:$0xf]  ;;  %v4168_v30 = vld [vmem:[#allocation7 + $0x20] sm:$0xf] }
 0x469   :  { %v4997_v14 = vadd.f32 %v2394_v56, %v2393_v24  ;;  %v2381_v16 = vadd.f32 %v4669_v48, %v2380_v26  ;;  %v4221_v56 = vor.u32 %v4558_v23, %v4218_v60  ;;  %v4225_v24 = vor.u32 %v4561_v0, %v4224_v61  ;;  %v4559_v26 = vld [vmem:[#allocation7 + $0x8c] sm:$0xf]  ;;  %v4553_v34 = vld [vmem:[#allocation7 + $0x54] sm:$0xf0]  ;;  %v4152_v23 = vld [vmem:[#allocation7] sm:$0xf] }
 0x46a   :  { %2923 = vmatpush.bf16.msra.mxu0 %v4265_v28  ;;  %v4169_v41 = vor.u32 %v4548_v35, %v4168_v30  ;;  %v4549_v40 = vld [vmem:[#allocation7 + $0x34] sm:$0xf0]  ;;  %v4542_v60 = vld [vmem:[#allocation7 + $0x4] sm:$0xf]  ;;  %v4154_v0 = vld [vmem:[#allocation7 + $0x10] sm:$0xf0] }
 0x46b   :  { %4672 = vtanh.f32 %v4997_v14  ;;  %v2385_v11 = vsel %vm2384_vm6, %v4669_v48, %v2381_v16  ;;  %v4237_v48 = vor.u32 %v4562_v52, %v4234_v31  ;;  %2951 = vmatpush.bf16.msra.mxu2 %v4241_v50  ;;  %v4226_v16 = vld [vmem:[#allocation7 + $0x98] sm:$0xf0]  ;;  %v4176_v52 = vld [vmem:[#allocation7 + $0x28] sm:$0xf] }
 0x46c   :  { %v2390_v17 = vsel %vm2387_vm7, %v2389_v3, %v2385_v11  ;;  %v4229_v37 = vor.u32 %v4559_v26, %v4226_v16  ;;  %v4556_v11 = vld [vmem:[#allocation7 + $0x6c] sm:$0xf0]  ;;  %v4554_v3 = vld [vmem:[#allocation7 + $0x64] sm:$0xf]  ;;  %v4178_v50 = vld [vmem:[#allocation7 + $0x38] sm:$0xf0]  ;;  %v4177_v59 = vor.u32 %v4549_v40, %v4176_v52  ;;  %v4157_v16 = vor.u32 %v4542_v60, %v4154_v0 }
 0x46d   :  { %2938 = vmatpush.bf16.msra.mxu1 %v4237_v48  ;;  %v4547_v48 = vld [vmem:[#allocation7 + $0x2c] sm:$0xf] }
 0x46e   :  { %2924 = vmatpush.bf16.msra.mxu0 %v4249_v20  ;;  %2965 = vmatpush.bf16.msra.mxu3 %v4229_v37  ;;  %v4186_v20 = vld [vmem:[#allocation7 + $0x50] sm:$0xf0]  ;;  %v4181_v9 = vor.u32 %v4547_v48, %v4178_v50  ;;  %v4543_v37 = vld [vmem:[#allocation7 + $0xc] sm:$0xf] }
 0x46f   :  { %2952 = vmatpush.bf16.msra.mxu2 %v4225_v24  ;;  %v4189_v43 = vor.u32 %v4550_v22, %v4186_v20  ;;  %v4545_v24 = vld [vmem:[#allocation7 + $0x14] sm:$0xf0] }
 0x471   :  { %v4673_v10 = vpop.eup %4672  ;;  %2939 = vmatpush.bf16.msra.mxu1 %v4221_v56  ;;  %v4160_v56 = vld [vmem:[#allocation7 + $0x8] sm:$0xf] }
 0x472   :  { %v2397_v33 = vmul.f32 %v4673_v10, %v2390_v17  ;;  %2925 = vmatpush.bf16.msra.mxu0 %v4233_v36  ;;  %v4201_v10 = vor.u32 %v4556_v11, %v4200_v7  ;;  %v4202_v17 = vld [vmem:[#allocation7 + $0x70] sm:$0xf0]  ;;  %2966 = vmatpush.bf16.msra.mxu3 %v4213_v19  ;;  %v4162_v7 = vld [vmem:[#allocation7 + $0x18] sm:$0xf0] }
 0x473   :  { %v4205_v8 = vor.u32 %v4554_v3, %v4202_v17  ;;  %v4165_v17 = vor.u32 %v4543_v37, %v4162_v7 }
 0x474   :  { %v2400_v39 = vpack.c.bf16 %v2397_v33, %v2397_v33  ;;  %v4208_v33 = vld [vmem:[#allocation7 + $0x68] sm:$0xf] }
 0x475   :  { %2940 = vmatpush.bf16.msra.mxu1 %v4205_v8 }
 0x476   :  { %4017 = vst [vmem:[%s5034_s6 + $0x14] sm:$0xf] %v2400_v39  ;;  %2605 = vmatmul.bf16.vlgmr.msrb.gmra.mxu0 %v2400_v39  ;;  %2618 = vmatmul.bf16.vlgmr.msrb.gmra.mxu1 %v2400_v39 }
 0x477   :  { %2631 = vmatmul.bf16.vlgmr.msrb.gmra.mxu2 %v2400_v39  ;;  %2644 = vmatmul.bf16.vlgmr.msrb.gmra.mxu3 %v2400_v39  ;;  %v4557_v39 = vld [vmem:[#allocation7 + $0x74] sm:$0xf0] }
 0x478   :  { %2926 = vmatpush.bf16.msra.mxu0 %v4217_v44  ;;  %v4209_v28 = vor.u32 %v4557_v39, %v4208_v33  ;;  %v4544_v44 = vld [vmem:[#allocation7 + $0xc] sm:$0xf0] }
 0x479   :  { %2941 = vmatpush.bf16.msra.mxu1 %v4189_v43  ;;  %v4153_v61 = vor.u32 %v4544_v44, %v4152_v23 }
 0x47a   :  { %2953 = vmatpush.bf16.msra.mxu2 %v4209_v28 }
 0x47c   :  { %2927 = vmatpush.bf16.msra.mxu0 %v4201_v10 }
 0x47d   :  { %2942 = vmatpush.bf16.msra.mxu1 %v4173_v53 }
 0x480   :  { %2928 = vmatpush.bf16.msra.mxu0 %v4185_v27 }
 0x481   :  { %2943 = vmatpush.bf16.msra.mxu1 %v4157_v16 }
 0x484   :  { %2929 = vmatpush.bf16.msra.mxu0 %v4169_v41 }
 0x488   :  { %2930 = vmatpush.bf16.msra.mxu0 %v4153_v61 }
 0x4f3   :  { %v2606_v18 = vpop.f32.mrf.mxu0  ;;  %v2619_v4 = vpop.f32.mrf.mxu1 }
 0x4f4   :  { %v2656_v1 = vadd.f32 %v2606_v18, %v4908_v63  ;;  %v2657_v15 = vadd.f32 %v2619_v4, %v4911_v5  ;;  %v4193_v63 = vor.u32 %v4553_v34, %v4192_v32  ;;  %v4194_v5 = vld [vmem:[#allocation7 + $0x58] sm:$0xf0] }
 0x4f5   :  { %v4197_v38 = vor.u32 %v4551_v29, %v4194_v5 }
 0x4f6   :  { %v4146_v47 = vmul.f32 -1.442695, %v2656_v1  ;;  %v4147_v25 = vmul.f32 -1.442695, %v2657_v15  ;;  %2954 = vmatpush.bf16.msra.mxu2 %v4193_v63 }
 0x4f7   :  { %2967 = vmatpush.bf16.msra.mxu3 %v4197_v38 }
 0x4f8   :  { %4674 = vpow2.f32 %v4146_v47 }
 0x4f9   :  { %4676 = vpow2.f32 %v4147_v25 }
 0x4fa   :  { %v2632_v36 = vpop.f32.mrf.mxu2  ;;  %v2645_v31 = vpop.f32.mrf.mxu3  ;;  %2955 = vmatpush.bf16.msra.mxu2 %v4177_v59 }
 0x4fb   :  { %v2659_v55 = vadd.f32 %v2645_v31, %v4917_v57  ;;  %v2608_v42 = vpop.f32.mrf.mxu0  ;;  %v2621_v54 = vpop.f32.mrf.mxu1  ;;  %v4161_v57 = vor.u32 %v4545_v24, %v4160_v56  ;;  %2968 = vmatpush.bf16.msra.mxu3 %v4181_v9  ;;  %v2658_v12 = vadd.f32 %v2632_v36, %v4914_v46 }
 0x4fd   :  { %v4148_v26 = vmul.f32 -1.442695, %v2659_v55 }
 0x4fe   :  { %v4675_v11 = vpop.eup %4674  ;;  %2956 = vmatpush.bf16.msra.mxu2 %v4161_v57 }
 0x4ff   :  { %v4677_v3 = vpop.eup %4676  ;;  %v2663_v10 = vadd.f32 1.0, %v4675_v11  ;;  %4678 = vpow2.f32 %v4148_v26  ;;  %2969 = vmatpush.bf16.msra.mxu3 %v4165_v17 }
 0x500   :  { %v2682_v33 = vadd.f32 1.0, %v4677_v3 }
 0x501   :  { %4680 = vrcp.f32 %v2663_v10  ;;  %v2675_v21 = vand.u32 2147483648, %v2663_v10  ;;  %v2673_v25 = vand.u32 2147483647, %v2663_v10  ;;  %vm2669_vm10 = vweird.f32 %v2663_v10 }
 0x502   :  { %4682 = vrcp.f32 %v2682_v33  ;;  %v2634_v39 = vpop.f32.mrf.mxu2  ;;  %v2647_v18 = vpop.f32.mrf.mxu3  ;;  %v2694_v22 = vand.u32 2147483648, %v2682_v33  ;;  %v2692_v20 = vand.u32 2147483647, %v2682_v33  ;;  %vm2688_vm11 = vweird.f32 %v2682_v33 }
 0x503   :  { %v2676_v46 = vor.u32 1.1754944e-38, %v2675_v21  ;;  %vm2674_vm14 = vcmp.eq.f32.partialorder %v2673_v25, 8.507059e+37 }
 0x504   :  { %v2695_v63 = vor.u32 1.1754944e-38, %v2694_v22  ;;  %vm2693_vm15 = vcmp.eq.f32.partialorder %v2692_v20, 8.507059e+37 }
 0x505   :  { %v4679_v4 = vpop.eup %4678 }
 0x506   :  { %v2702_v8 = vadd.f32 1.0, %v4679_v4 }
 0x507   :  { %v4681_v28 = vpop.eup %4680 }
 0x508   :  { %v4683_v13 = vpop.eup %4682  ;;  %v2665_v1 = vmul.f32 %v4681_v28, %v2663_v10  ;;  %4684 = vrcp.f32 %v2702_v8  ;;  %vm2670_vm8 = vweird.f32 %v4681_v28  ;;  %v2714_v40 = vand.u32 2147483648, %v2702_v8 }
 0x509   :  { %v2684_v15 = vmul.f32 %v4683_v13, %v2682_v33  ;;  %4686 = vtanh.f32 %v2658_v12  ;;  %vm2689_vm9 = vweird.f32 %v4683_v13  ;;  %vm2671_vm12 = vmor %vm2669_vm10, %vm2670_vm8  ;;  %vm2708_vm1 = vweird.f32 %v2702_v8 }
 0x50a   :  { %v2666_v19 = vsub.f32 1.0, %v2665_v1  ;;  %vm2690_vm13 = vmor %vm2688_vm11, %vm2689_vm9  ;;  %v2712_v48 = vand.u32 2147483647, %v2702_v8  ;;  %v2715_v55 = vor.u32 1.1754944e-38, %v2714_v40 }
 0x50b   :  { %v2685_v62 = vsub.f32 1.0, %v2684_v15 }
 0x50c   :  { %v2667_v47 = vmul.f32 %v4681_v28, %v2666_v19  ;;  %vm2713_vm3 = vcmp.eq.f32.partialorder %v2712_v48, 8.507059e+37 }
 0x50d   :  { %v2686_v27 = vmul.f32 %v4683_v13, %v2685_v62 }
 0x50e   :  { %v4685_v43 = vpop.eup %4684  ;;  %v2668_v32 = vadd.f32 %v4681_v28, %v2667_v47 }
 0x50f   :  { %v2687_v34 = vadd.f32 %v4683_v13, %v2686_v27  ;;  %v2704_v29 = vmul.f32 %v4685_v43, %v2702_v8  ;;  %v4687_v30 = vpop.eup %4686  ;;  %vm2709_vm0 = vweird.f32 %v4685_v43 }
 0x510   :  { %v2672_v5 = vsel %vm2671_vm12, %v4681_v28, %v2668_v32  ;;  %vm2710_vm2 = vmor %vm2708_vm1, %vm2709_vm0 }
 0x511   :  { %v2677_v35 = vsel %vm2674_vm14, %v2676_v46, %v2672_v5  ;;  %v2691_v38 = vsel %vm2690_vm13, %v4683_v13, %v2687_v34  ;;  %v2705_v41 = vsub.f32 1.0, %v2704_v29 }
 0x512   :  { %v2696_v45 = vsel %vm2693_vm15, %v2695_v63, %v2691_v38  ;;  %v2720_v51 = vmul.f32 %v4687_v30, %v2677_v35 }
 0x513   :  { %v2719_v52 = vmul.f32 %v2696_v45, %v4997_v14  ;;  %v2706_v36 = vmul.f32 %v4685_v43, %v2705_v41 }
 0x515   :  { %v5008_v31 = vadd.f32 %v2720_v51, %v2719_v52  ;;  %v2707_v53 = vadd.f32 %v4685_v43, %v2706_v36 }
 0x517   :  { %4688 = vtanh.f32 %v5008_v31  ;;  %v2711_v50 = vsel %vm2710_vm2, %v4685_v43, %v2707_v53 }
 0x518   :  { %v2716_v54 = vsel %vm2713_vm3, %v2715_v55, %v2711_v50 }
 0x51d   :  { %v4689_v42 = vpop.eup %4688 }
 0x51e   :  { %v2723_v59 = vmul.f32 %v4689_v42, %v2716_v54 }
 0x520   :  { %v2726_v9 = vpack.c.bf16 %v2723_v59, %v2723_v59 }
 0x522   :  { %4149 = vst [vmem:[%s5034_s6 + $0x18] sm:$0xf] %v2726_v9  ;;  %2931 = vmatmul.bf16.vlgmr.msra.gmra.mxu0 %v2726_v9  ;;  %2944 = vmatmul.bf16.vlgmr.msra.gmra.mxu1 %v2726_v9 }
 0x523   :  { %2957 = vmatmul.bf16.vlgmr.msra.gmra.mxu2 %v2726_v9  ;;  %2970 = vmatmul.bf16.vlgmr.msra.gmra.mxu3 %v2726_v9 }
 0x59f   :  { %v2932_v14 = vpop.f32.mrf.mxu0  ;;  %v2945_v23 = vpop.f32.mrf.mxu1 }
 0x5a0   :  { %v2982_v44 = vadd.f32 %v2932_v14, %v4920_v58  ;;  %v2983_v60 = vadd.f32 %v2945_v23, %v4923_v2 }
 0x5a2   :  { %v4278_v61 = vmul.f32 -1.442695, %v2982_v44  ;;  %v4279_v0 = vmul.f32 -1.442695, %v2983_v60 }
 0x5a4   :  { %4690 = vpow2.f32 %v4278_v61 }
 0x5a5   :  { %4692 = vpow2.f32 %v4279_v0 }
 0x5a6   :  { %v2958_v56 = vpop.f32.mrf.mxu2  ;;  %v2971_v24 = vpop.f32.mrf.mxu3 }
 0x5a7   :  { %v2985_v26 = vadd.f32 %v2971_v24, %v4933_v6  ;;  %v2934_v16 = vpop.f32.mrf.mxu0  ;;  %v2947_v37 = vpop.f32.mrf.mxu1  ;;  %v2984_v18 = vadd.f32 %v2958_v56, %v4930_v49 }
 0x5a9   :  { %v4280_v7 = vmul.f32 -1.442695, %v2985_v26 }
 0x5aa   :  { %v4691_v11 = vpop.eup %4690 }
 0x5ab   :  { %v4693_v57 = vpop.eup %4692  ;;  %v2989_v3 = vadd.f32 1.0, %v4691_v11  ;;  %4694 = vpow2.f32 %v4280_v7 }
 0x5ac   :  { %v3008_v10 = vadd.f32 1.0, %v4693_v57 }
 0x5ad   :  { %4696 = vrcp.f32 %v2989_v3  ;;  %v3001_v13 = vand.u32 2147483648, %v2989_v3  ;;  %v2999_v19 = vand.u32 2147483647, %v2989_v3  ;;  %vm2995_vm6 = vweird.f32 %v2989_v3 }
 0x5ae   :  { %4698 = vrcp.f32 %v3008_v10  ;;  %v2960_v58 = vpop.f32.mrf.mxu2  ;;  %v2973_v2 = vpop.f32.mrf.mxu3  ;;  %v3020_v1 = vand.u32 2147483648, %v3008_v10  ;;  %v3018_v21 = vand.u32 2147483647, %v3008_v10  ;;  %vm3014_vm7 = vweird.f32 %v3008_v10 }
 0x5af   :  { %v3002_v49 = vor.u32 1.1754944e-38, %v3001_v13  ;;  %vm3000_vm10 = vcmp.eq.f32.partialorder %v2999_v19, 8.507059e+37 }
 0x5b0   :  { %v3021_v20 = vor.u32 1.1754944e-38, %v3020_v1  ;;  %vm3019_vm11 = vcmp.eq.f32.partialorder %v3018_v21, 8.507059e+37 }
 0x5b1   :  { %v4695_v17 = vpop.eup %4694 }
 0x5b2   :  { %v3028_v33 = vadd.f32 1.0, %v4695_v17 }
 0x5b3   :  { %v4697_v39 = vpop.eup %4696 }
 0x5b4   :  { %v4699_v4 = vpop.eup %4698  ;;  %v2991_v8 = vmul.f32 %v4697_v39, %v2989_v3  ;;  %4700 = vrcp.f32 %v3028_v33  ;;  %vm2996_vm4 = vweird.f32 %v4697_v39  ;;  %v3040_v45 = vand.u32 2147483648, %v3028_v33 }
 0x5b5   :  { %v3010_v6 = vmul.f32 %v4699_v4, %v3008_v10  ;;  %4702 = vtanh.f32 %v2984_v18  ;;  %vm3015_vm5 = vweird.f32 %v4699_v4  ;;  %vm2997_vm8 = vmor %vm2995_vm6, %vm2996_vm4  ;;  %vm3034_vm13 = vweird.f32 %v3028_v33 }
 0x5b6   :  { %v2992_v28 = vsub.f32 1.0, %v2991_v8  ;;  %vm3016_vm9 = vmor %vm3014_vm7, %vm3015_vm5  ;;  %v3038_v51 = vand.u32 2147483647, %v3028_v33  ;;  %v3041_v36 = vor.u32 1.1754944e-38, %v3040_v45 }
 0x5b7   :  { %v3011_v12 = vsub.f32 1.0, %v3010_v6 }
 0x5b8   :  { %v2993_v15 = vmul.f32 %v4697_v39, %v2992_v28  ;;  %vm3039_vm15 = vcmp.eq.f32.partialorder %v3038_v51, 8.507059e+37 }
 0x5b9   :  { %v3012_v62 = vmul.f32 %v4699_v4, %v3011_v12 }
 0x5ba   :  { %v4701_v22 = vpop.eup %4700  ;;  %v2994_v47 = vadd.f32 %v4697_v39, %v2993_v15 }
 0x5bb   :  { %v3013_v25 = vadd.f32 %v4699_v4, %v3012_v62  ;;  %v3030_v27 = vmul.f32 %v4701_v22, %v3028_v33  ;;  %v4703_v32 = vpop.eup %4702  ;;  %vm3035_vm12 = vweird.f32 %v4701_v22 }
 0x5bc   :  { %v2998_v43 = vsel %vm2997_vm8, %v4697_v39, %v2994_v47  ;;  %vm3036_vm14 = vmor %vm3034_vm13, %vm3035_vm12 }
 0x5bd   :  { %v3003_v46 = vsel %vm3000_vm10, %v3002_v49, %v2998_v43  ;;  %v3017_v34 = vsel %vm3016_vm9, %v4699_v4, %v3013_v25  ;;  %v3031_v29 = vsub.f32 1.0, %v3030_v27 }
 0x5be   :  { %v3022_v63 = vsel %vm3019_vm11, %v3021_v20, %v3017_v34  ;;  %v3046_v5 = vmul.f32 %v4703_v32, %v3003_v46 }
 0x5bf   :  { %v3045_v30 = vmul.f32 %v3022_v63, %v5008_v31  ;;  %v3032_v35 = vmul.f32 %v4701_v22, %v3031_v29 }
 0x5c1   :  { %v3047_v38 = vadd.f32 %v3046_v5, %v3045_v30  ;;  %v3033_v41 = vadd.f32 %v4701_v22, %v3032_v35 }
 0x5c3   :  { %4704 = vtanh.f32 %v3047_v38  ;;  %3061 = vst [vmem:[%s5036_s8] sm:$0xff] %v3047_v38  ;;  %v3037_v52 = vsel %vm3036_vm14, %v4701_v22, %v3033_v41 }
 0x5c4   :  { %v3042_v40 = vsel %vm3039_vm15, %v3041_v36, %v3037_v52 }
 0x5c9   :  { %v4705_v53 = vpop.eup %4704 }
 0x5ca   :  { %v3049_v48 = vmul.f32 %v4705_v53, %v3042_v40 }
 0x5cc   :  { %v3052_v31 = vpack.c.bf16 %v3049_v48, %v3049_v48  ;;  %3059 = vst [vmem:[%s5035_s7] sm:$0xff] %v3049_v48 }
 0x5ce   :  { %4281 = vst [vmem:[%s5034_s6 + $0x1c] sm:$0xf] %v3052_v31 }
 0x5cf   :  { %3074 = vsyncpa [#allocation6], 1 }
 0x5d0   :  { %3075 = vsyncpa [#allocation8], 1 }

</bundles_post_ra>
